<compile_context>
chip_gen: v5e
topology: v5e:2x2
jax: 0.10.0
libtpu: 0.0.40
codegen_flags: <defaults>
</compile_context>

<pallas_src>
import functools
import math

import numpy as np
import jax
import jax.numpy as jnp
from jax.experimental import pallas as pl
from jax.experimental.pallas import tpu as pltpu

# ----------------------------- configuration --------------------------------
C_S = 32                 # trunk single-rep channels   (torch default 1024)
C_Z = 16                 # trunk pair-rep channels     (torch default 128)
NUM_HEADS_SEQ = 4        # sequence attention heads
NUM_REL_POS = 8          # relative position bins
NUM_EVOFORMER_BLOCKS = 2
NUM_RECYCLE_BINS = 15
MAX_RECYCLES = 2
SM_C_S = 16              # structure-module single channels
SM_C_Z = 8               # structure-module pair channels
TRANS_SCALE = 10.0
C_OPM = 4                # outer-product-mean hidden channels
TRANS_FACTOR = 4         # transition MLP expansion
LN_EPS = 1e-5


def _vmem_limit_bytes():
    """Generation-aware scoped-VMEM request (~48 MiB v7x, ~96 MiB v5e/v6e)."""
    try:
        cap = pltpu.get_tpu_info().vmem_capacity_bytes
        return int(min(cap * 3 // 4, 100 * 1024 * 1024))
    except Exception:
        return 48 * 1024 * 1024


_VMEM_LIMIT = _vmem_limit_bytes()


def _cparams(semantics):
    return pltpu.CompilerParams(dimension_semantics=semantics,
                                vmem_limit_bytes=_VMEM_LIMIT)


def _row_tile(rows, width):
    """Large row tile (multiple of 8) dividing `rows`, ~2 MiB f32 per buffer."""
    cap = max(8, (2 * 1024 * 1024) // max(4 * width, 1))
    for t in (8192, 4096, 2048, 1024, 512, 256, 128, 64, 32, 16, 8):
        if t <= cap and rows % t == 0:
            return t
    return rows


def _attn_tile(seqlen):
    for t in (128, 64, 32, 16, 8):
        if seqlen % t == 0:
            return t
    return seqlen


def _pair_tile(seqlen, c_z):
    """i-row tile for [*, ti, L, c_z] blocks (bounds VMEM at long L)."""
    budget = max(8, (1 << 19) // max(seqlen * c_z, 1))
    for t in (256, 128, 64, 32, 16, 8):
        if t <= budget and seqlen % t == 0:
            return t
    return seqlen


def _ln(x, g, b):
    mu = jnp.mean(x, axis=-1, keepdims=True)
    var = jnp.mean((x - mu) * (x - mu), axis=-1, keepdims=True)
    return (x - mu) * jax.lax.rsqrt(var + LN_EPS) * g + b


def _bf16(x):
    return x.astype(jnp.bfloat16)


# ----------------------------- Pallas kernels --------------------------------
@functools.lru_cache(maxsize=None)
def _make_seq_prologue(rows, c, tile):
    """out = base + LN(x)   (recycle sequence prologue)."""
    def kern(base_ref, x_ref, g_ref, b_ref, o_ref):
        x = x_ref[...].astype(jnp.float32)
        o_ref[...] = (base_ref[...].astype(jnp.float32)
                      + _ln(x, g_ref[...], b_ref[...])).astype(o_ref.dtype)

    return pl.pallas_call(
        kern,
        grid=(rows // tile,),
        in_specs=[pl.BlockSpec((tile, c), lambda i: (i, 0)),
                  pl.BlockSpec((tile, c), lambda i: (i, 0)),
                  pl.BlockSpec((1, c), lambda i: (0, 0)),
                  pl.BlockSpec((1, c), lambda i: (0, 0))],
        out_specs=pl.BlockSpec((tile, c), lambda i: (i, 0)),
        out_shape=jax.ShapeDtypeStruct((rows, c), jnp.float32),
        compiler_params=_cparams(("parallel",)))


@functools.lru_cache(maxsize=None)
def _make_pair_prologue(batch, seqlen, ti, c_z, nbins, rel_batched):
    """z = z0 + LN(recycle_z) + disto_table[bins] + relpos  (bf16 out).

    The disto lookup is an in-VMEM one-hot matmul; relpos is read through a
    constant-batch index_map when it is shared across the batch.
    """
    def kern(z0_ref, rz_ref, g_ref, b_ref, bins_ref, tab_ref, rel_ref, o_ref):
        rz_ln = _ln(rz_ref[0].astype(jnp.float32), g_ref[...], b_ref[...])
        bins = bins_ref[0]                                         # [ti, L, 1]
        iota = jax.lax.broadcasted_iota(jnp.int32, (1, 1, nbins), 2)
        onehot = (bins == iota).astype(jnp.float32).reshape(ti * seqlen, nbins)
        emb = jnp.dot(onehot, tab_ref[...],
                      preferred_element_type=jnp.float32).reshape(ti, seqlen, c_z)
        o_ref[0] = (z0_ref[0].astype(jnp.float32) + rz_ln + emb
                    + rel_ref[0].astype(jnp.float32)).astype(o_ref.dtype)

    rel_map = ((lambda b, i: (b, i, 0, 0)) if rel_batched
               else (lambda b, i: (0, i, 0, 0)))
    return pl.pallas_call(
        kern,
        grid=(batch, seqlen // ti),
        in_specs=[pl.BlockSpec((1, ti, seqlen, c_z), lambda b, i: (b, i, 0, 0)),
                  pl.BlockSpec((1, ti, seqlen, c_z), lambda b, i: (b, i, 0, 0)),
                  pl.BlockSpec((1, c_z), lambda b, i: (0, 0)),
                  pl.BlockSpec((1, c_z), lambda b, i: (0, 0)),
                  pl.BlockSpec((1, ti, seqlen, 1), lambda b, i: (b, i, 0, 0)),
                  pl.BlockSpec((nbins, c_z), lambda b, i: (0, 0)),
                  pl.BlockSpec((1, ti, seqlen, c_z), rel_map)],
        out_specs=pl.BlockSpec((1, ti, seqlen, c_z), lambda b, i: (b, i, 0, 0)),
        out_shape=jax.ShapeDtypeStruct((batch, seqlen, seqlen, c_z), jnp.bfloat16),
        compiler_params=_cparams(("parallel", "parallel")))


@functools.lru_cache(maxsize=None)
def _make_attn_sublayer(batch, seqlen, c_s, c_z, nheads, tq, tk, c_opm, chid):
    """Flash-tiled pair-biased self-attention + residual, with the sequence
    transition and the outer-product-mean a|b projection fused in the epilogue.

       s_out = T( s + Wo . softmax( LN(s)Wq . (LN(s)Wk)^T + LN(z)Wpb + mask ) LN(s)Wv )
       ab    = LN_op(s_out) Wab + bab
    """
    dh = c_s // nheads
    scale = 1.0 / math.sqrt(dh)

    def kern(sq_ref, sk_ref, z_ref, mq_ref, mk_ref,
             sg_ref, sb_ref, wq_ref, bq_ref, wkv_ref, bkv_ref,
             zg_ref, zb_ref, wpb_ref, bpb_ref, wo_ref, bo_ref,
             tg_ref, tb_ref, tw1_ref, tb1_ref, tw2_ref, tb2_ref,
             og_ref, ob_ref, wab_ref, bab_ref,
             o_ref, ab_ref,
             q_scr, m_scr, l_scr, acc_scr):
        kj = pl.program_id(2)
        nk = pl.num_programs(2)

        @pl.when(kj == 0)
        def _init():
            s_q_ln = _ln(sq_ref[0].astype(jnp.float32), sg_ref[...], sb_ref[...])
            q = jnp.dot(_bf16(s_q_ln), wq_ref[...],
                        preferred_element_type=jnp.float32) + bq_ref[...]
            q_scr[...] = q * scale
            m_scr[...] = jnp.full(m_scr.shape, -1e30, jnp.float32)
            l_scr[...] = jnp.zeros(l_scr.shape, jnp.float32)
            acc_scr[...] = jnp.zeros(acc_scr.shape, jnp.float32)

        # K / V for this kv tile (LN + fused KV matmul).
        s_k_ln = _ln(sk_ref[0].astype(jnp.float32), sg_ref[...], sb_ref[...])
        kv = jnp.dot(_bf16(s_k_ln), wkv_ref[...],
                     preferred_element_type=jnp.float32) + bkv_ref[...]
        k = kv[:, 0:c_s]
        v = kv[:, c_s:2 * c_s]

        # Pair bias for this (q-tile, kv-tile) block of z.
        z_ln = _ln(z_ref[0].astype(jnp.float32), zg_ref[...], zb_ref[...])
        pb = (jnp.dot(_bf16(z_ln.reshape(tq * tk, c_z)), wpb_ref[...],
                      preferred_element_type=jnp.float32)
              + bpb_ref[...]).reshape(tq, tk, nheads)
        # Mask bias built in-kernel from the 1-D sequence mask.
        mask_bias = (mq_ref[0] * jnp.transpose(mk_ref[0]) - 1.0) * 1e9  # [tq, tk]

        q_all = q_scr[...]
        for h in range(nheads):                                    # unrolled (H small)
            q_h = _bf16(q_all[:, h * dh:(h + 1) * dh])
            k_h = _bf16(k[:, h * dh:(h + 1) * dh])
            v_h = _bf16(v[:, h * dh:(h + 1) * dh])
            sc = jax.lax.dot_general(q_h, k_h, (((1,), (1,)), ((), ())),
                                     preferred_element_type=jnp.float32)
            sc = sc + pb[:, :, h] + mask_bias
            m_prev = m_scr[h]
            m_new = jnp.maximum(m_prev, jnp.max(sc, axis=-1, keepdims=True))
            alpha = jnp.exp(m_prev - m_new)
            p = jnp.exp(sc - m_new)
            l_scr[h] = alpha * l_scr[h] + jnp.sum(p, axis=-1, keepdims=True)
            acc_scr[h] = alpha * acc_scr[h] + jnp.dot(
                _bf16(p), v_h, preferred_element_type=jnp.float32)
            m_scr[h] = m_new

        @pl.when(kj == nk - 1)
        def _epilogue():
            s_q = sq_ref[0].astype(jnp.float32)
            wo = wo_ref[...]
            y = jnp.zeros((tq, c_s), jnp.float32)
            for h in range(nheads):          # distribute Wo over heads (no concat)
                inv_l = pl.reciprocal(l_scr[h], approx=True)
                ctx = _bf16(acc_scr[h] * inv_l)
                y = y + jnp.dot(ctx, wo[h * dh:(h + 1) * dh, :],
                                preferred_element_type=jnp.float32)
            s1 = s_q + y + bo_ref[...]
            # fused sequence transition: s += W2 relu(W1 LN(s) + b1) + b2
            s1_ln = _ln(s1, tg_ref[...], tb_ref[...])
            hid = jnp.maximum(jnp.dot(_bf16(s1_ln), tw1_ref[...],
                                      preferred_element_type=jnp.float32)
                              + tb1_ref[...], 0.0)
            s2 = s1 + jnp.dot(_bf16(hid), tw2_ref[...],
                              preferred_element_type=jnp.float32) + tb2_ref[...]
            o_ref[0] = s2.astype(o_ref.dtype)
            # fused OPM left/right projection (hoisted out of the pair kernel)
            op_ln = _ln(s2, og_ref[...], ob_ref[...])
            ab_ref[0] = (jnp.dot(_bf16(op_ln), wab_ref[...],
                                 preferred_element_type=jnp.float32)
                         + bab_ref[...]).astype(ab_ref.dtype)

    const2 = lambda b, qi, kj: (0, 0)
    return pl.pallas_call(
        kern,
        grid=(batch, seqlen // tq, seqlen // tk),
        in_specs=[
            pl.BlockSpec((1, tq, c_s), lambda b, qi, kj: (b, qi, 0)),
            pl.BlockSpec((1, tk, c_s), lambda b, qi, kj: (b, kj, 0)),
            pl.BlockSpec((1, tq, tk, c_z), lambda b, qi, kj: (b, qi, kj, 0)),
            pl.BlockSpec((1, tq, 1), lambda b, qi, kj: (b, qi, 0)),
            pl.BlockSpec((1, tk, 1), lambda b, qi, kj: (b, kj, 0)),
            pl.BlockSpec((1, c_s), const2), pl.BlockSpec((1, c_s), const2),
            pl.BlockSpec((c_s, c_s), const2), pl.BlockSpec((1, c_s), const2),
            pl.BlockSpec((c_s, 2 * c_s), const2), pl.BlockSpec((1, 2 * c_s), const2),
            pl.BlockSpec((1, c_z), const2), pl.BlockSpec((1, c_z), const2),
            pl.BlockSpec((c_z, nheads), const2), pl.BlockSpec((1, nheads), const2),
            pl.BlockSpec((c_s, c_s), const2), pl.BlockSpec((1, c_s), const2),
            pl.BlockSpec((1, c_s), const2), pl.BlockSpec((1, c_s), const2),
            pl.BlockSpec((c_s, chid), const2), pl.BlockSpec((1, chid), const2),
            pl.BlockSpec((chid, c_s), const2), pl.BlockSpec((1, c_s), const2),
            pl.BlockSpec((1, c_s), const2), pl.BlockSpec((1, c_s), const2),
            pl.BlockSpec((c_s, 2 * c_opm), const2),
            pl.BlockSpec((1, 2 * c_opm), const2),
        ],
        out_specs=(pl.BlockSpec((1, tq, c_s), lambda b, qi, kj: (b, qi, 0)),
                   pl.BlockSpec((1, tq, 2 * c_opm), lambda b, qi, kj: (b, qi, 0))),
        out_shape=(jax.ShapeDtypeStruct((batch, seqlen, c_s), jnp.float32),
                   jax.ShapeDtypeStruct((batch, seqlen, 2 * c_opm), jnp.float32)),
        scratch_shapes=[pltpu.VMEM((tq, c_s), jnp.float32),
                        pltpu.VMEM((nheads, tq, 1), jnp.float32),
                        pltpu.VMEM((nheads, tq, 1), jnp.float32),
                        pltpu.VMEM((nheads, tq, dh), jnp.float32)],
        compiler_params=_cparams(("parallel", "parallel", "arbitrary")))


@functools.lru_cache(maxsize=None)
def _make_outer_pair_update(batch, seqlen, ti, c_opm, c_z, chid):
    """Fused outer-product-mean pair update + pair transition, z aliased in-place:
       z1 = z + sum_{c,d} a[i,c] b[j,d] Wo[(c,d)] + bo
       z  = z1 + W2 relu(W1 LN(z1) + b1) + b2
    The [L, L, c_opm^2] intermediate never exists; a/b come precomputed."""
    def kern(abi_ref, abf_ref, z_ref, wop_ref, bop_ref,
             g_ref, b_ref, w1_ref, b1_ref, w2_ref, b2_ref, o_ref):
        a = abi_ref[0][:, 0:c_opm]                              # [ti, c_opm] f32
        bvec = _bf16(abf_ref[0][:, c_opm:2 * c_opm])            # [L,  c_opm]
        wop = wop_ref[...]                                      # [c_opm^2, c_z] bf16
        acc = jnp.zeros((ti, seqlen, c_z), jnp.float32)
        # TODO(synk): a single a @ T matmul (T = [c_opm, L*c_z]) would push these
        # c_opm broadcast-FMAs onto the MXU but needs a minor-dim merge relayout.
        for cidx in range(c_opm):                               # unrolled, c_opm=4
            t_c = jnp.dot(bvec, wop[cidx * c_opm:(cidx + 1) * c_opm, :],
                          preferred_element_type=jnp.float32)   # [L, c_z]
            a_c = a[:, cidx:cidx + 1][:, :, None]               # [ti, 1, 1]
            acc = acc + a_c * t_c[None, :, :]
        z_new = z_ref[0].astype(jnp.float32) + acc + bop_ref[...]
        # fused pair transition: z += W2 relu(W1 LN(z) + b1) + b2
        z_ln = _ln(z_new, g_ref[...], b_ref[...]).reshape(ti * seqlen, c_z)
        hid = jnp.maximum(jnp.dot(_bf16(z_ln), w1_ref[...],
                                  preferred_element_type=jnp.float32)
                          + b1_ref[...], 0.0)
        y = jnp.dot(_bf16(hid), w2_ref[...],
                    preferred_element_type=jnp.float32) + b2_ref[...]
        o_ref[0] = (z_new + y.reshape(ti, seqlen, c_z)).astype(o_ref.dtype)

    return pl.pallas_call(
        kern,
        grid=(batch, seqlen // ti),
        in_specs=[
            pl.BlockSpec((1, ti, 2 * c_opm), lambda b, i: (b, i, 0)),
            pl.BlockSpec((1, seqlen, 2 * c_opm), lambda b, i: (b, 0, 0)),
            pl.BlockSpec((1, ti, seqlen, c_z), lambda b, i: (b, i, 0, 0)),
            pl.BlockSpec((c_opm * c_opm, c_z), lambda b, i: (0, 0)),
            pl.BlockSpec((1, c_z), lambda b, i: (0, 0)),
            pl.BlockSpec((1, c_z), lambda b, i: (0, 0)),
            pl.BlockSpec((1, c_z), lambda b, i: (0, 0)),
            pl.BlockSpec((c_z, chid), lambda b, i: (0, 0)),
            pl.BlockSpec((1, chid), lambda b, i: (0, 0)),
            pl.BlockSpec((chid, c_z), lambda b, i: (0, 0)),
            pl.BlockSpec((1, c_z), lambda b, i: (0, 0)),
        ],
        out_specs=pl.BlockSpec((1, ti, seqlen, c_z), lambda b, i: (b, i, 0, 0)),
        out_shape=jax.ShapeDtypeStruct((batch, seqlen, seqlen, c_z), jnp.bfloat16),
        input_output_aliases={2: 0},
        compiler_params=_cparams(("parallel", "parallel")))


@functools.lru_cache(maxsize=None)
def _make_linear(rows, cin, cout, tile):
    def kern(x_ref, w_ref, b_ref, o_ref):
        acc = jnp.dot(_bf16(x_ref[...]), w_ref[...],
                      preferred_element_type=jnp.float32)
        o_ref[...] = (acc + b_ref[...]).astype(o_ref.dtype)

    return pl.pallas_call(
        kern,
        grid=(rows // tile,),
        in_specs=[pl.BlockSpec((tile, cin), lambda i: (i, 0)),
                  pl.BlockSpec((cin, cout), lambda i: (0, 0)),
                  pl.BlockSpec((1, cout), lambda i: (0, 0))],
        out_specs=pl.BlockSpec((tile, cout), lambda i: (i, 0)),
        out_shape=jax.ShapeDtypeStruct((rows, cout), jnp.float32),
        compiler_params=_cparams(("parallel",)))


@functools.lru_cache(maxsize=None)
def _make_sm_head(rows, c, cout, tile):
    """Fused LN + position head of the simplified structure module."""
    def kern(x_ref, g_ref, b_ref, w_ref, bb_ref, ln_ref, pos_ref):
        x_ln = _ln(x_ref[...].astype(jnp.float32), g_ref[...], b_ref[...])
        pos = (jnp.dot(_bf16(x_ln), w_ref[...],
                       preferred_element_type=jnp.float32)
               + bb_ref[...]) * TRANS_SCALE
        ln_ref[...] = x_ln.astype(ln_ref.dtype)
        pos_ref[...] = pos.astype(pos_ref.dtype)

    return pl.pallas_call(
        kern,
        grid=(rows // tile,),
        in_specs=[pl.BlockSpec((tile, c), lambda i: (i, 0)),
                  pl.BlockSpec((1, c), lambda i: (0, 0)),
                  pl.BlockSpec((1, c), lambda i: (0, 0)),
                  pl.BlockSpec((c, cout), lambda i: (0, 0)),
                  pl.BlockSpec((1, cout), lambda i: (0, 0))],
        out_specs=(pl.BlockSpec((tile, c), lambda i: (i, 0)),
                   pl.BlockSpec((tile, cout), lambda i: (i, 0))),
        out_shape=(jax.ShapeDtypeStruct((rows, c), jnp.float32),
                   jax.ShapeDtypeStruct((rows, cout), jnp.float32)),
        compiler_params=_cparams(("parallel",)))


@functools.lru_cache(maxsize=None)
def _make_distogram(batch, seqlen, ti, num_bins):
    # Recycling distogram boundaries (squared distances).
    boundaries_sq = tuple(
        float(b) for b in (np.linspace(3.375, 21.375, num_bins - 1) ** 2))

    def kern(cbi_ref, cba_ref, o_ref):
        ci = cbi_ref[0].astype(jnp.float32)                # [ti, 8] (xyz padded)
        ca = cba_ref[0].astype(jnp.float32)                # [L,  8]
        sqi = jnp.sum(ci * ci, axis=-1, keepdims=True)
        sqa = jnp.sum(ca * ca, axis=-1, keepdims=True)
        d2 = (sqi + jnp.transpose(sqa)
              - 2.0 * jax.lax.dot_general(ci, ca, (((1,), (1,)), ((), ())),
                                          preferred_element_type=jnp.float32))
        bins = jnp.zeros((ti, seqlen), jnp.int32)
        for bval in boundaries_sq:                         # unrolled VPU compares
            bins = bins + (d2 > bval).astype(jnp.int32)
        o_ref[0] = bins

    return pl.pallas_call(
        kern,
        grid=(batch, seqlen // ti),
        in_specs=[pl.BlockSpec((1, ti, 8), lambda b, i: (b, i, 0)),
                  pl.BlockSpec((1, seqlen, 8), lambda b, i: (b, 0, 0))],
        out_specs=pl.BlockSpec((1, ti, seqlen), lambda b, i: (b, i, 0)),
        out_shape=jax.ShapeDtypeStruct((batch, seqlen, seqlen), jnp.int32),
        compiler_params=_cparams(("parallel", "parallel")))


# ----------------------------- kernel wrappers --------------------------------
def fused_seq_prologue(base, x, gamma, beta):
    B, L, c = base.shape
    rows = B * L
    tile = _row_tile(rows, c)
    out = _make_seq_prologue(rows, c, tile)(
        base.reshape(rows, c), x.reshape(rows, c), gamma, beta)
    return out.reshape(B, L, c)


def fused_pair_prologue(z0, rz, gamma, beta, bins4, table, relpos):
    B, L, _, c = z0.shape
    ti = _pair_tile(L, c)
    fn = _make_pair_prologue(B, L, ti, c, int(table.shape[0]),
                             bool(relpos.shape[0] != 1))
    return fn(z0, rz, gamma, beta, bins4, table, relpos)


def attn_seq_sublayer(s, z, mvec, p):
    B, L, c_s = s.shape
    c_z = z.shape[-1]
    t = _attn_tile(L)
    chid = int(p['st_w1'].shape[1])
    fn = _make_attn_sublayer(B, L, c_s, c_z, NUM_HEADS_SEQ, t, t, C_OPM, chid)
    return fn(s, s, z, mvec, mvec,
              p['ln_s_g'], p['ln_s_b'], p['wq'], p['bq'], p['wkv'], p['bkv'],
              p['ln_zb_g'], p['ln_zb_b'], p['wpb'], p['bpb'], p['wo'], p['bo'],
              p['ln_st_g'], p['ln_st_b'], p['st_w1'], p['st_b1'],
              p['st_w2'], p['st_b2'],
              p['ln_op_g'], p['ln_op_b'], p['op_wab'], p['op_bab'])


def outer_pair_update(ab, z, p):
    B, L, _ = ab.shape
    c_z = z.shape[-1]
    ti = _pair_tile(L, c_z)
    chid = int(p['zt_w1'].shape[1])
    fn = _make_outer_pair_update(B, L, ti, C_OPM, c_z, chid)
    return fn(ab, ab, z, p['op_wo'], p['op_bo'],
              p['ln_zt_g'], p['ln_zt_b'],
              p['zt_w1'], p['zt_b1'], p['zt_w2'], p['zt_b2'])


def p_linear(x, w, b):
    shp = x.shape
    cin, cout = int(w.shape[0]), int(w.shape[1])
    rows = int(np.prod(shp[:-1]))
    tile = _row_tile(rows, max(cin, cout))
    out = _make_linear(rows, cin, cout, tile)(x.reshape(rows, cin), w, b)
    return out.reshape(*shp[:-1], cout)


# ----------------------------- parameter init --------------------------------
def init_params(key):
    keys = iter(jax.random.split(key, 512))

    def dense(cin, cout):
        return (jax.random.normal(next(keys), (cin, cout), jnp.float32)
                * 0.02).astype(jnp.bfloat16)

    def bias(c):
        return jnp.zeros((1, c), jnp.float32)

    def ln(c):
        return jnp.ones((1, c), jnp.float32), jnp.zeros((1, c), jnp.float32)

    params = {}
    params['recycle_s_g'], params['recycle_s_b'] = ln(C_S)
    params['recycle_z_g'], params['recycle_z_b'] = ln(C_Z)
    disto_w = jax.random.normal(next(keys), (NUM_RECYCLE_BINS, C_Z), jnp.float32) * 0.02
    params['recycle_disto_w'] = disto_w.at[0].set(0.0)   # torch.nn.init.zeros_(weight[0])
    params['relpos_w'] = jax.random.normal(
        next(keys), (2 * NUM_REL_POS + 2, C_Z), jnp.float32) * 0.02
    blocks = []
    for _ in range(NUM_EVOFORMER_BLOCKS):
        p = {}
        p['ln_s_g'], p['ln_s_b'] = ln(C_S)
        p['wq'], p['bq'] = dense(C_S, C_S), bias(C_S)
        p['wkv'], p['bkv'] = dense(C_S, 2 * C_S), bias(2 * C_S)      # fused k|v
        p['wo'], p['bo'] = dense(C_S, C_S), bias(C_S)
        p['ln_zb_g'], p['ln_zb_b'] = ln(C_Z)
        p['wpb'], p['bpb'] = dense(C_Z, NUM_HEADS_SEQ), bias(NUM_HEADS_SEQ)
        p['ln_st_g'], p['ln_st_b'] = ln(C_S)
        p['st_w1'], p['st_b1'] = dense(C_S, TRANS_FACTOR * C_S), bias(TRANS_FACTOR * C_S)
        p['st_w2'], p['st_b2'] = dense(TRANS_FACTOR * C_S, C_S), bias(C_S)
        p['ln_op_g'], p['ln_op_b'] = ln(C_S)
        p['op_wab'], p['op_bab'] = dense(C_S, 2 * C_OPM), bias(2 * C_OPM)   # fused a|b
        p['op_wo'], p['op_bo'] = dense(C_OPM * C_OPM, C_Z), bias(C_Z)
        p['ln_zt_g'], p['ln_zt_b'] = ln(C_Z)
        p['zt_w1'], p['zt_b1'] = dense(C_Z, TRANS_FACTOR * C_Z), bias(TRANS_FACTOR * C_Z)
        p['zt_w2'], p['zt_b2'] = dense(TRANS_FACTOR * C_Z, C_Z), bias(C_Z)
        blocks.append(p)
    params['blocks'] = blocks
    params['t2s_w'], params['t2s_b'] = dense(C_S, SM_C_S), bias(SM_C_S)
    params['t2z_w'], params['t2z_b'] = dense(C_Z, SM_C_Z), bias(SM_C_Z)
    sm = {}
    sm['ln_g'], sm['ln_b'] = ln(SM_C_S)
    sm['w_pos'], sm['b_pos'] = dense(SM_C_S, 9), bias(9)  # 3 atoms (N, CA, C) * xyz
    params['sm'] = sm
    return params


# ----------------------------- model pieces --------------------------------
def relpos_embedding(params, residue_index, seq_mask, L):
    # TODO(synk): exact RelativePositionEmbeddingSS not provided; ESMFold
    # RelativePosition semantics (clamp, +bins+1, masked -> index 0).
    if residue_index is None:
        ri = jnp.arange(L, dtype=jnp.int32)[None]
    else:
        ri = residue_index.astype(jnp.int32)
    diff = ri[:, None, :] - ri[:, :, None]
    diff = jnp.clip(diff, -NUM_REL_POS, NUM_REL_POS) + NUM_REL_POS + 1
    if seq_mask is not None:
        pm = (seq_mask[:, None, :] * seq_mask[:, :, None]).astype(bool)
        diff = jnp.where(pm, diff, 0)
    return jnp.take(params['relpos_w'], diff, axis=0).astype(jnp.float32)


def evoformer_block(p, s, z, mvec):
    # TODO(synk): EvoformerBlockSS definition not provided; simplified block =
    # pair-biased sequence self-attention + transitions + outer-product pair
    # update (no triangle attention / multiplicative updates, dropout=0).
    s, ab = attn_seq_sublayer(s, z, mvec, p)
    z = outer_pair_update(ab, z, p)
    return s, z


def structure_module(sm_params, s_sm, z_sm, aatype, seq_mask):
    # TODO(synk): full IPA-based StructureModule not provided; simplified
    # fused LN + coordinate head (z_sm / aatype accepted but unused here).
    B, L, c = s_sm.shape
    rows = B * L
    tile = _row_tile(rows, c)
    s_ln2, pos2 = _make_sm_head(rows, c, 9, tile)(
        s_sm.reshape(rows, c), sm_params['ln_g'], sm_params['ln_b'],
        sm_params['w_pos'], sm_params['b_pos'])
    s_ln = s_ln2.reshape(B, L, c)
    positions = pos2.reshape(B, L, 3, 3)[None]   # [num_sm_blocks=1, B, L, atoms, 3]
    return {'positions': positions, 'single': s_ln, 'z_sm': z_sm}


def compute_distogram(positions, num_bins):
    # positions: [B, L, 3 atoms (N, CA, C), 3 xyz]
    N, CA, C = positions[..., 0, :], positions[..., 1, :], positions[..., 2, :]
    b = CA - N
    c = C - CA
    a = jnp.cross(b, c)
    CB = -0.58273431 * a + 0.56802827 * b - 0.54067466 * c + CA   # [B, L, 3]
    Bb, L, _ = CB.shape
    CB_pad = jnp.pad(CB, ((0, 0), (0, 0), (0, 5)))                 # pad xyz -> 8 lanes
    ti = _attn_tile(L)
    return _make_distogram(Bb, L, ti, num_bins)(CB_pad, CB_pad)


def folding_trunk_forward(params, seq_feats, pair_feats, aatype,
                          residue_index=None, mask=None, num_recycles=None):
    s_s_0 = seq_feats
    s_z_0 = pair_feats
    B, L, _ = s_s_0.shape
    if num_recycles is None:
        num_recycles = MAX_RECYCLES
    else:
        assert num_recycles >= 0
        num_recycles += 1

    # relpos embedding and the 1-D mask are constant across recycles/blocks.
    relpos = relpos_embedding(params, residue_index, mask, L)      # [1 or B, L, L, C_Z]
    if mask is None:
        mvec = jnp.ones((B, L, 1), jnp.float32)
    else:
        mvec = mask.astype(jnp.float32)[:, :, None]

    recycle_s = jnp.zeros_like(s_s_0)
    recycle_z = jnp.zeros(s_z_0.shape, jnp.bfloat16)
    recycle_bins = jnp.zeros(s_z_0.shape[:-1] + (1,), jnp.int32)

    s_s, s_z, structure = s_s_0, s_z_0, None
    # TODO(synk): torch detaches the recycled tensors; irrelevant for a pure forward.
    for _ in range(num_recycles):
        s_s = fused_seq_prologue(s_s_0, recycle_s,
                                 params['recycle_s_g'], params['recycle_s_b'])
        s_z = fused_pair_prologue(s_z_0, recycle_z,
                                  params['recycle_z_g'], params['recycle_z_b'],
                                  recycle_bins, params['recycle_disto_w'], relpos)

        for blk in params['blocks']:
            s_s, s_z = evoformer_block(blk, s_s, s_z, mvec)

        sm_s = p_linear(s_s, params['t2s_w'], params['t2s_b'])
        sm_z = p_linear(s_z, params['t2z_w'], params['t2z_b'])
        structure = structure_module(params['sm'], sm_s, sm_z, aatype, mask)

        recycle_s = s_s
        recycle_z = s_z
        positions = structure['positions'][-1]                 # [B, L, atoms, 3]
        recycle_bins = compute_distogram(positions[:, :, :3],
                                         NUM_RECYCLE_BINS)[..., None]

    structure['s_s'] = s_s
    structure['s_z'] = s_z.astype(jnp.float32)
    return structure


# ----------------------------- main --------------------------------
if __name__ == "__main__":
    B, L = 2, 8
    key = jax.random.PRNGKey(0)
    k_params, k_s, k_z, k_aa = jax.random.split(key, 4)

    params = init_params(k_params)
    seq_feats = jax.random.normal(k_s, (B, L, C_S), jnp.float32)
    pair_feats = jax.random.normal(k_z, (B, L, L, C_Z), jnp.float32)
    aatype = jax.random.randint(k_aa, (B, L), 0, 20, jnp.int32)

    fwd = jax.jit(folding_trunk_forward, static_argnames=("num_recycles",))
    out = fwd(params, seq_feats, pair_feats, aatype,
              residue_index=None, mask=None, num_recycles=None)

    jax.block_until_ready(out['s_s'])
    jax.block_until_ready(out['s_z'])
    jax.block_until_ready(out['positions'])

    assert out['s_s'].shape == (B, L, C_S)
    assert out['s_z'].shape == (B, L, L, C_Z)
    assert out['positions'].shape == (1, B, L, 3, 3)
    assert bool(jnp.all(jnp.isfinite(out['s_s'])))
    assert bool(jnp.all(jnp.isfinite(out['s_z'])))
    assert bool(jnp.all(jnp.isfinite(out['positions'])))
    print("KERNEL_OK")
</pallas_src>

<mosaic_0001>
module attributes {stable_mosaic.version = 11 : i64} {
  func.func @kern(%arg0: i32, %arg1: memref<16x32xf32, #tpu.memory_space<vmem>>, %arg2: memref<16x32xf32, #tpu.memory_space<vmem>>, %arg3: memref<1x32xf32, #tpu.memory_space<vmem>>, %arg4: memref<1x32xf32, #tpu.memory_space<vmem>>, %arg5: memref<16x32xf32, #tpu.memory_space<vmem>>) attributes {dimension_semantics = [#tpu.dimension_semantics<parallel>], iteration_bounds = array<i64: 1>, scalar_prefetch = 0 : i64, scratch_operands = 0 : i64, tpu.core_type = #tpu.core_type<tc>, window_params = [{transform_indices = @transform_0, window_bounds = array<i64: 16, 32>}, {transform_indices = @transform_1, window_bounds = array<i64: 16, 32>}, {pipeline_mode = #tpu.pipeline_mode<synchronous>, transform_indices = @transform_2, window_bounds = array<i64: 1, 32>}, {pipeline_mode = #tpu.pipeline_mode<synchronous>, transform_indices = @transform_3, window_bounds = array<i64: 1, 32>}, {transform_indices = @transform_4, window_bounds = array<i64: 16, 32>}]} {
    %c0 = arith.constant 0 : index
    %c0_0 = arith.constant 0 : index
    %0 = vector.load %arg2[%c0, %c0_0] : memref<16x32xf32, #tpu.memory_space<vmem>>, vector<16x32xf32>
    %c0_1 = arith.constant 0 : index
    %c0_2 = arith.constant 0 : index
    %1 = vector.load %arg1[%c0_1, %c0_2] : memref<16x32xf32, #tpu.memory_space<vmem>>, vector<16x32xf32>
    %c0_3 = arith.constant 0 : index
    %c0_4 = arith.constant 0 : index
    %2 = vector.load %arg3[%c0_3, %c0_4] : memref<1x32xf32, #tpu.memory_space<vmem>>, vector<1x32xf32>
    %c0_5 = arith.constant 0 : index
    %c0_6 = arith.constant 0 : index
    %3 = vector.load %arg4[%c0_5, %c0_6] : memref<1x32xf32, #tpu.memory_space<vmem>>, vector<1x32xf32>
    %cst = arith.constant dense<0.000000e+00> : vector<16xf32>
    %4 = vector.multi_reduction <add>, %0, %cst [1] : vector<16x32xf32> to vector<16xf32>
    %5 = vector.shape_cast %4 : vector<16xf32> to vector<16x1xf32>
    %cst_7 = arith.constant 3.200000e+01 : f32
    %6 = vector.broadcast %cst_7 : f32 to vector<16x1xf32>
    %7 = arith.divf %5, %6 : vector<16x1xf32>
    %8 = vector.broadcast %7 : vector<16x1xf32> to vector<16x32xf32>
    %9 = arith.subf %0, %8 : vector<16x32xf32>
    %10 = vector.broadcast %7 : vector<16x1xf32> to vector<16x32xf32>
    %11 = arith.subf %0, %10 : vector<16x32xf32>
    %12 = arith.mulf %9, %11 : vector<16x32xf32>
    %cst_8 = arith.constant dense<0.000000e+00> : vector<16xf32>
    %13 = vector.multi_reduction <add>, %12, %cst_8 [1] : vector<16x32xf32> to vector<16xf32>
    %14 = vector.shape_cast %13 : vector<16xf32> to vector<16x1xf32>
    %cst_9 = arith.constant 3.200000e+01 : f32
    %15 = vector.broadcast %cst_9 : f32 to vector<16x1xf32>
    %16 = arith.divf %14, %15 : vector<16x1xf32>
    %17 = vector.broadcast %7 : vector<16x1xf32> to vector<16x32xf32>
    %18 = arith.subf %0, %17 : vector<16x32xf32>
    %cst_10 = arith.constant 9.99999974E-6 : f32
    %19 = vector.broadcast %cst_10 : f32 to vector<16x1xf32>
    %20 = arith.addf %16, %19 : vector<16x1xf32>
    %21 = math.rsqrt %20 : vector<16x1xf32>
    %22 = vector.broadcast %21 : vector<16x1xf32> to vector<16x32xf32>
    %23 = arith.mulf %18, %22 : vector<16x32xf32>
    %24 = vector.broadcast %2 : vector<1x32xf32> to vector<16x32xf32>
    %25 = arith.mulf %23, %24 : vector<16x32xf32>
    %26 = vector.broadcast %3 : vector<1x32xf32> to vector<16x32xf32>
    %27 = arith.addf %25, %26 : vector<16x32xf32>
    %28 = arith.addf %1, %27 : vector<16x32xf32>
    %c0_11 = arith.constant 0 : index
    %c0_12 = arith.constant 0 : index
    %29 = vector.load %arg5[%c0_11, %c0_12] : memref<16x32xf32, #tpu.memory_space<vmem>>, vector<16x32xf32>
    tpu.vector_store %arg5[%c0_11, %c0_12], %28 {strides = array<i32>} : memref<16x32xf32, #tpu.memory_space<vmem>>, vector<16x32xf32>,
    return
  }
  func.func @transform_0(%arg0: i32) -> (i32, i32) {
    %c0_i32 = arith.constant 0 : i32
    %c0_i32_0 = arith.constant 0 : i32
    return %arg0, %c0_i32 : i32, i32
  }
  func.func @transform_1(%arg0: i32) -> (i32, i32) {
    %c0_i32 = arith.constant 0 : i32
    %c0_i32_0 = arith.constant 0 : i32
    return %arg0, %c0_i32 : i32, i32
  }
  func.func @transform_2(%arg0: i32) -> (i32, i32) {
    %c0_i32 = arith.constant 0 : i32
    %c0_i32_0 = arith.constant 0 : i32
    %c0_i32_1 = arith.constant 0 : i32
    return %c0_i32, %c0_i32_0 : i32, i32
  }
  func.func @transform_3(%arg0: i32) -> (i32, i32) {
    %c0_i32 = arith.constant 0 : i32
    %c0_i32_0 = arith.constant 0 : i32
    %c0_i32_1 = arith.constant 0 : i32
    return %c0_i32, %c0_i32_0 : i32, i32
  }
  func.func @transform_4(%arg0: i32) -> (i32, i32) {
    %c0_i32 = arith.constant 0 : i32
    %c0_i32_0 = arith.constant 0 : i32
    return %arg0, %c0_i32 : i32, i32
  }
}

module attributes {stable_mosaic.version = 11 : i64} {
  func.func @kern(%arg0: i32, %arg1: i32, %arg2: memref<1x8x8x16xf32, #tpu.memory_space<vmem>>, %arg3: memref<1x8x8x16xbf16, #tpu.memory_space<vmem>>, %arg4: memref<1x16xf32, #tpu.memory_space<vmem>>, %arg5: memref<1x16xf32, #tpu.memory_space<vmem>>, %arg6: memref<1x8x8x1xi32, #tpu.memory_space<vmem>>, %arg7: memref<15x16xf32, #tpu.memory_space<vmem>>, %arg8: memref<1x8x8x16xf32, #tpu.memory_space<vmem>>, %arg9: memref<1x8x8x16xbf16, #tpu.memory_space<vmem>>) attributes {dimension_semantics = [#tpu.dimension_semantics<parallel>, #tpu.dimension_semantics<parallel>], iteration_bounds = array<i64: 2, 1>, scalar_prefetch = 0 : i64, scratch_operands = 0 : i64, tpu.core_type = #tpu.core_type<tc>, window_params = [{transform_indices = @transform_0, window_bounds = array<i64: 1, 8, 8, 16>}, {transform_indices = @transform_1, window_bounds = array<i64: 1, 8, 8, 16>}, {pipeline_mode = #tpu.pipeline_mode<synchronous>, transform_indices = @transform_2, window_bounds = array<i64: 1, 16>}, {pipeline_mode = #tpu.pipeline_mode<synchronous>, transform_indices = @transform_3, window_bounds = array<i64: 1, 16>}, {transform_indices = @transform_4, window_bounds = array<i64: 1, 8, 8, 1>}, {pipeline_mode = #tpu.pipeline_mode<synchronous>, transform_indices = @transform_5, window_bounds = array<i64: 15, 16>}, {transform_indices = @transform_6, window_bounds = array<i64: 1, 8, 8, 16>}, {transform_indices = @transform_7, window_bounds = array<i64: 1, 8, 8, 16>}]} {
    %c0 = arith.constant 0 : index
    %c0_0 = arith.constant 0 : index
    %c0_1 = arith.constant 0 : index
    %c0_2 = arith.constant 0 : index
    %0 = vector.load %arg3[%c0, %c0_0, %c0_1, %c0_2] : memref<1x8x8x16xbf16, #tpu.memory_space<vmem>>, vector<1x8x8x16xbf16>
    %1 = vector.shape_cast %0 : vector<1x8x8x16xbf16> to vector<8x8x16xbf16>
    %2 = arith.extf %1 : vector<8x8x16xbf16> to vector<8x8x16xf32>
    %c0_3 = arith.constant 0 : index
    %c0_4 = arith.constant 0 : index
    %3 = vector.load %arg4[%c0_3, %c0_4] : memref<1x16xf32, #tpu.memory_space<vmem>>, vector<1x16xf32>
    %c0_5 = arith.constant 0 : index
    %c0_6 = arith.constant 0 : index
    %4 = vector.load %arg5[%c0_5, %c0_6] : memref<1x16xf32, #tpu.memory_space<vmem>>, vector<1x16xf32>
    %cst = arith.constant dense<0.000000e+00> : vector<8x8xf32>
    %5 = vector.multi_reduction <add>, %2, %cst [2] : vector<8x8x16xf32> to vector<8x8xf32>
    %6 = vector.shape_cast %5 : vector<8x8xf32> to vector<8x8x1xf32>
    %cst_7 = arith.constant 1.600000e+01 : f32
    %7 = vector.broadcast %cst_7 : f32 to vector<8x8x1xf32>
    %8 = arith.divf %6, %7 : vector<8x8x1xf32>
    %9 = vector.broadcast %8 : vector<8x8x1xf32> to vector<8x8x16xf32>
    %10 = arith.subf %2, %9 : vector<8x8x16xf32>
    %11 = vector.broadcast %8 : vector<8x8x1xf32> to vector<8x8x16xf32>
    %12 = arith.subf %2, %11 : vector<8x8x16xf32>
    %13 = arith.mulf %10, %12 : vector<8x8x16xf32>
    %cst_8 = arith.constant dense<0.000000e+00> : vector<8x8xf32>
    %14 = vector.multi_reduction <add>, %13, %cst_8 [2] : vector<8x8x16xf32> to vector<8x8xf32>
    %15 = vector.shape_cast %14 : vector<8x8xf32> to vector<8x8x1xf32>
    %cst_9 = arith.constant 1.600000e+01 : f32
    %16 = vector.broadcast %cst_9 : f32 to vector<8x8x1xf32>
    %17 = arith.divf %15, %16 : vector<8x8x1xf32>
    %18 = vector.broadcast %8 : vector<8x8x1xf32> to vector<8x8x16xf32>
    %19 = arith.subf %2, %18 : vector<8x8x16xf32>
    %cst_10 = arith.constant 9.99999974E-6 : f32
    %20 = vector.broadcast %cst_10 : f32 to vector<8x8x1xf32>
    %21 = arith.addf %17, %20 : vector<8x8x1xf32>
    %22 = math.rsqrt %21 : vector<8x8x1xf32>
    %23 = vector.broadcast %22 : vector<8x8x1xf32> to vector<8x8x16xf32>
    %24 = arith.mulf %19, %23 : vector<8x8x16xf32>
    %25 = vector.shape_cast %3 : vector<1x16xf32> to vector<1x1x16xf32>
    %26 = vector.broadcast %25 : vector<1x1x16xf32> to vector<8x8x16xf32>
    %27 = arith.mulf %24, %26 : vector<8x8x16xf32>
    %28 = vector.shape_cast %4 : vector<1x16xf32> to vector<1x1x16xf32>
    %29 = vector.broadcast %28 : vector<1x1x16xf32> to vector<8x8x16xf32>
    %30 = arith.addf %27, %29 : vector<8x8x16xf32>
    %c0_11 = arith.constant 0 : index
    %c0_12 = arith.constant 0 : index
    %c0_13 = arith.constant 0 : index
    %c0_14 = arith.constant 0 : index
    %31 = vector.load %arg6[%c0_11, %c0_12, %c0_13, %c0_14] : memref<1x8x8x1xi32, #tpu.memory_space<vmem>>, vector<1x8x8x1xi32>
    %32 = vector.shape_cast %31 : vector<1x8x8x1xi32> to vector<8x8x1xi32>
    %33 = tpu.iota {dimensions = array<i32: 2>} : vector<1x1x15xi32>
    %34 = vector.broadcast %32 : vector<8x8x1xi32> to vector<8x8x15xi32>
    %35 = vector.broadcast %33 : vector<1x1x15xi32> to vector<8x8x15xi32>
    %36 = arith.cmpi eq, %34, %35 : vector<8x8x15xi32>
    %37 = arith.extui %36 : vector<8x8x15xi1> to vector<8x8x15xi32>
    %38 = arith.sitofp %37 : vector<8x8x15xi32> to vector<8x8x15xf32>
    %39 = vector.shape_cast %38 : vector<8x8x15xf32> to vector<64x15xf32>
    %c0_15 = arith.constant 0 : index
    %c0_16 = arith.constant 0 : index
    %40 = vector.load %arg7[%c0_15, %c0_16] : memref<15x16xf32, #tpu.memory_space<vmem>>, vector<15x16xf32>
    %cst_17 = arith.constant dense<0.000000e+00> : vector<64x16xf32>
    %41 = tpu.matmul %39, %40, %cst_17 {dimension_numbers = #tpu.dot_dimension_numbers<[1], [0], [0], [1], [0, 0, 1, 1], [], []>} : vector<64x15xf32>, vector<15x16xf32>, vector<64x16xf32> -> vector<64x16xf32>
    %42 = vector.shape_cast %41 : vector<64x16xf32> to vector<8x8x16xf32>
    %c0_18 = arith.constant 0 : index
    %c0_19 = arith.constant 0 : index
    %c0_20 = arith.constant 0 : index
    %c0_21 = arith.constant 0 : index
    %43 = vector.load %arg2[%c0_18, %c0_19, %c0_20, %c0_21] : memref<1x8x8x16xf32, #tpu.memory_space<vmem>>, vector<1x8x8x16xf32>
    %44 = vector.shape_cast %43 : vector<1x8x8x16xf32> to vector<8x8x16xf32>
    %45 = arith.addf %44, %30 : vector<8x8x16xf32>
    %46 = arith.addf %45, %42 : vector<8x8x16xf32>
    %c0_22 = arith.constant 0 : index
    %c0_23 = arith.constant 0 : index
    %c0_24 = arith.constant 0 : index
    %c0_25 = arith.constant 0 : index
    %47 = vector.load %arg8[%c0_22, %c0_23, %c0_24, %c0_25] : memref<1x8x8x16xf32, #tpu.memory_space<vmem>>, vector<1x8x8x16xf32>
    %48 = vector.shape_cast %47 : vector<1x8x8x16xf32> to vector<8x8x16xf32>
    %49 = arith.addf %46, %48 : vector<8x8x16xf32>
    %50 = arith.truncf %49 : vector<8x8x16xf32> to vector<8x8x16xbf16>
    %c0_26 = arith.constant 0 : index
    %c0_27 = arith.constant 0 : index
    %c0_28 = arith.constant 0 : index
    %c0_29 = arith.constant 0 : index
    %51 = vector.load %arg9[%c0_26, %c0_27, %c0_28, %c0_29] : memref<1x8x8x16xbf16, #tpu.memory_space<vmem>>, vector<1x8x8x16xbf16>
    %52 = vector.shape_cast %51 : vector<1x8x8x16xbf16> to vector<8x8x16xbf16>
    %53 = vector.shape_cast %50 : vector<8x8x16xbf16> to vector<1x8x8x16xbf16>
    tpu.vector_store %arg9[%c0_26, %c0_27, %c0_28, %c0_29], %53 {strides = array<i32>} : memref<1x8x8x16xbf16, #tpu.memory_space<vmem>>, vector<1x8x8x16xbf16>,
    return
  }
  func.func @transform_0(%arg0: i32, %arg1: i32) -> (i32, i32, i32, i32) {
    %c0_i32 = arith.constant 0 : i32
    %c0_i32_0 = arith.constant 0 : i32
    %c0_i32_1 = arith.constant 0 : i32
    return %arg0, %arg1, %c0_i32, %c0_i32_0 : i32, i32, i32, i32
  }
  func.func @transform_1(%arg0: i32, %arg1: i32) -> (i32, i32, i32, i32) {
    %c0_i32 = arith.constant 0 : i32
    %c0_i32_0 = arith.constant 0 : i32
    %c0_i32_1 = arith.constant 0 : i32
    return %arg0, %arg1, %c0_i32, %c0_i32_0 : i32, i32, i32, i32
  }
  func.func @transform_2(%arg0: i32, %arg1: i32) -> (i32, i32) {
    %c0_i32 = arith.constant 0 : i32
    %c0_i32_0 = arith.constant 0 : i32
    %c0_i32_1 = arith.constant 0 : i32
    return %c0_i32, %c0_i32_0 : i32, i32
  }
  func.func @transform_3(%arg0: i32, %arg1: i32) -> (i32, i32) {
    %c0_i32 = arith.constant 0 : i32
    %c0_i32_0 = arith.constant 0 : i32
    %c0_i32_1 = arith.constant 0 : i32
    return %c0_i32, %c0_i32_0 : i32, i32
  }
  func.func @transform_4(%arg0: i32, %arg1: i32) -> (i32, i32, i32, i32) {
    %c0_i32 = arith.constant 0 : i32
    %c0_i32_0 = arith.constant 0 : i32
    %c0_i32_1 = arith.constant 0 : i32
    return %arg0, %arg1, %c0_i32, %c0_i32_0 : i32, i32, i32, i32
  }
  func.func @transform_5(%arg0: i32, %arg1: i32) -> (i32, i32) {
    %c0_i32 = arith.constant 0 : i32
    %c0_i32_0 = arith.constant 0 : i32
    %c0_i32_1 = arith.constant 0 : i32
    return %c0_i32, %c0_i32_0 : i32, i32
  }
  func.func @transform_6(%arg0: i32, %arg1: i32) -> (i32, i32, i32, i32) {
    %c0_i32 = arith.constant 0 : i32
    %c0_i32_0 = arith.constant 0 : i32
    %c0_i32_1 = arith.constant 0 : i32
    %c0_i32_2 = arith.constant 0 : i32
    return %c0_i32, %arg1, %c0_i32_0, %c0_i32_1 : i32, i32, i32, i32
  }
  func.func @transform_7(%arg0: i32, %arg1: i32) -> (i32, i32, i32, i32) {
    %c0_i32 = arith.constant 0 : i32
    %c0_i32_0 = arith.constant 0 : i32
    %c0_i32_1 = arith.constant 0 : i32
    return %arg0, %arg1, %c0_i32, %c0_i32_0 : i32, i32, i32, i32
  }
}

module attributes {stable_mosaic.version = 11 : i64} {
  func.func @kern(%arg0: i32, %arg1: i32, %arg2: memref<1x8x8xf32, #tpu.memory_space<vmem>>, %arg3: memref<1x8x8xf32, #tpu.memory_space<vmem>>, %arg4: memref<1x8x8x16xbf16, #tpu.memory_space<vmem>>, %arg5: memref<16x16xbf16, #tpu.memory_space<vmem>>, %arg6: memref<1x16xf32, #tpu.memory_space<vmem>>, %arg7: memref<1x16xf32, #tpu.memory_space<vmem>>, %arg8: memref<1x16xf32, #tpu.memory_space<vmem>>, %arg9: memref<16x64xbf16, #tpu.memory_space<vmem>>, %arg10: memref<1x64xf32, #tpu.memory_space<vmem>>, %arg11: memref<64x16xbf16, #tpu.memory_space<vmem>>, %arg12: memref<1x16xf32, #tpu.memory_space<vmem>>, %arg13: memref<1x8x8x16xbf16, #tpu.memory_space<vmem>>) attributes {dimension_semantics = [#tpu.dimension_semantics<parallel>, #tpu.dimension_semantics<parallel>], iteration_bounds = array<i64: 2, 1>, scalar_prefetch = 0 : i64, scratch_operands = 0 : i64, tpu.core_type = #tpu.core_type<tc>, window_params = [{transform_indices = @transform_0, window_bounds = array<i64: 1, 8, 8>}, {transform_indices = @transform_1, window_bounds = array<i64: 1, 8, 8>}, {transform_indices = @transform_2, window_bounds = array<i64: 1, 8, 8, 16>}, {pipeline_mode = #tpu.pipeline_mode<synchronous>, transform_indices = @transform_3, window_bounds = array<i64: 16, 16>}, {pipeline_mode = #tpu.pipeline_mode<synchronous>, transform_indices = @transform_4, window_bounds = array<i64: 1, 16>}, {pipeline_mode = #tpu.pipeline_mode<synchronous>, transform_indices = @transform_5, window_bounds = array<i64: 1, 16>}, {pipeline_mode = #tpu.pipeline_mode<synchronous>, transform_indices = @transform_6, window_bounds = array<i64: 1, 16>}, {pipeline_mode = #tpu.pipeline_mode<synchronous>, transform_indices = @transform_7, window_bounds = array<i64: 16, 64>}, {pipeline_mode = #tpu.pipeline_mode<synchronous>, transform_indices = @transform_8, window_bounds = array<i64: 1, 64>}, {pipeline_mode = #tpu.pipeline_mode<synchronous>, transform_indices = @transform_9, window_bounds = array<i64: 64, 16>}, {pipeline_mode = #tpu.pipeline_mode<synchronous>, transform_indices = @transform_10, window_bounds = array<i64: 1, 16>}, {transform_indices = @transform_11, window_bounds = array<i64: 1, 8, 8, 16>}]} {
    %c0 = arith.constant 0 : index
    %c0_0 = arith.constant 0 : index
    %c0_1 = arith.constant 0 : index
    %0 = vector.load %arg2[%c0, %c0_0, %c0_1] : memref<1x8x8xf32, #tpu.memory_space<vmem>>, vector<1x8x8xf32>
    %1 = vector.shape_cast %0 : vector<1x8x8xf32> to vector<8x8xf32>
    %2 = vector.extract_strided_slice %1 {offsets = [0, 0], sizes = [8, 4], strides = [1, 1]} : vector<8x8xf32> to vector<8x4xf32>
    %c0_2 = arith.constant 0 : index
    %c0_3 = arith.constant 0 : index
    %c0_4 = arith.constant 0 : index
    %3 = vector.load %arg3[%c0_2, %c0_3, %c0_4] : memref<1x8x8xf32, #tpu.memory_space<vmem>>, vector<1x8x8xf32>
    %4 = vector.shape_cast %3 : vector<1x8x8xf32> to vector<8x8xf32>
    %5 = vector.extract_strided_slice %4 {offsets = [0, 4], sizes = [8, 4], strides = [1, 1]} : vector<8x8xf32> to vector<8x4xf32>
    %6 = arith.truncf %5 : vector<8x4xf32> to vector<8x4xbf16>
    %c0_5 = arith.constant 0 : index
    %c0_6 = arith.constant 0 : index
    %7 = vector.load %arg5[%c0_5, %c0_6] : memref<16x16xbf16, #tpu.memory_space<vmem>>, vector<16x16xbf16>
    %cst = arith.constant 0.000000e+00 : f32
    %8 = vector.broadcast %cst : f32 to vector<8x8x16xf32>
    %9 = vector.extract_strided_slice %7 {offsets = [0, 0], sizes = [4, 16], strides = [1, 1]} : vector<16x16xbf16> to vector<4x16xbf16>
    %cst_7 = arith.constant dense<0.000000e+00> : vector<8x16xf32>
    %10 = tpu.matmul %6, %9, %cst_7 {dimension_numbers = #tpu.dot_dimension_numbers<[1], [0], [0], [1], [0, 0, 1, 1], [], []>} : vector<8x4xbf16>, vector<4x16xbf16>, vector<8x16xf32> -> vector<8x16xf32>
    %11 = vector.extract_strided_slice %2 {offsets = [0, 0], sizes = [8, 1], strides = [1, 1]} : vector<8x4xf32> to vector<8x1xf32>
    %12 = vector.shape_cast %11 : vector<8x1xf32> to vector<8x1x1xf32>
    %13 = vector.shape_cast %10 : vector<8x16xf32> to vector<1x8x16xf32>
    %14 = vector.broadcast %12 : vector<8x1x1xf32> to vector<8x8x16xf32>
    %15 = vector.broadcast %13 : vector<1x8x16xf32> to vector<8x8x16xf32>
    %16 = arith.mulf %14, %15 : vector<8x8x16xf32>
    %17 = arith.addf %8, %16 : vector<8x8x16xf32>
    %18 = vector.extract_strided_slice %7 {offsets = [4, 0], sizes = [4, 16], strides = [1, 1]} : vector<16x16xbf16> to vector<4x16xbf16>
    %cst_8 = arith.constant dense<0.000000e+00> : vector<8x16xf32>
    %19 = tpu.matmul %6, %18, %cst_8 {dimension_numbers = #tpu.dot_dimension_numbers<[1], [0], [0], [1], [0, 0, 1, 1], [], []>} : vector<8x4xbf16>, vector<4x16xbf16>, vector<8x16xf32> -> vector<8x16xf32>
    %20 = vector.extract_strided_slice %2 {offsets = [0, 1], sizes = [8, 1], strides = [1, 1]} : vector<8x4xf32> to vector<8x1xf32>
    %21 = vector.shape_cast %20 : vector<8x1xf32> to vector<8x1x1xf32>
    %22 = vector.shape_cast %19 : vector<8x16xf32> to vector<1x8x16xf32>
    %23 = vector.broadcast %21 : vector<8x1x1xf32> to vector<8x8x16xf32>
    %24 = vector.broadcast %22 : vector<1x8x16xf32> to vector<8x8x16xf32>
    %25 = arith.mulf %23, %24 : vector<8x8x16xf32>
    %26 = arith.addf %17, %25 : vector<8x8x16xf32>
    %27 = vector.extract_strided_slice %7 {offsets = [8, 0], sizes = [4, 16], strides = [1, 1]} : vector<16x16xbf16> to vector<4x16xbf16>
    %cst_9 = arith.constant dense<0.000000e+00> : vector<8x16xf32>
    %28 = tpu.matmul %6, %27, %cst_9 {dimension_numbers = #tpu.dot_dimension_numbers<[1], [0], [0], [1], [0, 0, 1, 1], [], []>} : vector<8x4xbf16>, vector<4x16xbf16>, vector<8x16xf32> -> vector<8x16xf32>
    %29 = vector.extract_strided_slice %2 {offsets = [0, 2], sizes = [8, 1], strides = [1, 1]} : vector<8x4xf32> to vector<8x1xf32>
    %30 = vector.shape_cast %29 : vector<8x1xf32> to vector<8x1x1xf32>
    %31 = vector.shape_cast %28 : vector<8x16xf32> to vector<1x8x16xf32>
    %32 = vector.broadcast %30 : vector<8x1x1xf32> to vector<8x8x16xf32>
    %33 = vector.broadcast %31 : vector<1x8x16xf32> to vector<8x8x16xf32>
    %34 = arith.mulf %32, %33 : vector<8x8x16xf32>
    %35 = arith.addf %26, %34 : vector<8x8x16xf32>
    %36 = vector.extract_strided_slice %7 {offsets = [12, 0], sizes = [4, 16], strides = [1, 1]} : vector<16x16xbf16> to vector<4x16xbf16>
    %cst_10 = arith.constant dense<0.000000e+00> : vector<8x16xf32>
    %37 = tpu.matmul %6, %36, %cst_10 {dimension_numbers = #tpu.dot_dimension_numbers<[1], [0], [0], [1], [0, 0, 1, 1], [], []>} : vector<8x4xbf16>, vector<4x16xbf16>, vector<8x16xf32> -> vector<8x16xf32>
    %38 = vector.extract_strided_slice %2 {offsets = [0, 3], sizes = [8, 1], strides = [1, 1]} : vector<8x4xf32> to vector<8x1xf32>
    %39 = vector.shape_cast %38 : vector<8x1xf32> to vector<8x1x1xf32>
    %40 = vector.shape_cast %37 : vector<8x16xf32> to vector<1x8x16xf32>
    %41 = vector.broadcast %39 : vector<8x1x1xf32> to vector<8x8x16xf32>
    %42 = vector.broadcast %40 : vector<1x8x16xf32> to vector<8x8x16xf32>
    %43 = arith.mulf %41, %42 : vector<8x8x16xf32>
    %44 = arith.addf %35, %43 : vector<8x8x16xf32>
    %c0_11 = arith.constant 0 : index
    %c0_12 = arith.constant 0 : index
    %c0_13 = arith.constant 0 : index
    %c0_14 = arith.constant 0 : index
    %45 = vector.load %arg4[%c0_11, %c0_12, %c0_13, %c0_14] : memref<1x8x8x16xbf16, #tpu.memory_space<vmem>>, vector<1x8x8x16xbf16>
    %46 = vector.shape_cast %45 : vector<1x8x8x16xbf16> to vector<8x8x16xbf16>
    %47 = arith.extf %46 : vector<8x8x16xbf16> to vector<8x8x16xf32>
    %48 = arith.addf %47, %44 : vector<8x8x16xf32>
    %c0_15 = arith.constant 0 : index
    %c0_16 = arith.constant 0 : index
    %49 = vector.load %arg6[%c0_15, %c0_16] : memref<1x16xf32, #tpu.memory_space<vmem>>, vector<1x16xf32>
    %50 = vector.shape_cast %49 : vector<1x16xf32> to vector<1x1x16xf32>
    %51 = vector.broadcast %50 : vector<1x1x16xf32> to vector<8x8x16xf32>
    %52 = arith.addf %48, %51 : vector<8x8x16xf32>
    %c0_17 = arith.constant 0 : index
    %c0_18 = arith.constant 0 : index
    %53 = vector.load %arg7[%c0_17, %c0_18] : memref<1x16xf32, #tpu.memory_space<vmem>>, vector<1x16xf32>
    %c0_19 = arith.constant 0 : index
    %c0_20 = arith.constant 0 : index
    %54 = vector.load %arg8[%c0_19, %c0_20] : memref<1x16xf32, #tpu.memory_space<vmem>>, vector<1x16xf32>
    %cst_21 = arith.constant dense<0.000000e+00> : vector<8x8xf32>
    %55 = vector.multi_reduction <add>, %52, %cst_21 [2] : vector<8x8x16xf32> to vector<8x8xf32>
    %56 = vector.shape_cast %55 : vector<8x8xf32> to vector<8x8x1xf32>
    %cst_22 = arith.constant 1.600000e+01 : f32
    %57 = vector.broadcast %cst_22 : f32 to vector<8x8x1xf32>
    %58 = arith.divf %56, %57 : vector<8x8x1xf32>
    %59 = vector.broadcast %58 : vector<8x8x1xf32> to vector<8x8x16xf32>
    %60 = arith.subf %52, %59 : vector<8x8x16xf32>
    %61 = vector.broadcast %58 : vector<8x8x1xf32> to vector<8x8x16xf32>
    %62 = arith.subf %52, %61 : vector<8x8x16xf32>
    %63 = arith.mulf %60, %62 : vector<8x8x16xf32>
    %cst_23 = arith.constant dense<0.000000e+00> : vector<8x8xf32>
    %64 = vector.multi_reduction <add>, %63, %cst_23 [2] : vector<8x8x16xf32> to vector<8x8xf32>
    %65 = vector.shape_cast %64 : vector<8x8xf32> to vector<8x8x1xf32>
    %cst_24 = arith.constant 1.600000e+01 : f32
    %66 = vector.broadcast %cst_24 : f32 to vector<8x8x1xf32>
    %67 = arith.divf %65, %66 : vector<8x8x1xf32>
    %68 = vector.broadcast %58 : vector<8x8x1xf32> to vector<8x8x16xf32>
    %69 = arith.subf %52, %68 : vector<8x8x16xf32>
    %cst_25 = arith.constant 9.99999974E-6 : f32
    %70 = vector.broadcast %cst_25 : f32 to vector<8x8x1xf32>
    %71 = arith.addf %67, %70 : vector<8x8x1xf32>
    %72 = math.rsqrt %71 : vector<8x8x1xf32>
    %73 = vector.broadcast %72 : vector<8x8x1xf32> to vector<8x8x16xf32>
    %74 = arith.mulf %69, %73 : vector<8x8x16xf32>
    %75 = vector.shape_cast %53 : vector<1x16xf32> to vector<1x1x16xf32>
    %76 = vector.broadcast %75 : vector<1x1x16xf32> to vector<8x8x16xf32>
    %77 = arith.mulf %74, %76 : vector<8x8x16xf32>
    %78 = vector.shape_cast %54 : vector<1x16xf32> to vector<1x1x16xf32>
    %79 = vector.broadcast %78 : vector<1x1x16xf32> to vector<8x8x16xf32>
    %80 = arith.addf %77, %79 : vector<8x8x16xf32>
    %81 = vector.shape_cast %80 : vector<8x8x16xf32> to vector<64x16xf32>
    %82 = arith.truncf %81 : vector<64x16xf32> to vector<64x16xbf16>
    %c0_26 = arith.constant 0 : index
    %c0_27 = arith.constant 0 : index
    %83 = vector.load %arg9[%c0_26, %c0_27] : memref<16x64xbf16, #tpu.memory_space<vmem>>, vector<16x64xbf16>
    %cst_28 = arith.constant dense<0.000000e+00> : vector<64x64xf32>
    %84 = tpu.matmul %82, %83, %cst_28 {dimension_numbers = #tpu.dot_dimension_numbers<[1], [0], [0], [1], [0, 0, 1, 1], [], []>} : vector<64x16xbf16>, vector<16x64xbf16>, vector<64x64xf32> -> vector<64x64xf32>
    %c0_29 = arith.constant 0 : index
    %c0_30 = arith.constant 0 : index
    %85 = vector.load %arg10[%c0_29, %c0_30] : memref<1x64xf32, #tpu.memory_space<vmem>>, vector<1x64xf32>
    %86 = vector.broadcast %85 : vector<1x64xf32> to vector<64x64xf32>
    %87 = arith.addf %84, %86 : vector<64x64xf32>
    %cst_31 = arith.constant 0.000000e+00 : f32
    %88 = vector.broadcast %cst_31 : f32 to vector<64x64xf32>
    %89 = arith.maximumf %87, %88 : vector<64x64xf32>
    %90 = arith.truncf %89 : vector<64x64xf32> to vector<64x64xbf16>
    %c0_32 = arith.constant 0 : index
    %c0_33 = arith.constant 0 : index
    %91 = vector.load %arg11[%c0_32, %c0_33] : memref<64x16xbf16, #tpu.memory_space<vmem>>, vector<64x16xbf16>
    %cst_34 = arith.constant dense<0.000000e+00> : vector<64x16xf32>
    %92 = tpu.matmul %90, %91, %cst_34 {dimension_numbers = #tpu.dot_dimension_numbers<[1], [0], [0], [1], [0, 0, 1, 1], [], []>} : vector<64x64xbf16>, vector<64x16xbf16>, vector<64x16xf32> -> vector<64x16xf32>
    %c0_35 = arith.constant 0 : index
    %c0_36 = arith.constant 0 : index
    %93 = vector.load %arg12[%c0_35, %c0_36] : memref<1x16xf32, #tpu.memory_space<vmem>>, vector<1x16xf32>
    %94 = vector.broadcast %93 : vector<1x16xf32> to vector<64x16xf32>
    %95 = arith.addf %92, %94 : vector<64x16xf32>
    %96 = vector.shape_cast %95 : vector<64x16xf32> to vector<8x8x16xf32>
    %97 = arith.addf %52, %96 : vector<8x8x16xf32>
    %98 = arith.truncf %97 : vector<8x8x16xf32> to vector<8x8x16xbf16>
    %c0_37 = arith.constant 0 : index
    %c0_38 = arith.constant 0 : index
    %c0_39 = arith.constant 0 : index
    %c0_40 = arith.constant 0 : index
    %99 = vector.load %arg13[%c0_37, %c0_38, %c0_39, %c0_40] : memref<1x8x8x16xbf16, #tpu.memory_space<vmem>>, vector<1x8x8x16xbf16>
    %100 = vector.shape_cast %99 : vector<1x8x8x16xbf16> to vector<8x8x16xbf16>
    %101 = vector.shape_cast %98 : vector<8x8x16xbf16> to vector<1x8x8x16xbf16>
    tpu.vector_store %arg13[%c0_37, %c0_38, %c0_39, %c0_40], %101 {strides = array<i32>} : memref<1x8x8x16xbf16, #tpu.memory_space<vmem>>, vector<1x8x8x16xbf16>,
    return
  }
  func.func @transform_0(%arg0: i32, %arg1: i32) -> (i32, i32, i32) {
    %c0_i32 = arith.constant 0 : i32
    %c0_i32_0 = arith.constant 0 : i32
    return %arg0, %arg1, %c0_i32 : i32, i32, i32
  }
  func.func @transform_1(%arg0: i32, %arg1: i32) -> (i32, i32, i32) {
    %c0_i32 = arith.constant 0 : i32
    %c0_i32_0 = arith.constant 0 : i32
    %c0_i32_1 = arith.constant 0 : i32
    return %arg0, %c0_i32, %c0_i32_0 : i32, i32, i32
  }
  func.func @transform_2(%arg0: i32, %arg1: i32) -> (i32, i32, i32, i32) {
    %c0_i32 = arith.constant 0 : i32
    %c0_i32_0 = arith.constant 0 : i32
    %c0_i32_1 = arith.constant 0 : i32
    return %arg0, %arg1, %c0_i32, %c0_i32_0 : i32, i32, i32, i32
  }
  func.func @transform_3(%arg0: i32, %arg1: i32) -> (i32, i32) {
    %c0_i32 = arith.constant 0 : i32
    %c0_i32_0 = arith.constant 0 : i32
    %c0_i32_1 = arith.constant 0 : i32
    return %c0_i32, %c0_i32_0 : i32, i32
  }
  func.func @transform_4(%arg0: i32, %arg1: i32) -> (i32, i32) {
    %c0_i32 = arith.constant 0 : i32
    %c0_i32_0 = arith.constant 0 : i32
    %c0_i32_1 = arith.constant 0 : i32
    return %c0_i32, %c0_i32_0 : i32, i32
  }
  func.func @transform_5(%arg0: i32, %arg1: i32) -> (i32, i32) {
    %c0_i32 = arith.constant 0 : i32
    %c0_i32_0 = arith.constant 0 : i32
    %c0_i32_1 = arith.constant 0 : i32
    return %c0_i32, %c0_i32_0 : i32, i32
  }
  func.func @transform_6(%arg0: i32, %arg1: i32) -> (i32, i32) {
    %c0_i32 = arith.constant 0 : i32
    %c0_i32_0 = arith.constant 0 : i32
    %c0_i32_1 = arith.constant 0 : i32
    return %c0_i32, %c0_i32_0 : i32, i32
  }
  func.func @transform_7(%arg0: i32, %arg1: i32) -> (i32, i32) {
    %c0_i32 = arith.constant 0 : i32
    %c0_i32_0 = arith.constant 0 : i32
    %c0_i32_1 = arith.constant 0 : i32
    return %c0_i32, %c0_i32_0 : i32, i32
  }
  func.func @transform_8(%arg0: i32, %arg1: i32) -> (i32, i32) {
    %c0_i32 = arith.constant 0 : i32
    %c0_i32_0 = arith.constant 0 : i32
    %c0_i32_1 = arith.constant 0 : i32
    return %c0_i32, %c0_i32_0 : i32, i32
  }
  func.func @transform_9(%arg0: i32, %arg1: i32) -> (i32, i32) {
    %c0_i32 = arith.constant 0 : i32
    %c0_i32_0 = arith.constant 0 : i32
    %c0_i32_1 = arith.constant 0 : i32
    return %c0_i32, %c0_i32_0 : i32, i32
  }
  func.func @transform_10(%arg0: i32, %arg1: i32) -> (i32, i32) {
    %c0_i32 = arith.constant 0 : i32
    %c0_i32_0 = arith.constant 0 : i32
    %c0_i32_1 = arith.constant 0 : i32
    return %c0_i32, %c0_i32_0 : i32, i32
  }
  func.func @transform_11(%arg0: i32, %arg1: i32) -> (i32, i32, i32, i32) {
    %c0_i32 = arith.constant 0 : i32
    %c0_i32_0 = arith.constant 0 : i32
    %c0_i32_1 = arith.constant 0 : i32
    return %arg0, %arg1, %c0_i32, %c0_i32_0 : i32, i32, i32, i32
  }
}

module attributes {stable_mosaic.version = 11 : i64} {
  func.func @kern(%arg0: i32, %arg1: i32, %arg2: i32, %arg3: memref<1x8x32xf32, #tpu.memory_space<vmem>>, %arg4: memref<1x8x32xf32, #tpu.memory_space<vmem>>, %arg5: memref<1x8x8x16xbf16, #tpu.memory_space<vmem>>, %arg6: memref<1x8x1xf32, #tpu.memory_space<vmem>>, %arg7: memref<1x8x1xf32, #tpu.memory_space<vmem>>, %arg8: memref<1x32xf32, #tpu.memory_space<vmem>>, %arg9: memref<1x32xf32, #tpu.memory_space<vmem>>, %arg10: memref<32x32xbf16, #tpu.memory_space<vmem>>, %arg11: memref<1x32xf32, #tpu.memory_space<vmem>>, %arg12: memref<32x64xbf16, #tpu.memory_space<vmem>>, %arg13: memref<1x64xf32, #tpu.memory_space<vmem>>, %arg14: memref<1x16xf32, #tpu.memory_space<vmem>>, %arg15: memref<1x16xf32, #tpu.memory_space<vmem>>, %arg16: memref<16x4xbf16, #tpu.memory_space<vmem>>, %arg17: memref<1x4xf32, #tpu.memory_space<vmem>>, %arg18: memref<32x32xbf16, #tpu.memory_space<vmem>>, %arg19: memref<1x32xf32, #tpu.memory_space<vmem>>, %arg20: memref<1x32xf32, #tpu.memory_space<vmem>>, %arg21: memref<1x32xf32, #tpu.memory_space<vmem>>, %arg22: memref<32x128xbf16, #tpu.memory_space<vmem>>, %arg23: memref<1x128xf32, #tpu.memory_space<vmem>>, %arg24: memref<128x32xbf16, #tpu.memory_space<vmem>>, %arg25: memref<1x32xf32, #tpu.memory_space<vmem>>, %arg26: memref<1x32xf32, #tpu.memory_space<vmem>>, %arg27: memref<1x32xf32, #tpu.memory_space<vmem>>, %arg28: memref<32x8xbf16, #tpu.memory_space<vmem>>, %arg29: memref<1x8xf32, #tpu.memory_space<vmem>>, %arg30: memref<1x8x32xf32, #tpu.memory_space<vmem>>, %arg31: memref<1x8x8xf32, #tpu.memory_space<vmem>>, %arg32: memref<8x32xf32, #tpu.memory_space<vmem>>, %arg33: memref<4x8x1xf32, #tpu.memory_space<vmem>>, %arg34: memref<4x8x1xf32, #tpu.memory_space<vmem>>, %arg35: memref<4x8x8xf32, #tpu.memory_space<vmem>>) attributes {dimension_semantics = [#tpu.dimension_semantics<parallel>, #tpu.dimension_semantics<parallel>, #tpu.dimension_semantics<arbitrary>], iteration_bounds = array<i64: 2, 1, 1>, scalar_prefetch = 0 : i64, scratch_operands = 4 : i64, tpu.core_type = #tpu.core_type<tc>, window_params = [{transform_indices = @transform_0, window_bounds = array<i64: 1, 8, 32>}, {transform_indices = @transform_1, window_bounds = array<i64: 1, 8, 32>}, {transform_indices = @transform_2, window_bounds = array<i64: 1, 8, 8, 16>}, {transform_indices = @transform_3, window_bounds = array<i64: 1, 8, 1>}, {transform_indices = @transform_4, window_bounds = array<i64: 1, 8, 1>}, {pipeline_mode = #tpu.pipeline_mode<synchronous>, transform_indices = @transform_5, window_bounds = array<i64: 1, 32>}, {pipeline_mode = #tpu.pipeline_mode<synchronous>, transform_indices = @transform_6, window_bounds = array<i64: 1, 32>}, {pipeline_mode = #tpu.pipeline_mode<synchronous>, transform_indices = @transform_7, window_bounds = array<i64: 32, 32>}, {pipeline_mode = #tpu.pipeline_mode<synchronous>, transform_indices = @transform_8, window_bounds = array<i64: 1, 32>}, {pipeline_mode = #tpu.pipeline_mode<synchronous>, transform_indices = @transform_9, window_bounds = array<i64: 32, 64>}, {pipeline_mode = #tpu.pipeline_mode<synchronous>, transform_indices = @transform_10, window_bounds = array<i64: 1, 64>}, {pipeline_mode = #tpu.pipeline_mode<synchronous>, transform_indices = @transform_11, window_bounds = array<i64: 1, 16>}, {pipeline_mode = #tpu.pipeline_mode<synchronous>, transform_indices = @transform_12, window_bounds = array<i64: 1, 16>}, {pipeline_mode = #tpu.pipeline_mode<synchronous>, transform_indices = @transform_13, window_bounds = array<i64: 16, 4>}, {pipeline_mode = #tpu.pipeline_mode<synchronous>, transform_indices = @transform_14, window_bounds = array<i64: 1, 4>}, {pipeline_mode = #tpu.pipeline_mode<synchronous>, transform_indices = @transform_15, window_bounds = array<i64: 32, 32>}, {pipeline_mode = #tpu.pipeline_mode<synchronous>, transform_indices = @transform_16, window_bounds = array<i64: 1, 32>}, {pipeline_mode = #tpu.pipeline_mode<synchronous>, transform_indices = @transform_17, window_bounds = array<i64: 1, 32>}, {pipeline_mode = #tpu.pipeline_mode<synchronous>, transform_indices = @transform_18, window_bounds = array<i64: 1, 32>}, {pipeline_mode = #tpu.pipeline_mode<synchronous>, transform_indices = @transform_19, window_bounds = array<i64: 32, 128>}, {pipeline_mode = #tpu.pipeline_mode<synchronous>, transform_indices = @transform_20, window_bounds = array<i64: 1, 128>}, {pipeline_mode = #tpu.pipeline_mode<synchronous>, transform_indices = @transform_21, window_bounds = array<i64: 128, 32>}, {pipeline_mode = #tpu.pipeline_mode<synchronous>, transform_indices = @transform_22, window_bounds = array<i64: 1, 32>}, {pipeline_mode = #tpu.pipeline_mode<synchronous>, transform_indices = @transform_23, window_bounds = array<i64: 1, 32>}, {pipeline_mode = #tpu.pipeline_mode<synchronous>, transform_indices = @transform_24, window_bounds = array<i64: 1, 32>}, {pipeline_mode = #tpu.pipeline_mode<synchronous>, transform_indices = @transform_25, window_bounds = array<i64: 32, 8>}, {pipeline_mode = #tpu.pipeline_mode<synchronous>, transform_indices = @transform_26, window_bounds = array<i64: 1, 8>}, {transform_indices = @transform_27, window_bounds = array<i64: 1, 8, 32>}, {transform_indices = @transform_28, window_bounds = array<i64: 1, 8, 8>}]} {
    %c0_i32 = arith.constant 0 : i32
    %0 = arith.cmpi eq, %arg2, %c0_i32 : i32
    %1 = arith.extui %0 : i1 to i32
    %c0_i32_0 = arith.constant 0 : i32
    %2 = arith.cmpi ne, %1, %c0_i32_0 : i32
    scf.if %2 {
      %c0_131 = arith.constant 0 : index
      %c0_132 = arith.constant 0 : index
      %c0_133 = arith.constant 0 : index
      %266 = vector.load %arg3[%c0_131, %c0_132, %c0_133] : memref<1x8x32xf32, #tpu.memory_space<vmem>>, vector<1x8x32xf32>
      %267 = vector.shape_cast %266 : vector<1x8x32xf32> to vector<8x32xf32>
      %c0_134 = arith.constant 0 : index
      %c0_135 = arith.constant 0 : index
      %268 = vector.load %arg8[%c0_134, %c0_135] : memref<1x32xf32, #tpu.memory_space<vmem>>, vector<1x32xf32>
      %c0_136 = arith.constant 0 : index
      %c0_137 = arith.constant 0 : index
      %269 = vector.load %arg9[%c0_136, %c0_137] : memref<1x32xf32, #tpu.memory_space<vmem>>, vector<1x32xf32>
      %cst_138 = arith.constant dense<0.000000e+00> : vector<8xf32>
      %270 = vector.multi_reduction <add>, %267, %cst_138 [1] : vector<8x32xf32> to vector<8xf32>
      %271 = vector.shape_cast %270 : vector<8xf32> to vector<8x1xf32>
      %cst_139 = arith.constant 3.200000e+01 : f32
      %272 = vector.broadcast %cst_139 : f32 to vector<8x1xf32>
      %273 = arith.divf %271, %272 : vector<8x1xf32>
      %274 = vector.broadcast %273 : vector<8x1xf32> to vector<8x32xf32>
      %275 = arith.subf %267, %274 : vector<8x32xf32>
      %276 = vector.broadcast %273 : vector<8x1xf32> to vector<8x32xf32>
      %277 = arith.subf %267, %276 : vector<8x32xf32>
      %278 = arith.mulf %275, %277 : vector<8x32xf32>
      %cst_140 = arith.constant dense<0.000000e+00> : vector<8xf32>
      %279 = vector.multi_reduction <add>, %278, %cst_140 [1] : vector<8x32xf32> to vector<8xf32>
      %280 = vector.shape_cast %279 : vector<8xf32> to vector<8x1xf32>
      %cst_141 = arith.constant 3.200000e+01 : f32
      %281 = vector.broadcast %cst_141 : f32 to vector<8x1xf32>
      %282 = arith.divf %280, %281 : vector<8x1xf32>
      %283 = vector.broadcast %273 : vector<8x1xf32> to vector<8x32xf32>
      %284 = arith.subf %267, %283 : vector<8x32xf32>
      %cst_142 = arith.constant 9.99999974E-6 : f32
      %285 = vector.broadcast %cst_142 : f32 to vector<8x1xf32>
      %286 = arith.addf %282, %285 : vector<8x1xf32>
      %287 = math.rsqrt %286 : vector<8x1xf32>
      %288 = vector.broadcast %287 : vector<8x1xf32> to vector<8x32xf32>
      %289 = arith.mulf %284, %288 : vector<8x32xf32>
      %290 = vector.broadcast %268 : vector<1x32xf32> to vector<8x32xf32>
      %291 = arith.mulf %289, %290 : vector<8x32xf32>
      %292 = vector.broadcast %269 : vector<1x32xf32> to vector<8x32xf32>
      %293 = arith.addf %291, %292 : vector<8x32xf32>
      %294 = arith.truncf %293 : vector<8x32xf32> to vector<8x32xbf16>
      %c0_143 = arith.constant 0 : index
      %c0_144 = arith.constant 0 : index
      %295 = vector.load %arg10[%c0_143, %c0_144] : memref<32x32xbf16, #tpu.memory_space<vmem>>, vector<32x32xbf16>
      %cst_145 = arith.constant dense<0.000000e+00> : vector<8x32xf32>
      %296 = tpu.matmul %294, %295, %cst_145 {dimension_numbers = #tpu.dot_dimension_numbers<[1], [0], [0], [1], [0, 0, 1, 1], [], []>} : vector<8x32xbf16>, vector<32x32xbf16>, vector<8x32xf32> -> vector<8x32xf32>
      %c0_146 = arith.constant 0 : index
      %c0_147 = arith.constant 0 : index
      %297 = vector.load %arg11[%c0_146, %c0_147] : memref<1x32xf32, #tpu.memory_space<vmem>>, vector<1x32xf32>
      %298 = vector.broadcast %297 : vector<1x32xf32> to vector<8x32xf32>
      %299 = arith.addf %296, %298 : vector<8x32xf32>
      %cst_148 = arith.constant 0.353553385 : f32
      %300 = vector.broadcast %cst_148 : f32 to vector<8x32xf32>
      %301 = arith.mulf %299, %300 : vector<8x32xf32>
      %c0_149 = arith.constant 0 : index
      %c0_150 = arith.constant 0 : index
      %302 = vector.load %arg32[%c0_149, %c0_150] : memref<8x32xf32, #tpu.memory_space<vmem>>, vector<8x32xf32>
      tpu.vector_store %arg32[%c0_149, %c0_150], %301 {strides = array<i32>} : memref<8x32xf32, #tpu.memory_space<vmem>>, vector<8x32xf32>,
      %cst_151 = arith.constant -1.000000e+30 : f32
      %303 = vector.broadcast %cst_151 : f32 to vector<4x8x1xf32>
      %c0_152 = arith.constant 0 : index
      %c0_153 = arith.constant 0 : index
      %c0_154 = arith.constant 0 : index
      %304 = vector.load %arg33[%c0_152, %c0_153, %c0_154] : memref<4x8x1xf32, #tpu.memory_space<vmem>>, vector<4x8x1xf32>
      tpu.vector_store %arg33[%c0_152, %c0_153, %c0_154], %303 {strides = array<i32>} : memref<4x8x1xf32, #tpu.memory_space<vmem>>, vector<4x8x1xf32>,
      %cst_155 = arith.constant 0.000000e+00 : f32
      %305 = vector.broadcast %cst_155 : f32 to vector<4x8x1xf32>
      %c0_156 = arith.constant 0 : index
      %c0_157 = arith.constant 0 : index
      %c0_158 = arith.constant 0 : index
      %306 = vector.load %arg34[%c0_156, %c0_157, %c0_158] : memref<4x8x1xf32, #tpu.memory_space<vmem>>, vector<4x8x1xf32>
      tpu.vector_store %arg34[%c0_156, %c0_157, %c0_158], %305 {strides = array<i32>} : memref<4x8x1xf32, #tpu.memory_space<vmem>>, vector<4x8x1xf32>,
      %cst_159 = arith.constant 0.000000e+00 : f32
      %307 = vector.broadcast %cst_159 : f32 to vector<4x8x8xf32>
      %c0_160 = arith.constant 0 : index
      %c0_161 = arith.constant 0 : index
      %c0_162 = arith.constant 0 : index
      %308 = vector.load %arg35[%c0_160, %c0_161, %c0_162] : memref<4x8x8xf32, #tpu.memory_space<vmem>>, vector<4x8x8xf32>
      tpu.vector_store %arg35[%c0_160, %c0_161, %c0_162], %307 {strides = array<i32>} : memref<4x8x8xf32, #tpu.memory_space<vmem>>, vector<4x8x8xf32>,
    } else {
    }
    %c0 = arith.constant 0 : index
    %c0_1 = arith.constant 0 : index
    %c0_2 = arith.constant 0 : index
    %3 = vector.load %arg4[%c0, %c0_1, %c0_2] : memref<1x8x32xf32, #tpu.memory_space<vmem>>, vector<1x8x32xf32>
    %4 = vector.shape_cast %3 : vector<1x8x32xf32> to vector<8x32xf32>
    %c0_3 = arith.constant 0 : index
    %c0_4 = arith.constant 0 : index
    %5 = vector.load %arg8[%c0_3, %c0_4] : memref<1x32xf32, #tpu.memory_space<vmem>>, vector<1x32xf32>
    %c0_5 = arith.constant 0 : index
    %c0_6 = arith.constant 0 : index
    %6 = vector.load %arg9[%c0_5, %c0_6] : memref<1x32xf32, #tpu.memory_space<vmem>>, vector<1x32xf32>
    %cst = arith.constant dense<0.000000e+00> : vector<8xf32>
    %7 = vector.multi_reduction <add>, %4, %cst [1] : vector<8x32xf32> to vector<8xf32>
    %8 = vector.shape_cast %7 : vector<8xf32> to vector<8x1xf32>
    %cst_7 = arith.constant 3.200000e+01 : f32
    %9 = vector.broadcast %cst_7 : f32 to vector<8x1xf32>
    %10 = arith.divf %8, %9 : vector<8x1xf32>
    %11 = vector.broadcast %10 : vector<8x1xf32> to vector<8x32xf32>
    %12 = arith.subf %4, %11 : vector<8x32xf32>
    %13 = vector.broadcast %10 : vector<8x1xf32> to vector<8x32xf32>
    %14 = arith.subf %4, %13 : vector<8x32xf32>
    %15 = arith.mulf %12, %14 : vector<8x32xf32>
    %cst_8 = arith.constant dense<0.000000e+00> : vector<8xf32>
    %16 = vector.multi_reduction <add>, %15, %cst_8 [1] : vector<8x32xf32> to vector<8xf32>
    %17 = vector.shape_cast %16 : vector<8xf32> to vector<8x1xf32>
    %cst_9 = arith.constant 3.200000e+01 : f32
    %18 = vector.broadcast %cst_9 : f32 to vector<8x1xf32>
    %19 = arith.divf %17, %18 : vector<8x1xf32>
    %20 = vector.broadcast %10 : vector<8x1xf32> to vector<8x32xf32>
    %21 = arith.subf %4, %20 : vector<8x32xf32>
    %cst_10 = arith.constant 9.99999974E-6 : f32
    %22 = vector.broadcast %cst_10 : f32 to vector<8x1xf32>
    %23 = arith.addf %19, %22 : vector<8x1xf32>
    %24 = math.rsqrt %23 : vector<8x1xf32>
    %25 = vector.broadcast %24 : vector<8x1xf32> to vector<8x32xf32>
    %26 = arith.mulf %21, %25 : vector<8x32xf32>
    %27 = vector.broadcast %5 : vector<1x32xf32> to vector<8x32xf32>
    %28 = arith.mulf %26, %27 : vector<8x32xf32>
    %29 = vector.broadcast %6 : vector<1x32xf32> to vector<8x32xf32>
    %30 = arith.addf %28, %29 : vector<8x32xf32>
    %31 = arith.truncf %30 : vector<8x32xf32> to vector<8x32xbf16>
    %c0_11 = arith.constant 0 : index
    %c0_12 = arith.constant 0 : index
    %32 = vector.load %arg12[%c0_11, %c0_12] : memref<32x64xbf16, #tpu.memory_space<vmem>>, vector<32x64xbf16>
    %cst_13 = arith.constant dense<0.000000e+00> : vector<8x64xf32>
    %33 = tpu.matmul %31, %32, %cst_13 {dimension_numbers = #tpu.dot_dimension_numbers<[1], [0], [0], [1], [0, 0, 1, 1], [], []>} : vector<8x32xbf16>, vector<32x64xbf16>, vector<8x64xf32> -> vector<8x64xf32>
    %c0_14 = arith.constant 0 : index
    %c0_15 = arith.constant 0 : index
    %34 = vector.load %arg13[%c0_14, %c0_15] : memref<1x64xf32, #tpu.memory_space<vmem>>, vector<1x64xf32>
    %35 = vector.broadcast %34 : vector<1x64xf32> to vector<8x64xf32>
    %36 = arith.addf %33, %35 : vector<8x64xf32>
    %37 = vector.extract_strided_slice %36 {offsets = [0, 0], sizes = [8, 32], strides = [1, 1]} : vector<8x64xf32> to vector<8x32xf32>
    %38 = vector.extract_strided_slice %36 {offsets = [0, 32], sizes = [8, 32], strides = [1, 1]} : vector<8x64xf32> to vector<8x32xf32>
    %c0_16 = arith.constant 0 : index
    %c0_17 = arith.constant 0 : index
    %c0_18 = arith.constant 0 : index
    %c0_19 = arith.constant 0 : index
    %39 = vector.load %arg5[%c0_16, %c0_17, %c0_18, %c0_19] : memref<1x8x8x16xbf16, #tpu.memory_space<vmem>>, vector<1x8x8x16xbf16>
    %40 = vector.shape_cast %39 : vector<1x8x8x16xbf16> to vector<8x8x16xbf16>
    %41 = arith.extf %40 : vector<8x8x16xbf16> to vector<8x8x16xf32>
    %c0_20 = arith.constant 0 : index
    %c0_21 = arith.constant 0 : index
    %42 = vector.load %arg14[%c0_20, %c0_21] : memref<1x16xf32, #tpu.memory_space<vmem>>, vector<1x16xf32>
    %c0_22 = arith.constant 0 : index
    %c0_23 = arith.constant 0 : index
    %43 = vector.load %arg15[%c0_22, %c0_23] : memref<1x16xf32, #tpu.memory_space<vmem>>, vector<1x16xf32>
    %cst_24 = arith.constant dense<0.000000e+00> : vector<8x8xf32>
    %44 = vector.multi_reduction <add>, %41, %cst_24 [2] : vector<8x8x16xf32> to vector<8x8xf32>
    %45 = vector.shape_cast %44 : vector<8x8xf32> to vector<8x8x1xf32>
    %cst_25 = arith.constant 1.600000e+01 : f32
    %46 = vector.broadcast %cst_25 : f32 to vector<8x8x1xf32>
    %47 = arith.divf %45, %46 : vector<8x8x1xf32>
    %48 = vector.broadcast %47 : vector<8x8x1xf32> to vector<8x8x16xf32>
    %49 = arith.subf %41, %48 : vector<8x8x16xf32>
    %50 = vector.broadcast %47 : vector<8x8x1xf32> to vector<8x8x16xf32>
    %51 = arith.subf %41, %50 : vector<8x8x16xf32>
    %52 = arith.mulf %49, %51 : vector<8x8x16xf32>
    %cst_26 = arith.constant dense<0.000000e+00> : vector<8x8xf32>
    %53 = vector.multi_reduction <add>, %52, %cst_26 [2] : vector<8x8x16xf32> to vector<8x8xf32>
    %54 = vector.shape_cast %53 : vector<8x8xf32> to vector<8x8x1xf32>
    %cst_27 = arith.constant 1.600000e+01 : f32
    %55 = vector.broadcast %cst_27 : f32 to vector<8x8x1xf32>
    %56 = arith.divf %54, %55 : vector<8x8x1xf32>
    %57 = vector.broadcast %47 : vector<8x8x1xf32> to vector<8x8x16xf32>
    %58 = arith.subf %41, %57 : vector<8x8x16xf32>
    %cst_28 = arith.constant 9.99999974E-6 : f32
    %59 = vector.broadcast %cst_28 : f32 to vector<8x8x1xf32>
    %60 = arith.addf %56, %59 : vector<8x8x1xf32>
    %61 = math.rsqrt %60 : vector<8x8x1xf32>
    %62 = vector.broadcast %61 : vector<8x8x1xf32> to vector<8x8x16xf32>
    %63 = arith.mulf %58, %62 : vector<8x8x16xf32>
    %64 = vector.shape_cast %42 : vector<1x16xf32> to vector<1x1x16xf32>
    %65 = vector.broadcast %64 : vector<1x1x16xf32> to vector<8x8x16xf32>
    %66 = arith.mulf %63, %65 : vector<8x8x16xf32>
    %67 = vector.shape_cast %43 : vector<1x16xf32> to vector<1x1x16xf32>
    %68 = vector.broadcast %67 : vector<1x1x16xf32> to vector<8x8x16xf32>
    %69 = arith.addf %66, %68 : vector<8x8x16xf32>
    %70 = vector.shape_cast %69 : vector<8x8x16xf32> to vector<64x16xf32>
    %71 = arith.truncf %70 : vector<64x16xf32> to vector<64x16xbf16>
    %c0_29 = arith.constant 0 : index
    %c0_30 = arith.constant 0 : index
    %72 = vector.load %arg16[%c0_29, %c0_30] : memref<16x4xbf16, #tpu.memory_space<vmem>>, vector<16x4xbf16>
    %cst_31 = arith.constant dense<0.000000e+00> : vector<64x4xf32>
    %73 = tpu.matmul %71, %72, %cst_31 {dimension_numbers = #tpu.dot_dimension_numbers<[1], [0], [0], [1], [0, 0, 1, 1], [], []>} : vector<64x16xbf16>, vector<16x4xbf16>, vector<64x4xf32> -> vector<64x4xf32>
    %c0_32 = arith.constant 0 : index
    %c0_33 = arith.constant 0 : index
    %74 = vector.load %arg17[%c0_32, %c0_33] : memref<1x4xf32, #tpu.memory_space<vmem>>, vector<1x4xf32>
    %75 = vector.broadcast %74 : vector<1x4xf32> to vector<64x4xf32>
    %76 = arith.addf %73, %75 : vector<64x4xf32>
    %77 = vector.shape_cast %76 : vector<64x4xf32> to vector<8x8x4xf32>
    %c0_34 = arith.constant 0 : index
    %c0_35 = arith.constant 0 : index
    %c0_36 = arith.constant 0 : index
    %78 = vector.load %arg6[%c0_34, %c0_35, %c0_36] : memref<1x8x1xf32, #tpu.memory_space<vmem>>, vector<1x8x1xf32>
    %79 = vector.shape_cast %78 : vector<1x8x1xf32> to vector<8x1xf32>
    %c0_37 = arith.constant 0 : index
    %c0_38 = arith.constant 0 : index
    %c0_39 = arith.constant 0 : index
    %80 = vector.load %arg7[%c0_37, %c0_38, %c0_39] : memref<1x8x1xf32, #tpu.memory_space<vmem>>, vector<1x8x1xf32>
    %81 = vector.shape_cast %80 : vector<1x8x1xf32> to vector<8x1xf32>
    %82 = tpu.transpose %81, [1, 0] : vector<8x1xf32> -> vector<1x8xf32>
    %83 = vector.broadcast %79 : vector<8x1xf32> to vector<8x8xf32>
    %84 = vector.broadcast %82 : vector<1x8xf32> to vector<8x8xf32>
    %85 = arith.mulf %83, %84 : vector<8x8xf32>
    %cst_40 = arith.constant 1.000000e+00 : f32
    %86 = vector.broadcast %cst_40 : f32 to vector<8x8xf32>
    %87 = arith.subf %85, %86 : vector<8x8xf32>
    %cst_41 = arith.constant 1.000000e+09 : f32
    %88 = vector.broadcast %cst_41 : f32 to vector<8x8xf32>
    %89 = arith.mulf %87, %88 : vector<8x8xf32>
    %c0_42 = arith.constant 0 : index
    %c0_43 = arith.constant 0 : index
    %90 = vector.load %arg32[%c0_42, %c0_43] : memref<8x32xf32, #tpu.memory_space<vmem>>, vector<8x32xf32>
    %91 = vector.extract_strided_slice %90 {offsets = [0, 0], sizes = [8, 8], strides = [1, 1]} : vector<8x32xf32> to vector<8x8xf32>
    %92 = arith.truncf %91 : vector<8x8xf32> to vector<8x8xbf16>
    %93 = vector.extract_strided_slice %37 {offsets = [0, 0], sizes = [8, 8], strides = [1, 1]} : vector<8x32xf32> to vector<8x8xf32>
    %94 = arith.truncf %93 : vector<8x8xf32> to vector<8x8xbf16>
    %95 = vector.extract_strided_slice %38 {offsets = [0, 0], sizes = [8, 8], strides = [1, 1]} : vector<8x32xf32> to vector<8x8xf32>
    %96 = arith.truncf %95 : vector<8x8xf32> to vector<8x8xbf16>
    %cst_44 = arith.constant dense<0.000000e+00> : vector<8x8xf32>
    %97 = tpu.matmul %92, %94, %cst_44 {dimension_numbers = #tpu.dot_dimension_numbers<[1], [1], [0], [0], [0, 0, 1, 0], [], []>} : vector<8x8xbf16>, vector<8x8xbf16>, vector<8x8xf32> -> vector<8x8xf32>
    %98 = vector.extract_strided_slice %77 {offsets = [0, 0, 0], sizes = [8, 8, 1], strides = [1, 1, 1]} : vector<8x8x4xf32> to vector<8x8x1xf32>
    %99 = vector.shape_cast %98 : vector<8x8x1xf32> to vector<8x8xf32>
    %100 = arith.addf %97, %99 : vector<8x8xf32>
    %101 = arith.addf %100, %89 : vector<8x8xf32>
    %c0_45 = arith.constant 0 : index
    %c0_46 = arith.constant 0 : index
    %c0_47 = arith.constant 0 : index
    %102 = vector.load %arg33[%c0_45, %c0_46, %c0_47] : memref<4x8x1xf32, #tpu.memory_space<vmem>>, vector<1x8x1xf32>
    %103 = vector.shape_cast %102 : vector<1x8x1xf32> to vector<8x1xf32>
    %cst_48 = arith.constant dense<0xFF800000> : vector<8xf32>
    %104 = vector.multi_reduction <maximumf>, %101, %cst_48 [1] : vector<8x8xf32> to vector<8xf32>
    %105 = vector.shape_cast %104 : vector<8xf32> to vector<8x1xf32>
    %106 = arith.maximumf %103, %105 : vector<8x1xf32>
    %107 = arith.subf %103, %106 : vector<8x1xf32>
    %108 = math.exp %107 : vector<8x1xf32>
    %109 = vector.broadcast %106 : vector<8x1xf32> to vector<8x8xf32>
    %110 = arith.subf %101, %109 : vector<8x8xf32>
    %111 = math.exp %110 : vector<8x8xf32>
    %c0_49 = arith.constant 0 : index
    %c0_50 = arith.constant 0 : index
    %c0_51 = arith.constant 0 : index
    %112 = vector.load %arg34[%c0_49, %c0_50, %c0_51] : memref<4x8x1xf32, #tpu.memory_space<vmem>>, vector<1x8x1xf32>
    %113 = vector.shape_cast %112 : vector<1x8x1xf32> to vector<8x1xf32>
    %114 = arith.mulf %108, %113 : vector<8x1xf32>
    %cst_52 = arith.constant dense<0.000000e+00> : vector<8xf32>
    %115 = vector.multi_reduction <add>, %111, %cst_52 [1] : vector<8x8xf32> to vector<8xf32>
    %116 = vector.shape_cast %115 : vector<8xf32> to vector<8x1xf32>
    %117 = arith.addf %114, %116 : vector<8x1xf32>
    %c0_53 = arith.constant 0 : index
    %c0_54 = arith.constant 0 : index
    %c0_55 = arith.constant 0 : index
    %118 = vector.load %arg34[%c0_53, %c0_54, %c0_55] : memref<4x8x1xf32, #tpu.memory_space<vmem>>, vector<1x8x1xf32>
    %119 = vector.shape_cast %118 : vector<1x8x1xf32> to vector<8x1xf32>
    %120 = vector.shape_cast %117 : vector<8x1xf32> to vector<1x8x1xf32>
    tpu.vector_store %arg34[%c0_53, %c0_54, %c0_55], %120 {strides = array<i32>} : memref<4x8x1xf32, #tpu.memory_space<vmem>>, vector<1x8x1xf32>,
    %c0_56 = arith.constant 0 : index
    %c0_57 = arith.constant 0 : index
    %c0_58 = arith.constant 0 : index
    %121 = vector.load %arg35[%c0_56, %c0_57, %c0_58] : memref<4x8x8xf32, #tpu.memory_space<vmem>>, vector<1x8x8xf32>
    %122 = vector.shape_cast %121 : vector<1x8x8xf32> to vector<8x8xf32>
    %123 = vector.broadcast %108 : vector<8x1xf32> to vector<8x8xf32>
    %124 = arith.mulf %123, %122 : vector<8x8xf32>
    %125 = arith.truncf %111 : vector<8x8xf32> to vector<8x8xbf16>
    %cst_59 = arith.constant dense<0.000000e+00> : vector<8x8xf32>
    %126 = tpu.matmul %125, %96, %cst_59 {dimension_numbers = #tpu.dot_dimension_numbers<[1], [0], [0], [1], [0, 0, 1, 1], [], []>} : vector<8x8xbf16>, vector<8x8xbf16>, vector<8x8xf32> -> vector<8x8xf32>
    %127 = arith.addf %124, %126 : vector<8x8xf32>
    %c0_60 = arith.constant 0 : index
    %c0_61 = arith.constant 0 : index
    %c0_62 = arith.constant 0 : index
    %128 = vector.load %arg35[%c0_60, %c0_61, %c0_62] : memref<4x8x8xf32, #tpu.memory_space<vmem>>, vector<1x8x8xf32>
    %129 = vector.shape_cast %128 : vector<1x8x8xf32> to vector<8x8xf32>
    %130 = vector.shape_cast %127 : vector<8x8xf32> to vector<1x8x8xf32>
    tpu.vector_store %arg35[%c0_60, %c0_61, %c0_62], %130 {strides = array<i32>} : memref<4x8x8xf32, #tpu.memory_space<vmem>>, vector<1x8x8xf32>,
    %c0_63 = arith.constant 0 : index
    %c0_64 = arith.constant 0 : index
    %c0_65 = arith.constant 0 : index
    %131 = vector.load %arg33[%c0_63, %c0_64, %c0_65] : memref<4x8x1xf32, #tpu.memory_space<vmem>>, vector<1x8x1xf32>
    %132 = vector.shape_cast %131 : vector<1x8x1xf32> to vector<8x1xf32>
    %133 = vector.shape_cast %106 : vector<8x1xf32> to vector<1x8x1xf32>
    tpu.vector_store %arg33[%c0_63, %c0_64, %c0_65], %133 {strides = array<i32>} : memref<4x8x1xf32, #tpu.memory_space<vmem>>, vector<1x8x1xf32>,
    %134 = vector.extract_strided_slice %90 {offsets = [0, 8], sizes = [8, 8], strides = [1, 1]} : vector<8x32xf32> to vector<8x8xf32>
    %135 = arith.truncf %134 : vector<8x8xf32> to vector<8x8xbf16>
    %136 = vector.extract_strided_slice %37 {offsets = [0, 8], sizes = [8, 8], strides = [1, 1]} : vector<8x32xf32> to vector<8x8xf32>
    %137 = arith.truncf %136 : vector<8x8xf32> to vector<8x8xbf16>
    %138 = vector.extract_strided_slice %38 {offsets = [0, 8], sizes = [8, 8], strides = [1, 1]} : vector<8x32xf32> to vector<8x8xf32>
    %139 = arith.truncf %138 : vector<8x8xf32> to vector<8x8xbf16>
    %cst_66 = arith.constant dense<0.000000e+00> : vector<8x8xf32>
    %140 = tpu.matmul %135, %137, %cst_66 {dimension_numbers = #tpu.dot_dimension_numbers<[1], [1], [0], [0], [0, 0, 1, 0], [], []>} : vector<8x8xbf16>, vector<8x8xbf16>, vector<8x8xf32> -> vector<8x8xf32>
    %141 = vector.extract_strided_slice %77 {offsets = [0, 0, 1], sizes = [8, 8, 1], strides = [1, 1, 1]} : vector<8x8x4xf32> to vector<8x8x1xf32>
    %142 = vector.shape_cast %141 : vector<8x8x1xf32> to vector<8x8xf32>
    %143 = arith.addf %140, %142 : vector<8x8xf32>
    %144 = arith.addf %143, %89 : vector<8x8xf32>
    %c1 = arith.constant 1 : index
    %c0_67 = arith.constant 0 : index
    %c0_68 = arith.constant 0 : index
    %145 = vector.load %arg33[%c1, %c0_67, %c0_68] : memref<4x8x1xf32, #tpu.memory_space<vmem>>, vector<1x8x1xf32>
    %146 = vector.shape_cast %145 : vector<1x8x1xf32> to vector<8x1xf32>
    %cst_69 = arith.constant dense<0xFF800000> : vector<8xf32>
    %147 = vector.multi_reduction <maximumf>, %144, %cst_69 [1] : vector<8x8xf32> to vector<8xf32>
    %148 = vector.shape_cast %147 : vector<8xf32> to vector<8x1xf32>
    %149 = arith.maximumf %146, %148 : vector<8x1xf32>
    %150 = arith.subf %146, %149 : vector<8x1xf32>
    %151 = math.exp %150 : vector<8x1xf32>
    %152 = vector.broadcast %149 : vector<8x1xf32> to vector<8x8xf32>
    %153 = arith.subf %144, %152 : vector<8x8xf32>
    %154 = math.exp %153 : vector<8x8xf32>
    %c1_70 = arith.constant 1 : index
    %c0_71 = arith.constant 0 : index
    %c0_72 = arith.constant 0 : index
    %155 = vector.load %arg34[%c1_70, %c0_71, %c0_72] : memref<4x8x1xf32, #tpu.memory_space<vmem>>, vector<1x8x1xf32>
    %156 = vector.shape_cast %155 : vector<1x8x1xf32> to vector<8x1xf32>
    %157 = arith.mulf %151, %156 : vector<8x1xf32>
    %cst_73 = arith.constant dense<0.000000e+00> : vector<8xf32>
    %158 = vector.multi_reduction <add>, %154, %cst_73 [1] : vector<8x8xf32> to vector<8xf32>
    %159 = vector.shape_cast %158 : vector<8xf32> to vector<8x1xf32>
    %160 = arith.addf %157, %159 : vector<8x1xf32>
    %c1_74 = arith.constant 1 : index
    %c0_75 = arith.constant 0 : index
    %c0_76 = arith.constant 0 : index
    %161 = vector.load %arg34[%c1_74, %c0_75, %c0_76] : memref<4x8x1xf32, #tpu.memory_space<vmem>>, vector<1x8x1xf32>
    %162 = vector.shape_cast %161 : vector<1x8x1xf32> to vector<8x1xf32>
    %163 = vector.shape_cast %160 : vector<8x1xf32> to vector<1x8x1xf32>
    tpu.vector_store %arg34[%c1_74, %c0_75, %c0_76], %163 {strides = array<i32>} : memref<4x8x1xf32, #tpu.memory_space<vmem>>, vector<1x8x1xf32>,
    %c1_77 = arith.constant 1 : index
    %c0_78 = arith.constant 0 : index
    %c0_79 = arith.constant 0 : index
    %164 = vector.load %arg35[%c1_77, %c0_78, %c0_79] : memref<4x8x8xf32, #tpu.memory_space<vmem>>, vector<1x8x8xf32>
    %165 = vector.shape_cast %164 : vector<1x8x8xf32> to vector<8x8xf32>
    %166 = vector.broadcast %151 : vector<8x1xf32> to vector<8x8xf32>
    %167 = arith.mulf %166, %165 : vector<8x8xf32>
    %168 = arith.truncf %154 : vector<8x8xf32> to vector<8x8xbf16>
    %cst_80 = arith.constant dense<0.000000e+00> : vector<8x8xf32>
    %169 = tpu.matmul %168, %139, %cst_80 {dimension_numbers = #tpu.dot_dimension_numbers<[1], [0], [0], [1], [0, 0, 1, 1], [], []>} : vector<8x8xbf16>, vector<8x8xbf16>, vector<8x8xf32> -> vector<8x8xf32>
    %170 = arith.addf %167, %169 : vector<8x8xf32>
    %c1_81 = arith.constant 1 : index
    %c0_82 = arith.constant 0 : index
    %c0_83 = arith.constant 0 : index
    %171 = vector.load %arg35[%c1_81, %c0_82, %c0_83] : memref<4x8x8xf32, #tpu.memory_space<vmem>>, vector<1x8x8xf32>
    %172 = vector.shape_cast %171 : vector<1x8x8xf32> to vector<8x8xf32>
    %173 = vector.shape_cast %170 : vector<8x8xf32> to vector<1x8x8xf32>
    tpu.vector_store %arg35[%c1_81, %c0_82, %c0_83], %173 {strides = array<i32>} : memref<4x8x8xf32, #tpu.memory_space<vmem>>, vector<1x8x8xf32>,
    %c1_84 = arith.constant 1 : index
    %c0_85 = arith.constant 0 : index
    %c0_86 = arith.constant 0 : index
    %174 = vector.load %arg33[%c1_84, %c0_85, %c0_86] : memref<4x8x1xf32, #tpu.memory_space<vmem>>, vector<1x8x1xf32>
    %175 = vector.shape_cast %174 : vector<1x8x1xf32> to vector<8x1xf32>
    %176 = vector.shape_cast %149 : vector<8x1xf32> to vector<1x8x1xf32>
    tpu.vector_store %arg33[%c1_84, %c0_85, %c0_86], %176 {strides = array<i32>} : memref<4x8x1xf32, #tpu.memory_space<vmem>>, vector<1x8x1xf32>,
    %177 = vector.extract_strided_slice %90 {offsets = [0, 16], sizes = [8, 8], strides = [1, 1]} : vector<8x32xf32> to vector<8x8xf32>
    %178 = arith.truncf %177 : vector<8x8xf32> to vector<8x8xbf16>
    %179 = vector.extract_strided_slice %37 {offsets = [0, 16], sizes = [8, 8], strides = [1, 1]} : vector<8x32xf32> to vector<8x8xf32>
    %180 = arith.truncf %179 : vector<8x8xf32> to vector<8x8xbf16>
    %181 = vector.extract_strided_slice %38 {offsets = [0, 16], sizes = [8, 8], strides = [1, 1]} : vector<8x32xf32> to vector<8x8xf32>
    %182 = arith.truncf %181 : vector<8x8xf32> to vector<8x8xbf16>
    %cst_87 = arith.constant dense<0.000000e+00> : vector<8x8xf32>
    %183 = tpu.matmul %178, %180, %cst_87 {dimension_numbers = #tpu.dot_dimension_numbers<[1], [1], [0], [0], [0, 0, 1, 0], [], []>} : vector<8x8xbf16>, vector<8x8xbf16>, vector<8x8xf32> -> vector<8x8xf32>
    %184 = vector.extract_strided_slice %77 {offsets = [0, 0, 2], sizes = [8, 8, 1], strides = [1, 1, 1]} : vector<8x8x4xf32> to vector<8x8x1xf32>
    %185 = vector.shape_cast %184 : vector<8x8x1xf32> to vector<8x8xf32>
    %186 = arith.addf %183, %185 : vector<8x8xf32>
    %187 = arith.addf %186, %89 : vector<8x8xf32>
    %c2 = arith.constant 2 : index
    %c0_88 = arith.constant 0 : index
    %c0_89 = arith.constant 0 : index
    %188 = vector.load %arg33[%c2, %c0_88, %c0_89] : memref<4x8x1xf32, #tpu.memory_space<vmem>>, vector<1x8x1xf32>
    %189 = vector.shape_cast %188 : vector<1x8x1xf32> to vector<8x1xf32>
    %cst_90 = arith.constant dense<0xFF800000> : vector<8xf32>
    %190 = vector.multi_reduction <maximumf>, %187, %cst_90 [1] : vector<8x8xf32> to vector<8xf32>
    %191 = vector.shape_cast %190 : vector<8xf32> to vector<8x1xf32>
    %192 = arith.maximumf %189, %191 : vector<8x1xf32>
    %193 = arith.subf %189, %192 : vector<8x1xf32>
    %194 = math.exp %193 : vector<8x1xf32>
    %195 = vector.broadcast %192 : vector<8x1xf32> to vector<8x8xf32>
    %196 = arith.subf %187, %195 : vector<8x8xf32>
    %197 = math.exp %196 : vector<8x8xf32>
    %c2_91 = arith.constant 2 : index
    %c0_92 = arith.constant 0 : index
    %c0_93 = arith.constant 0 : index
    %198 = vector.load %arg34[%c2_91, %c0_92, %c0_93] : memref<4x8x1xf32, #tpu.memory_space<vmem>>, vector<1x8x1xf32>
    %199 = vector.shape_cast %198 : vector<1x8x1xf32> to vector<8x1xf32>
    %200 = arith.mulf %194, %199 : vector<8x1xf32>
    %cst_94 = arith.constant dense<0.000000e+00> : vector<8xf32>
    %201 = vector.multi_reduction <add>, %197, %cst_94 [1] : vector<8x8xf32> to vector<8xf32>
    %202 = vector.shape_cast %201 : vector<8xf32> to vector<8x1xf32>
    %203 = arith.addf %200, %202 : vector<8x1xf32>
    %c2_95 = arith.constant 2 : index
    %c0_96 = arith.constant 0 : index
    %c0_97 = arith.constant 0 : index
    %204 = vector.load %arg34[%c2_95, %c0_96, %c0_97] : memref<4x8x1xf32, #tpu.memory_space<vmem>>, vector<1x8x1xf32>
    %205 = vector.shape_cast %204 : vector<1x8x1xf32> to vector<8x1xf32>
    %206 = vector.shape_cast %203 : vector<8x1xf32> to vector<1x8x1xf32>
    tpu.vector_store %arg34[%c2_95, %c0_96, %c0_97], %206 {strides = array<i32>} : memref<4x8x1xf32, #tpu.memory_space<vmem>>, vector<1x8x1xf32>,
    %c2_98 = arith.constant 2 : index
    %c0_99 = arith.constant 0 : index
    %c0_100 = arith.constant 0 : index
    %207 = vector.load %arg35[%c2_98, %c0_99, %c0_100] : memref<4x8x8xf32, #tpu.memory_space<vmem>>, vector<1x8x8xf32>
    %208 = vector.shape_cast %207 : vector<1x8x8xf32> to vector<8x8xf32>
    %209 = vector.broadcast %194 : vector<8x1xf32> to vector<8x8xf32>
    %210 = arith.mulf %209, %208 : vector<8x8xf32>
    %211 = arith.truncf %197 : vector<8x8xf32> to vector<8x8xbf16>
    %cst_101 = arith.constant dense<0.000000e+00> : vector<8x8xf32>
    %212 = tpu.matmul %211, %182, %cst_101 {dimension_numbers = #tpu.dot_dimension_numbers<[1], [0], [0], [1], [0, 0, 1, 1], [], []>} : vector<8x8xbf16>, vector<8x8xbf16>, vector<8x8xf32> -> vector<8x8xf32>
    %213 = arith.addf %210, %212 : vector<8x8xf32>
    %c2_102 = arith.constant 2 : index
    %c0_103 = arith.constant 0 : index
    %c0_104 = arith.constant 0 : index
    %214 = vector.load %arg35[%c2_102, %c0_103, %c0_104] : memref<4x8x8xf32, #tpu.memory_space<vmem>>, vector<1x8x8xf32>
    %215 = vector.shape_cast %214 : vector<1x8x8xf32> to vector<8x8xf32>
    %216 = vector.shape_cast %213 : vector<8x8xf32> to vector<1x8x8xf32>
    tpu.vector_store %arg35[%c2_102, %c0_103, %c0_104], %216 {strides = array<i32>} : memref<4x8x8xf32, #tpu.memory_space<vmem>>, vector<1x8x8xf32>,
    %c2_105 = arith.constant 2 : index
    %c0_106 = arith.constant 0 : index
    %c0_107 = arith.constant 0 : index
    %217 = vector.load %arg33[%c2_105, %c0_106, %c0_107] : memref<4x8x1xf32, #tpu.memory_space<vmem>>, vector<1x8x1xf32>
    %218 = vector.shape_cast %217 : vector<1x8x1xf32> to vector<8x1xf32>
    %219 = vector.shape_cast %192 : vector<8x1xf32> to vector<1x8x1xf32>
    tpu.vector_store %arg33[%c2_105, %c0_106, %c0_107], %219 {strides = array<i32>} : memref<4x8x1xf32, #tpu.memory_space<vmem>>, vector<1x8x1xf32>,
    %220 = vector.extract_strided_slice %90 {offsets = [0, 24], sizes = [8, 8], strides = [1, 1]} : vector<8x32xf32> to vector<8x8xf32>
    %221 = arith.truncf %220 : vector<8x8xf32> to vector<8x8xbf16>
    %222 = vector.extract_strided_slice %37 {offsets = [0, 24], sizes = [8, 8], strides = [1, 1]} : vector<8x32xf32> to vector<8x8xf32>
    %223 = arith.truncf %222 : vector<8x8xf32> to vector<8x8xbf16>
    %224 = vector.extract_strided_slice %38 {offsets = [0, 24], sizes = [8, 8], strides = [1, 1]} : vector<8x32xf32> to vector<8x8xf32>
    %225 = arith.truncf %224 : vector<8x8xf32> to vector<8x8xbf16>
    %cst_108 = arith.constant dense<0.000000e+00> : vector<8x8xf32>
    %226 = tpu.matmul %221, %223, %cst_108 {dimension_numbers = #tpu.dot_dimension_numbers<[1], [1], [0], [0], [0, 0, 1, 0], [], []>} : vector<8x8xbf16>, vector<8x8xbf16>, vector<8x8xf32> -> vector<8x8xf32>
    %227 = vector.extract_strided_slice %77 {offsets = [0, 0, 3], sizes = [8, 8, 1], strides = [1, 1, 1]} : vector<8x8x4xf32> to vector<8x8x1xf32>
    %228 = vector.shape_cast %227 : vector<8x8x1xf32> to vector<8x8xf32>
    %229 = arith.addf %226, %228 : vector<8x8xf32>
    %230 = arith.addf %229, %89 : vector<8x8xf32>
    %c3 = arith.constant 3 : index
    %c0_109 = arith.constant 0 : index
    %c0_110 = arith.constant 0 : index
    %231 = vector.load %arg33[%c3, %c0_109, %c0_110] : memref<4x8x1xf32, #tpu.memory_space<vmem>>, vector<1x8x1xf32>
    %232 = vector.shape_cast %231 : vector<1x8x1xf32> to vector<8x1xf32>
    %cst_111 = arith.constant dense<0xFF800000> : vector<8xf32>
    %233 = vector.multi_reduction <maximumf>, %230, %cst_111 [1] : vector<8x8xf32> to vector<8xf32>
    %234 = vector.shape_cast %233 : vector<8xf32> to vector<8x1xf32>
    %235 = arith.maximumf %232, %234 : vector<8x1xf32>
    %236 = arith.subf %232, %235 : vector<8x1xf32>
    %237 = math.exp %236 : vector<8x1xf32>
    %238 = vector.broadcast %235 : vector<8x1xf32> to vector<8x8xf32>
    %239 = arith.subf %230, %238 : vector<8x8xf32>
    %240 = math.exp %239 : vector<8x8xf32>
    %c3_112 = arith.constant 3 : index
    %c0_113 = arith.constant 0 : index
    %c0_114 = arith.constant 0 : index
    %241 = vector.load %arg34[%c3_112, %c0_113, %c0_114] : memref<4x8x1xf32, #tpu.memory_space<vmem>>, vector<1x8x1xf32>
    %242 = vector.shape_cast %241 : vector<1x8x1xf32> to vector<8x1xf32>
    %243 = arith.mulf %237, %242 : vector<8x1xf32>
    %cst_115 = arith.constant dense<0.000000e+00> : vector<8xf32>
    %244 = vector.multi_reduction <add>, %240, %cst_115 [1] : vector<8x8xf32> to vector<8xf32>
    %245 = vector.shape_cast %244 : vector<8xf32> to vector<8x1xf32>
    %246 = arith.addf %243, %245 : vector<8x1xf32>
    %c3_116 = arith.constant 3 : index
    %c0_117 = arith.constant 0 : index
    %c0_118 = arith.constant 0 : index
    %247 = vector.load %arg34[%c3_116, %c0_117, %c0_118] : memref<4x8x1xf32, #tpu.memory_space<vmem>>, vector<1x8x1xf32>
    %248 = vector.shape_cast %247 : vector<1x8x1xf32> to vector<8x1xf32>
    %249 = vector.shape_cast %246 : vector<8x1xf32> to vector<1x8x1xf32>
    tpu.vector_store %arg34[%c3_116, %c0_117, %c0_118], %249 {strides = array<i32>} : memref<4x8x1xf32, #tpu.memory_space<vmem>>, vector<1x8x1xf32>,
    %c3_119 = arith.constant 3 : index
    %c0_120 = arith.constant 0 : index
    %c0_121 = arith.constant 0 : index
    %250 = vector.load %arg35[%c3_119, %c0_120, %c0_121] : memref<4x8x8xf32, #tpu.memory_space<vmem>>, vector<1x8x8xf32>
    %251 = vector.shape_cast %250 : vector<1x8x8xf32> to vector<8x8xf32>
    %252 = vector.broadcast %237 : vector<8x1xf32> to vector<8x8xf32>
    %253 = arith.mulf %252, %251 : vector<8x8xf32>
    %254 = arith.truncf %240 : vector<8x8xf32> to vector<8x8xbf16>
    %cst_122 = arith.constant dense<0.000000e+00> : vector<8x8xf32>
    %255 = tpu.matmul %254, %225, %cst_122 {dimension_numbers = #tpu.dot_dimension_numbers<[1], [0], [0], [1], [0, 0, 1, 1], [], []>} : vector<8x8xbf16>, vector<8x8xbf16>, vector<8x8xf32> -> vector<8x8xf32>
    %256 = arith.addf %253, %255 : vector<8x8xf32>
    %c3_123 = arith.constant 3 : index
    %c0_124 = arith.constant 0 : index
    %c0_125 = arith.constant 0 : index
    %257 = vector.load %arg35[%c3_123, %c0_124, %c0_125] : memref<4x8x8xf32, #tpu.memory_space<vmem>>, vector<1x8x8xf32>
    %258 = vector.shape_cast %257 : vector<1x8x8xf32> to vector<8x8xf32>
    %259 = vector.shape_cast %256 : vector<8x8xf32> to vector<1x8x8xf32>
    tpu.vector_store %arg35[%c3_123, %c0_124, %c0_125], %259 {strides = array<i32>} : memref<4x8x8xf32, #tpu.memory_space<vmem>>, vector<1x8x8xf32>,
    %c3_126 = arith.constant 3 : index
    %c0_127 = arith.constant 0 : index
    %c0_128 = arith.constant 0 : index
    %260 = vector.load %arg33[%c3_126, %c0_127, %c0_128] : memref<4x8x1xf32, #tpu.memory_space<vmem>>, vector<1x8x1xf32>
    %261 = vector.shape_cast %260 : vector<1x8x1xf32> to vector<8x1xf32>
    %262 = vector.shape_cast %235 : vector<8x1xf32> to vector<1x8x1xf32>
    tpu.vector_store %arg33[%c3_126, %c0_127, %c0_128], %262 {strides = array<i32>} : memref<4x8x1xf32, #tpu.memory_space<vmem>>, vector<1x8x1xf32>,
    %c0_i32_129 = arith.constant 0 : i32
    %263 = arith.cmpi eq, %arg2, %c0_i32_129 : i32
    %264 = arith.extui %263 : i1 to i32
    %c0_i32_130 = arith.constant 0 : i32
    %265 = arith.cmpi ne, %264, %c0_i32_130 : i32
    scf.if %265 {
      %c0_131 = arith.constant 0 : index
      %c0_132 = arith.constant 0 : index
      %c0_133 = arith.constant 0 : index
      %266 = vector.load %arg3[%c0_131, %c0_132, %c0_133] : memref<1x8x32xf32, #tpu.memory_space<vmem>>, vector<1x8x32xf32>
      %267 = vector.shape_cast %266 : vector<1x8x32xf32> to vector<8x32xf32>
      %c0_134 = arith.constant 0 : index
      %c0_135 = arith.constant 0 : index
      %268 = vector.load %arg18[%c0_134, %c0_135] : memref<32x32xbf16, #tpu.memory_space<vmem>>, vector<32x32xbf16>
      %cst_136 = arith.constant 0.000000e+00 : f32
      %269 = vector.broadcast %cst_136 : f32 to vector<8x32xf32>
      %c0_137 = arith.constant 0 : index
      %c0_138 = arith.constant 0 : index
      %c0_139 = arith.constant 0 : index
      %270 = vector.load %arg34[%c0_137, %c0_138, %c0_139] : memref<4x8x1xf32, #tpu.memory_space<vmem>>, vector<1x8x1xf32>
      %271 = vector.shape_cast %270 : vector<1x8x1xf32> to vector<8x1xf32>
      %272 = tpu.reciprocal %271 {approx = true} : vector<8x1xf32> -> vector<8x1xf32>
      %c0_140 = arith.constant 0 : index
      %c0_141 = arith.constant 0 : index
      %c0_142 = arith.constant 0 : index
      %273 = vector.load %arg35[%c0_140, %c0_141, %c0_142] : memref<4x8x8xf32, #tpu.memory_space<vmem>>, vector<1x8x8xf32>
      %274 = vector.shape_cast %273 : vector<1x8x8xf32> to vector<8x8xf32>
      %275 = vector.broadcast %272 : vector<8x1xf32> to vector<8x8xf32>
      %276 = arith.mulf %274, %275 : vector<8x8xf32>
      %277 = arith.truncf %276 : vector<8x8xf32> to vector<8x8xbf16>
      %278 = vector.extract_strided_slice %268 {offsets = [0, 0], sizes = [8, 32], strides = [1, 1]} : vector<32x32xbf16> to vector<8x32xbf16>
      %cst_143 = arith.constant dense<0.000000e+00> : vector<8x32xf32>
      %279 = tpu.matmul %277, %278, %cst_143 {dimension_numbers = #tpu.dot_dimension_numbers<[1], [0], [0], [1], [0, 0, 1, 1], [], []>} : vector<8x8xbf16>, vector<8x32xbf16>, vector<8x32xf32> -> vector<8x32xf32>
      %280 = arith.addf %269, %279 : vector<8x32xf32>
      %c1_144 = arith.constant 1 : index
      %c0_145 = arith.constant 0 : index
      %c0_146 = arith.constant 0 : index
      %281 = vector.load %arg34[%c1_144, %c0_145, %c0_146] : memref<4x8x1xf32, #tpu.memory_space<vmem>>, vector<1x8x1xf32>
      %282 = vector.shape_cast %281 : vector<1x8x1xf32> to vector<8x1xf32>
      %283 = tpu.reciprocal %282 {approx = true} : vector<8x1xf32> -> vector<8x1xf32>
      %c1_147 = arith.constant 1 : index
      %c0_148 = arith.constant 0 : index
      %c0_149 = arith.constant 0 : index
      %284 = vector.load %arg35[%c1_147, %c0_148, %c0_149] : memref<4x8x8xf32, #tpu.memory_space<vmem>>, vector<1x8x8xf32>
      %285 = vector.shape_cast %284 : vector<1x8x8xf32> to vector<8x8xf32>
      %286 = vector.broadcast %283 : vector<8x1xf32> to vector<8x8xf32>
      %287 = arith.mulf %285, %286 : vector<8x8xf32>
      %288 = arith.truncf %287 : vector<8x8xf32> to vector<8x8xbf16>
      %289 = vector.extract_strided_slice %268 {offsets = [8, 0], sizes = [8, 32], strides = [1, 1]} : vector<32x32xbf16> to vector<8x32xbf16>
      %cst_150 = arith.constant dense<0.000000e+00> : vector<8x32xf32>
      %290 = tpu.matmul %288, %289, %cst_150 {dimension_numbers = #tpu.dot_dimension_numbers<[1], [0], [0], [1], [0, 0, 1, 1], [], []>} : vector<8x8xbf16>, vector<8x32xbf16>, vector<8x32xf32> -> vector<8x32xf32>
      %291 = arith.addf %280, %290 : vector<8x32xf32>
      %c2_151 = arith.constant 2 : index
      %c0_152 = arith.constant 0 : index
      %c0_153 = arith.constant 0 : index
      %292 = vector.load %arg34[%c2_151, %c0_152, %c0_153] : memref<4x8x1xf32, #tpu.memory_space<vmem>>, vector<1x8x1xf32>
      %293 = vector.shape_cast %292 : vector<1x8x1xf32> to vector<8x1xf32>
      %294 = tpu.reciprocal %293 {approx = true} : vector<8x1xf32> -> vector<8x1xf32>
      %c2_154 = arith.constant 2 : index
      %c0_155 = arith.constant 0 : index
      %c0_156 = arith.constant 0 : index
      %295 = vector.load %arg35[%c2_154, %c0_155, %c0_156] : memref<4x8x8xf32, #tpu.memory_space<vmem>>, vector<1x8x8xf32>
      %296 = vector.shape_cast %295 : vector<1x8x8xf32> to vector<8x8xf32>
      %297 = vector.broadcast %294 : vector<8x1xf32> to vector<8x8xf32>
      %298 = arith.mulf %296, %297 : vector<8x8xf32>
      %299 = arith.truncf %298 : vector<8x8xf32> to vector<8x8xbf16>
      %300 = vector.extract_strided_slice %268 {offsets = [16, 0], sizes = [8, 32], strides = [1, 1]} : vector<32x32xbf16> to vector<8x32xbf16>
      %cst_157 = arith.constant dense<0.000000e+00> : vector<8x32xf32>
      %301 = tpu.matmul %299, %300, %cst_157 {dimension_numbers = #tpu.dot_dimension_numbers<[1], [0], [0], [1], [0, 0, 1, 1], [], []>} : vector<8x8xbf16>, vector<8x32xbf16>, vector<8x32xf32> -> vector<8x32xf32>
      %302 = arith.addf %291, %301 : vector<8x32xf32>
      %c3_158 = arith.constant 3 : index
      %c0_159 = arith.constant 0 : index
      %c0_160 = arith.constant 0 : index
      %303 = vector.load %arg34[%c3_158, %c0_159, %c0_160] : memref<4x8x1xf32, #tpu.memory_space<vmem>>, vector<1x8x1xf32>
      %304 = vector.shape_cast %303 : vector<1x8x1xf32> to vector<8x1xf32>
      %305 = tpu.reciprocal %304 {approx = true} : vector<8x1xf32> -> vector<8x1xf32>
      %c3_161 = arith.constant 3 : index
      %c0_162 = arith.constant 0 : index
      %c0_163 = arith.constant 0 : index
      %306 = vector.load %arg35[%c3_161, %c0_162, %c0_163] : memref<4x8x8xf32, #tpu.memory_space<vmem>>, vector<1x8x8xf32>
      %307 = vector.shape_cast %306 : vector<1x8x8xf32> to vector<8x8xf32>
      %308 = vector.broadcast %305 : vector<8x1xf32> to vector<8x8xf32>
      %309 = arith.mulf %307, %308 : vector<8x8xf32>
      %310 = arith.truncf %309 : vector<8x8xf32> to vector<8x8xbf16>
      %311 = vector.extract_strided_slice %268 {offsets = [24, 0], sizes = [8, 32], strides = [1, 1]} : vector<32x32xbf16> to vector<8x32xbf16>
      %cst_164 = arith.constant dense<0.000000e+00> : vector<8x32xf32>
      %312 = tpu.matmul %310, %311, %cst_164 {dimension_numbers = #tpu.dot_dimension_numbers<[1], [0], [0], [1], [0, 0, 1, 1], [], []>} : vector<8x8xbf16>, vector<8x32xbf16>, vector<8x32xf32> -> vector<8x32xf32>
      %313 = arith.addf %302, %312 : vector<8x32xf32>
      %314 = arith.addf %267, %313 : vector<8x32xf32>
      %c0_165 = arith.constant 0 : index
      %c0_166 = arith.constant 0 : index
      %315 = vector.load %arg19[%c0_165, %c0_166] : memref<1x32xf32, #tpu.memory_space<vmem>>, vector<1x32xf32>
      %316 = vector.broadcast %315 : vector<1x32xf32> to vector<8x32xf32>
      %317 = arith.addf %314, %316 : vector<8x32xf32>
      %c0_167 = arith.constant 0 : index
      %c0_168 = arith.constant 0 : index
      %318 = vector.load %arg20[%c0_167, %c0_168] : memref<1x32xf32, #tpu.memory_space<vmem>>, vector<1x32xf32>
      %c0_169 = arith.constant 0 : index
      %c0_170 = arith.constant 0 : index
      %319 = vector.load %arg21[%c0_169, %c0_170] : memref<1x32xf32, #tpu.memory_space<vmem>>, vector<1x32xf32>
      %cst_171 = arith.constant dense<0.000000e+00> : vector<8xf32>
      %320 = vector.multi_reduction <add>, %317, %cst_171 [1] : vector<8x32xf32> to vector<8xf32>
      %321 = vector.shape_cast %320 : vector<8xf32> to vector<8x1xf32>
      %cst_172 = arith.constant 3.200000e+01 : f32
      %322 = vector.broadcast %cst_172 : f32 to vector<8x1xf32>
      %323 = arith.divf %321, %322 : vector<8x1xf32>
      %324 = vector.broadcast %323 : vector<8x1xf32> to vector<8x32xf32>
      %325 = arith.subf %317, %324 : vector<8x32xf32>
      %326 = vector.broadcast %323 : vector<8x1xf32> to vector<8x32xf32>
      %327 = arith.subf %317, %326 : vector<8x32xf32>
      %328 = arith.mulf %325, %327 : vector<8x32xf32>
      %cst_173 = arith.constant dense<0.000000e+00> : vector<8xf32>
      %329 = vector.multi_reduction <add>, %328, %cst_173 [1] : vector<8x32xf32> to vector<8xf32>
      %330 = vector.shape_cast %329 : vector<8xf32> to vector<8x1xf32>
      %cst_174 = arith.constant 3.200000e+01 : f32
      %331 = vector.broadcast %cst_174 : f32 to vector<8x1xf32>
      %332 = arith.divf %330, %331 : vector<8x1xf32>
      %333 = vector.broadcast %323 : vector<8x1xf32> to vector<8x32xf32>
      %334 = arith.subf %317, %333 : vector<8x32xf32>
      %cst_175 = arith.constant 9.99999974E-6 : f32
      %335 = vector.broadcast %cst_175 : f32 to vector<8x1xf32>
      %336 = arith.addf %332, %335 : vector<8x1xf32>
      %337 = math.rsqrt %336 : vector<8x1xf32>
      %338 = vector.broadcast %337 : vector<8x1xf32> to vector<8x32xf32>
      %339 = arith.mulf %334, %338 : vector<8x32xf32>
      %340 = vector.broadcast %318 : vector<1x32xf32> to vector<8x32xf32>
      %341 = arith.mulf %339, %340 : vector<8x32xf32>
      %342 = vector.broadcast %319 : vector<1x32xf32> to vector<8x32xf32>
      %343 = arith.addf %341, %342 : vector<8x32xf32>
      %344 = arith.truncf %343 : vector<8x32xf32> to vector<8x32xbf16>
      %c0_176 = arith.constant 0 : index
      %c0_177 = arith.constant 0 : index
      %345 = vector.load %arg22[%c0_176, %c0_177] : memref<32x128xbf16, #tpu.memory_space<vmem>>, vector<32x128xbf16>
      %cst_178 = arith.constant dense<0.000000e+00> : vector<8x128xf32>
      %346 = tpu.matmul %344, %345, %cst_178 {dimension_numbers = #tpu.dot_dimension_numbers<[1], [0], [0], [1], [0, 0, 1, 1], [], []>} : vector<8x32xbf16>, vector<32x128xbf16>, vector<8x128xf32> -> vector<8x128xf32>
      %c0_179 = arith.constant 0 : index
      %c0_180 = arith.constant 0 : index
      %347 = vector.load %arg23[%c0_179, %c0_180] : memref<1x128xf32, #tpu.memory_space<vmem>>, vector<1x128xf32>
      %348 = vector.broadcast %347 : vector<1x128xf32> to vector<8x128xf32>
      %349 = arith.addf %346, %348 : vector<8x128xf32>
      %cst_181 = arith.constant 0.000000e+00 : f32
      %350 = vector.broadcast %cst_181 : f32 to vector<8x128xf32>
      %351 = arith.maximumf %349, %350 : vector<8x128xf32>
      %352 = arith.truncf %351 : vector<8x128xf32> to vector<8x128xbf16>
      %c0_182 = arith.constant 0 : index
      %c0_183 = arith.constant 0 : index
      %353 = vector.load %arg24[%c0_182, %c0_183] : memref<128x32xbf16, #tpu.memory_space<vmem>>, vector<128x32xbf16>
      %cst_184 = arith.constant dense<0.000000e+00> : vector<8x32xf32>
      %354 = tpu.matmul %352, %353, %cst_184 {dimension_numbers = #tpu.dot_dimension_numbers<[1], [0], [0], [1], [0, 0, 1, 1], [], []>} : vector<8x128xbf16>, vector<128x32xbf16>, vector<8x32xf32> -> vector<8x32xf32>
      %355 = arith.addf %317, %354 : vector<8x32xf32>
      %c0_185 = arith.constant 0 : index
      %c0_186 = arith.constant 0 : index
      %356 = vector.load %arg25[%c0_185, %c0_186] : memref<1x32xf32, #tpu.memory_space<vmem>>, vector<1x32xf32>
      %357 = vector.broadcast %356 : vector<1x32xf32> to vector<8x32xf32>
      %358 = arith.addf %355, %357 : vector<8x32xf32>
      %c0_187 = arith.constant 0 : index
      %c0_188 = arith.constant 0 : index
      %c0_189 = arith.constant 0 : index
      %359 = vector.load %arg30[%c0_187, %c0_188, %c0_189] : memref<1x8x32xf32, #tpu.memory_space<vmem>>, vector<1x8x32xf32>
      %360 = vector.shape_cast %359 : vector<1x8x32xf32> to vector<8x32xf32>
      %361 = vector.shape_cast %358 : vector<8x32xf32> to vector<1x8x32xf32>
      tpu.vector_store %arg30[%c0_187, %c0_188, %c0_189], %361 {strides = array<i32>} : memref<1x8x32xf32, #tpu.memory_space<vmem>>, vector<1x8x32xf32>,
      %c0_190 = arith.constant 0 : index
      %c0_191 = arith.constant 0 : index
      %362 = vector.load %arg26[%c0_190, %c0_191] : memref<1x32xf32, #tpu.memory_space<vmem>>, vector<1x32xf32>
      %c0_192 = arith.constant 0 : index
      %c0_193 = arith.constant 0 : index
      %363 = vector.load %arg27[%c0_192, %c0_193] : memref<1x32xf32, #tpu.memory_space<vmem>>, vector<1x32xf32>
      %cst_194 = arith.constant dense<0.000000e+00> : vector<8xf32>
      %364 = vector.multi_reduction <add>, %358, %cst_194 [1] : vector<8x32xf32> to vector<8xf32>
      %365 = vector.shape_cast %364 : vector<8xf32> to vector<8x1xf32>
      %cst_195 = arith.constant 3.200000e+01 : f32
      %366 = vector.broadcast %cst_195 : f32 to vector<8x1xf32>
      %367 = arith.divf %365, %366 : vector<8x1xf32>
      %368 = vector.broadcast %367 : vector<8x1xf32> to vector<8x32xf32>
      %369 = arith.subf %358, %368 : vector<8x32xf32>
      %370 = vector.broadcast %367 : vector<8x1xf32> to vector<8x32xf32>
      %371 = arith.subf %358, %370 : vector<8x32xf32>
      %372 = arith.mulf %369, %371 : vector<8x32xf32>
      %cst_196 = arith.constant dense<0.000000e+00> : vector<8xf32>
      %373 = vector.multi_reduction <add>, %372, %cst_196 [1] : vector<8x32xf32> to vector<8xf32>
      %374 = vector.shape_cast %373 : vector<8xf32> to vector<8x1xf32>
      %cst_197 = arith.constant 3.200000e+01 : f32
      %375 = vector.broadcast %cst_197 : f32 to vector<8x1xf32>
      %376 = arith.divf %374, %375 : vector<8x1xf32>
      %377 = vector.broadcast %367 : vector<8x1xf32> to vector<8x32xf32>
      %378 = arith.subf %358, %377 : vector<8x32xf32>
      %cst_198 = arith.constant 9.99999974E-6 : f32
      %379 = vector.broadcast %cst_198 : f32 to vector<8x1xf32>
      %380 = arith.addf %376, %379 : vector<8x1xf32>
      %381 = math.rsqrt %380 : vector<8x1xf32>
      %382 = vector.broadcast %381 : vector<8x1xf32> to vector<8x32xf32>
      %383 = arith.mulf %378, %382 : vector<8x32xf32>
      %384 = vector.broadcast %362 : vector<1x32xf32> to vector<8x32xf32>
      %385 = arith.mulf %383, %384 : vector<8x32xf32>
      %386 = vector.broadcast %363 : vector<1x32xf32> to vector<8x32xf32>
      %387 = arith.addf %385, %386 : vector<8x32xf32>
      %388 = arith.truncf %387 : vector<8x32xf32> to vector<8x32xbf16>
      %c0_199 = arith.constant 0 : index
      %c0_200 = arith.constant 0 : index
      %389 = vector.load %arg28[%c0_199, %c0_200] : memref<32x8xbf16, #tpu.memory_space<vmem>>, vector<32x8xbf16>
      %cst_201 = arith.constant dense<0.000000e+00> : vector<8x8xf32>
      %390 = tpu.matmul %388, %389, %cst_201 {dimension_numbers = #tpu.dot_dimension_numbers<[1], [0], [0], [1], [0, 0, 1, 1], [], []>} : vector<8x32xbf16>, vector<32x8xbf16>, vector<8x8xf32> -> vector<8x8xf32>
      %c0_202 = arith.constant 0 : index
      %c0_203 = arith.constant 0 : index
      %391 = vector.load %arg29[%c0_202, %c0_203] : memref<1x8xf32, #tpu.memory_space<vmem>>, vector<1x8xf32>
      %392 = vector.broadcast %391 : vector<1x8xf32> to vector<8x8xf32>
      %393 = arith.addf %390, %392 : vector<8x8xf32>
      %c0_204 = arith.constant 0 : index
      %c0_205 = arith.constant 0 : index
      %c0_206 = arith.constant 0 : index
      %394 = vector.load %arg31[%c0_204, %c0_205, %c0_206] : memref<1x8x8xf32, #tpu.memory_space<vmem>>, vector<1x8x8xf32>
      %395 = vector.shape_cast %394 : vector<1x8x8xf32> to vector<8x8xf32>
      %396 = vector.shape_cast %393 : vector<8x8xf32> to vector<1x8x8xf32>
      tpu.vector_store %arg31[%c0_204, %c0_205, %c0_206], %396 {strides = array<i32>} : memref<1x8x8xf32, #tpu.memory_space<vmem>>, vector<1x8x8xf32>,
    } else {
    }
    return
  }
  func.func @transform_0(%arg0: i32, %arg1: i32, %arg2: i32) -> (i32, i32, i32) {
    %c0_i32 = arith.constant 0 : i32
    %c0_i32_0 = arith.constant 0 : i32
    return %arg0, %arg1, %c0_i32 : i32, i32, i32
  }
  func.func @transform_1(%arg0: i32, %arg1: i32, %arg2: i32) -> (i32, i32, i32) {
    %c0_i32 = arith.constant 0 : i32
    %c0_i32_0 = arith.constant 0 : i32
    return %arg0, %arg2, %c0_i32 : i32, i32, i32
  }
  func.func @transform_2(%arg0: i32, %arg1: i32, %arg2: i32) -> (i32, i32, i32, i32) {
    %c0_i32 = arith.constant 0 : i32
    %c0_i32_0 = arith.constant 0 : i32
    return %arg0, %arg1, %arg2, %c0_i32 : i32, i32, i32, i32
  }
  func.func @transform_3(%arg0: i32, %arg1: i32, %arg2: i32) -> (i32, i32, i32) {
    %c0_i32 = arith.constant 0 : i32
    %c0_i32_0 = arith.constant 0 : i32
    return %arg0, %arg1, %c0_i32 : i32, i32, i32
  }
  func.func @transform_4(%arg0: i32, %arg1: i32, %arg2: i32) -> (i32, i32, i32) {
    %c0_i32 = arith.constant 0 : i32
    %c0_i32_0 = arith.constant 0 : i32
    return %arg0, %arg2, %c0_i32 : i32, i32, i32
  }
  func.func @transform_5(%arg0: i32, %arg1: i32, %arg2: i32) -> (i32, i32) {
    %c0_i32 = arith.constant 0 : i32
    %c0_i32_0 = arith.constant 0 : i32
    %c0_i32_1 = arith.constant 0 : i32
    return %c0_i32, %c0_i32_0 : i32, i32
  }
  func.func @transform_6(%arg0: i32, %arg1: i32, %arg2: i32) -> (i32, i32) {
    %c0_i32 = arith.constant 0 : i32
    %c0_i32_0 = arith.constant 0 : i32
    %c0_i32_1 = arith.constant 0 : i32
    return %c0_i32, %c0_i32_0 : i32, i32
  }
  func.func @transform_7(%arg0: i32, %arg1: i32, %arg2: i32) -> (i32, i32) {
    %c0_i32 = arith.constant 0 : i32
    %c0_i32_0 = arith.constant 0 : i32
    %c0_i32_1 = arith.constant 0 : i32
    return %c0_i32, %c0_i32_0 : i32, i32
  }
  func.func @transform_8(%arg0: i32, %arg1: i32, %arg2: i32) -> (i32, i32) {
    %c0_i32 = arith.constant 0 : i32
    %c0_i32_0 = arith.constant 0 : i32
    %c0_i32_1 = arith.constant 0 : i32
    return %c0_i32, %c0_i32_0 : i32, i32
  }
  func.func @transform_9(%arg0: i32, %arg1: i32, %arg2: i32) -> (i32, i32) {
    %c0_i32 = arith.constant 0 : i32
    %c0_i32_0 = arith.constant 0 : i32
    %c0_i32_1 = arith.constant 0 : i32
    return %c0_i32, %c0_i32_0 : i32, i32
  }
  func.func @transform_10(%arg0: i32, %arg1: i32, %arg2: i32) -> (i32, i32) {
    %c0_i32 = arith.constant 0 : i32
    %c0_i32_0 = arith.constant 0 : i32
    %c0_i32_1 = arith.constant 0 : i32
    return %c0_i32, %c0_i32_0 : i32, i32
  }
  func.func @transform_11(%arg0: i32, %arg1: i32, %arg2: i32) -> (i32, i32) {
    %c0_i32 = arith.constant 0 : i32
    %c0_i32_0 = arith.constant 0 : i32
    %c0_i32_1 = arith.constant 0 : i32
    return %c0_i32, %c0_i32_0 : i32, i32
  }
  func.func @transform_12(%arg0: i32, %arg1: i32, %arg2: i32) -> (i32, i32) {
    %c0_i32 = arith.constant 0 : i32
    %c0_i32_0 = arith.constant 0 : i32
    %c0_i32_1 = arith.constant 0 : i32
    return %c0_i32, %c0_i32_0 : i32, i32
  }
  func.func @transform_13(%arg0: i32, %arg1: i32, %arg2: i32) -> (i32, i32) {
    %c0_i32 = arith.constant 0 : i32
    %c0_i32_0 = arith.constant 0 : i32
    %c0_i32_1 = arith.constant 0 : i32
    return %c0_i32, %c0_i32_0 : i32, i32
  }
  func.func @transform_14(%arg0: i32, %arg1: i32, %arg2: i32) -> (i32, i32) {
    %c0_i32 = arith.constant 0 : i32
    %c0_i32_0 = arith.constant 0 : i32
    %c0_i32_1 = arith.constant 0 : i32
    return %c0_i32, %c0_i32_0 : i32, i32
  }
  func.func @transform_15(%arg0: i32, %arg1: i32, %arg2: i32) -> (i32, i32) {
    %c0_i32 = arith.constant 0 : i32
    %c0_i32_0 = arith.constant 0 : i32
    %c0_i32_1 = arith.constant 0 : i32
    return %c0_i32, %c0_i32_0 : i32, i32
  }
  func.func @transform_16(%arg0: i32, %arg1: i32, %arg2: i32) -> (i32, i32) {
    %c0_i32 = arith.constant 0 : i32
    %c0_i32_0 = arith.constant 0 : i32
    %c0_i32_1 = arith.constant 0 : i32
    return %c0_i32, %c0_i32_0 : i32, i32
  }
  func.func @transform_17(%arg0: i32, %arg1: i32, %arg2: i32) -> (i32, i32) {
    %c0_i32 = arith.constant 0 : i32
    %c0_i32_0 = arith.constant 0 : i32
    %c0_i32_1 = arith.constant 0 : i32
    return %c0_i32, %c0_i32_0 : i32, i32
  }
  func.func @transform_18(%arg0: i32, %arg1: i32, %arg2: i32) -> (i32, i32) {
    %c0_i32 = arith.constant 0 : i32
    %c0_i32_0 = arith.constant 0 : i32
    %c0_i32_1 = arith.constant 0 : i32
    return %c0_i32, %c0_i32_0 : i32, i32
  }
  func.func @transform_19(%arg0: i32, %arg1: i32, %arg2: i32) -> (i32, i32) {
    %c0_i32 = arith.constant 0 : i32
    %c0_i32_0 = arith.constant 0 : i32
    %c0_i32_1 = arith.constant 0 : i32
    return %c0_i32, %c0_i32_0 : i32, i32
  }
  func.func @transform_20(%arg0: i32, %arg1: i32, %arg2: i32) -> (i32, i32) {
    %c0_i32 = arith.constant 0 : i32
    %c0_i32_0 = arith.constant 0 : i32
    %c0_i32_1 = arith.constant 0 : i32
    return %c0_i32, %c0_i32_0 : i32, i32
  }
  func.func @transform_21(%arg0: i32, %arg1: i32, %arg2: i32) -> (i32, i32) {
    %c0_i32 = arith.constant 0 : i32
    %c0_i32_0 = arith.constant 0 : i32
    %c0_i32_1 = arith.constant 0 : i32
    return %c0_i32, %c0_i32_0 : i32, i32
  }
  func.func @transform_22(%arg0: i32, %arg1: i32, %arg2: i32) -> (i32, i32) {
    %c0_i32 = arith.constant 0 : i32
    %c0_i32_0 = arith.constant 0 : i32
    %c0_i32_1 = arith.constant 0 : i32
    return %c0_i32, %c0_i32_0 : i32, i32
  }
  func.func @transform_23(%arg0: i32, %arg1: i32, %arg2: i32) -> (i32, i32) {
    %c0_i32 = arith.constant 0 : i32
    %c0_i32_0 = arith.constant 0 : i32
    %c0_i32_1 = arith.constant 0 : i32
    return %c0_i32, %c0_i32_0 : i32, i32
  }
  func.func @transform_24(%arg0: i32, %arg1: i32, %arg2: i32) -> (i32, i32) {
    %c0_i32 = arith.constant 0 : i32
    %c0_i32_0 = arith.constant 0 : i32
    %c0_i32_1 = arith.constant 0 : i32
    return %c0_i32, %c0_i32_0 : i32, i32
  }
  func.func @transform_25(%arg0: i32, %arg1: i32, %arg2: i32) -> (i32, i32) {
    %c0_i32 = arith.constant 0 : i32
    %c0_i32_0 = arith.constant 0 : i32
    %c0_i32_1 = arith.constant 0 : i32
    return %c0_i32, %c0_i32_0 : i32, i32
  }
  func.func @transform_26(%arg0: i32, %arg1: i32, %arg2: i32) -> (i32, i32) {
    %c0_i32 = arith.constant 0 : i32
    %c0_i32_0 = arith.constant 0 : i32
    %c0_i32_1 = arith.constant 0 : i32
    return %c0_i32, %c0_i32_0 : i32, i32
  }
  func.func @transform_27(%arg0: i32, %arg1: i32, %arg2: i32) -> (i32, i32, i32) {
    %c0_i32 = arith.constant 0 : i32
    %c0_i32_0 = arith.constant 0 : i32
    return %arg0, %arg1, %c0_i32 : i32, i32, i32
  }
  func.func @transform_28(%arg0: i32, %arg1: i32, %arg2: i32) -> (i32, i32, i32) {
    %c0_i32 = arith.constant 0 : i32
    %c0_i32_0 = arith.constant 0 : i32
    return %arg0, %arg1, %c0_i32 : i32, i32, i32
  }
}

module attributes {stable_mosaic.version = 11 : i64} {
  func.func @kern(%arg0: i32, %arg1: memref<16x32xf32, #tpu.memory_space<vmem>>, %arg2: memref<32x16xbf16, #tpu.memory_space<vmem>>, %arg3: memref<1x16xf32, #tpu.memory_space<vmem>>, %arg4: memref<16x16xf32, #tpu.memory_space<vmem>>) attributes {dimension_semantics = [#tpu.dimension_semantics<parallel>], iteration_bounds = array<i64: 1>, scalar_prefetch = 0 : i64, scratch_operands = 0 : i64, tpu.core_type = #tpu.core_type<tc>, window_params = [{transform_indices = @transform_0, window_bounds = array<i64: 16, 32>}, {pipeline_mode = #tpu.pipeline_mode<synchronous>, transform_indices = @transform_1, window_bounds = array<i64: 32, 16>}, {pipeline_mode = #tpu.pipeline_mode<synchronous>, transform_indices = @transform_2, window_bounds = array<i64: 1, 16>}, {transform_indices = @transform_3, window_bounds = array<i64: 16, 16>}]} {
    %c0 = arith.constant 0 : index
    %c0_0 = arith.constant 0 : index
    %0 = vector.load %arg1[%c0, %c0_0] : memref<16x32xf32, #tpu.memory_space<vmem>>, vector<16x32xf32>
    %1 = arith.truncf %0 : vector<16x32xf32> to vector<16x32xbf16>
    %c0_1 = arith.constant 0 : index
    %c0_2 = arith.constant 0 : index
    %2 = vector.load %arg2[%c0_1, %c0_2] : memref<32x16xbf16, #tpu.memory_space<vmem>>, vector<32x16xbf16>
    %cst = arith.constant dense<0.000000e+00> : vector<16x16xf32>
    %3 = tpu.matmul %1, %2, %cst {dimension_numbers = #tpu.dot_dimension_numbers<[1], [0], [0], [1], [0, 0, 1, 1], [], []>} : vector<16x32xbf16>, vector<32x16xbf16>, vector<16x16xf32> -> vector<16x16xf32>
    %c0_3 = arith.constant 0 : index
    %c0_4 = arith.constant 0 : index
    %4 = vector.load %arg3[%c0_3, %c0_4] : memref<1x16xf32, #tpu.memory_space<vmem>>, vector<1x16xf32>
    %5 = vector.broadcast %4 : vector<1x16xf32> to vector<16x16xf32>
    %6 = arith.addf %3, %5 : vector<16x16xf32>
    %c0_5 = arith.constant 0 : index
    %c0_6 = arith.constant 0 : index
    %7 = vector.load %arg4[%c0_5, %c0_6] : memref<16x16xf32, #tpu.memory_space<vmem>>, vector<16x16xf32>
    tpu.vector_store %arg4[%c0_5, %c0_6], %6 {strides = array<i32>} : memref<16x16xf32, #tpu.memory_space<vmem>>, vector<16x16xf32>,
    return
  }
  func.func @transform_0(%arg0: i32) -> (i32, i32) {
    %c0_i32 = arith.constant 0 : i32
    %c0_i32_0 = arith.constant 0 : i32
    return %arg0, %c0_i32 : i32, i32
  }
  func.func @transform_1(%arg0: i32) -> (i32, i32) {
    %c0_i32 = arith.constant 0 : i32
    %c0_i32_0 = arith.constant 0 : i32
    %c0_i32_1 = arith.constant 0 : i32
    return %c0_i32, %c0_i32_0 : i32, i32
  }
  func.func @transform_2(%arg0: i32) -> (i32, i32) {
    %c0_i32 = arith.constant 0 : i32
    %c0_i32_0 = arith.constant 0 : i32
    %c0_i32_1 = arith.constant 0 : i32
    return %c0_i32, %c0_i32_0 : i32, i32
  }
  func.func @transform_3(%arg0: i32) -> (i32, i32) {
    %c0_i32 = arith.constant 0 : i32
    %c0_i32_0 = arith.constant 0 : i32
    return %arg0, %c0_i32 : i32, i32
  }
}

module attributes {stable_mosaic.version = 11 : i64} {
  func.func @kern(%arg0: i32, %arg1: memref<16x16xf32, #tpu.memory_space<vmem>>, %arg2: memref<1x16xf32, #tpu.memory_space<vmem>>, %arg3: memref<1x16xf32, #tpu.memory_space<vmem>>, %arg4: memref<16x9xbf16, #tpu.memory_space<vmem>>, %arg5: memref<1x9xf32, #tpu.memory_space<vmem>>, %arg6: memref<16x16xf32, #tpu.memory_space<vmem>>, %arg7: memref<16x9xf32, #tpu.memory_space<vmem>>) attributes {dimension_semantics = [#tpu.dimension_semantics<parallel>], iteration_bounds = array<i64: 1>, scalar_prefetch = 0 : i64, scratch_operands = 0 : i64, tpu.core_type = #tpu.core_type<tc>, window_params = [{transform_indices = @transform_0, window_bounds = array<i64: 16, 16>}, {pipeline_mode = #tpu.pipeline_mode<synchronous>, transform_indices = @transform_1, window_bounds = array<i64: 1, 16>}, {pipeline_mode = #tpu.pipeline_mode<synchronous>, transform_indices = @transform_2, window_bounds = array<i64: 1, 16>}, {pipeline_mode = #tpu.pipeline_mode<synchronous>, transform_indices = @transform_3, window_bounds = array<i64: 16, 9>}, {pipeline_mode = #tpu.pipeline_mode<synchronous>, transform_indices = @transform_4, window_bounds = array<i64: 1, 9>}, {transform_indices = @transform_5, window_bounds = array<i64: 16, 16>}, {transform_indices = @transform_6, window_bounds = array<i64: 16, 9>}]} {
    %c0 = arith.constant 0 : index
    %c0_0 = arith.constant 0 : index
    %0 = vector.load %arg1[%c0, %c0_0] : memref<16x16xf32, #tpu.memory_space<vmem>>, vector<16x16xf32>
    %c0_1 = arith.constant 0 : index
    %c0_2 = arith.constant 0 : index
    %1 = vector.load %arg2[%c0_1, %c0_2] : memref<1x16xf32, #tpu.memory_space<vmem>>, vector<1x16xf32>
    %c0_3 = arith.constant 0 : index
    %c0_4 = arith.constant 0 : index
    %2 = vector.load %arg3[%c0_3, %c0_4] : memref<1x16xf32, #tpu.memory_space<vmem>>, vector<1x16xf32>
    %cst = arith.constant dense<0.000000e+00> : vector<16xf32>
    %3 = vector.multi_reduction <add>, %0, %cst [1] : vector<16x16xf32> to vector<16xf32>
    %4 = vector.shape_cast %3 : vector<16xf32> to vector<16x1xf32>
    %cst_5 = arith.constant 1.600000e+01 : f32
    %5 = vector.broadcast %cst_5 : f32 to vector<16x1xf32>
    %6 = arith.divf %4, %5 : vector<16x1xf32>
    %7 = vector.broadcast %6 : vector<16x1xf32> to vector<16x16xf32>
    %8 = arith.subf %0, %7 : vector<16x16xf32>
    %9 = vector.broadcast %6 : vector<16x1xf32> to vector<16x16xf32>
    %10 = arith.subf %0, %9 : vector<16x16xf32>
    %11 = arith.mulf %8, %10 : vector<16x16xf32>
    %cst_6 = arith.constant dense<0.000000e+00> : vector<16xf32>
    %12 = vector.multi_reduction <add>, %11, %cst_6 [1] : vector<16x16xf32> to vector<16xf32>
    %13 = vector.shape_cast %12 : vector<16xf32> to vector<16x1xf32>
    %cst_7 = arith.constant 1.600000e+01 : f32
    %14 = vector.broadcast %cst_7 : f32 to vector<16x1xf32>
    %15 = arith.divf %13, %14 : vector<16x1xf32>
    %16 = vector.broadcast %6 : vector<16x1xf32> to vector<16x16xf32>
    %17 = arith.subf %0, %16 : vector<16x16xf32>
    %cst_8 = arith.constant 9.99999974E-6 : f32
    %18 = vector.broadcast %cst_8 : f32 to vector<16x1xf32>
    %19 = arith.addf %15, %18 : vector<16x1xf32>
    %20 = math.rsqrt %19 : vector<16x1xf32>
    %21 = vector.broadcast %20 : vector<16x1xf32> to vector<16x16xf32>
    %22 = arith.mulf %17, %21 : vector<16x16xf32>
    %23 = vector.broadcast %1 : vector<1x16xf32> to vector<16x16xf32>
    %24 = arith.mulf %22, %23 : vector<16x16xf32>
    %25 = vector.broadcast %2 : vector<1x16xf32> to vector<16x16xf32>
    %26 = arith.addf %24, %25 : vector<16x16xf32>
    %27 = arith.truncf %26 : vector<16x16xf32> to vector<16x16xbf16>
    %c0_9 = arith.constant 0 : index
    %c0_10 = arith.constant 0 : index
    %28 = vector.load %arg4[%c0_9, %c0_10] : memref<16x9xbf16, #tpu.memory_space<vmem>>, vector<16x9xbf16>
    %cst_11 = arith.constant dense<0.000000e+00> : vector<16x9xf32>
    %29 = tpu.matmul %27, %28, %cst_11 {dimension_numbers = #tpu.dot_dimension_numbers<[1], [0], [0], [1], [0, 0, 1, 1], [], []>} : vector<16x16xbf16>, vector<16x9xbf16>, vector<16x9xf32> -> vector<16x9xf32>
    %c0_12 = arith.constant 0 : index
    %c0_13 = arith.constant 0 : index
    %30 = vector.load %arg5[%c0_12, %c0_13] : memref<1x9xf32, #tpu.memory_space<vmem>>, vector<1x9xf32>
    %31 = vector.broadcast %30 : vector<1x9xf32> to vector<16x9xf32>
    %32 = arith.addf %29, %31 : vector<16x9xf32>
    %cst_14 = arith.constant 1.000000e+01 : f32
    %33 = vector.broadcast %cst_14 : f32 to vector<16x9xf32>
    %34 = arith.mulf %32, %33 : vector<16x9xf32>
    %c0_15 = arith.constant 0 : index
    %c0_16 = arith.constant 0 : index
    %35 = vector.load %arg6[%c0_15, %c0_16] : memref<16x16xf32, #tpu.memory_space<vmem>>, vector<16x16xf32>
    tpu.vector_store %arg6[%c0_15, %c0_16], %26 {strides = array<i32>} : memref<16x16xf32, #tpu.memory_space<vmem>>, vector<16x16xf32>,
    %c0_17 = arith.constant 0 : index
    %c0_18 = arith.constant 0 : index
    %36 = vector.load %arg7[%c0_17, %c0_18] : memref<16x9xf32, #tpu.memory_space<vmem>>, vector<16x9xf32>
    tpu.vector_store %arg7[%c0_17, %c0_18], %34 {strides = array<i32>} : memref<16x9xf32, #tpu.memory_space<vmem>>, vector<16x9xf32>,
    return
  }
  func.func @transform_0(%arg0: i32) -> (i32, i32) {
    %c0_i32 = arith.constant 0 : i32
    %c0_i32_0 = arith.constant 0 : i32
    return %arg0, %c0_i32 : i32, i32
  }
  func.func @transform_1(%arg0: i32) -> (i32, i32) {
    %c0_i32 = arith.constant 0 : i32
    %c0_i32_0 = arith.constant 0 : i32
    %c0_i32_1 = arith.constant 0 : i32
    return %c0_i32, %c0_i32_0 : i32, i32
  }
  func.func @transform_2(%arg0: i32) -> (i32, i32) {
    %c0_i32 = arith.constant 0 : i32
    %c0_i32_0 = arith.constant 0 : i32
    %c0_i32_1 = arith.constant 0 : i32
    return %c0_i32, %c0_i32_0 : i32, i32
  }
  func.func @transform_3(%arg0: i32) -> (i32, i32) {
    %c0_i32 = arith.constant 0 : i32
    %c0_i32_0 = arith.constant 0 : i32
    %c0_i32_1 = arith.constant 0 : i32
    return %c0_i32, %c0_i32_0 : i32, i32
  }
  func.func @transform_4(%arg0: i32) -> (i32, i32) {
    %c0_i32 = arith.constant 0 : i32
    %c0_i32_0 = arith.constant 0 : i32
    %c0_i32_1 = arith.constant 0 : i32
    return %c0_i32, %c0_i32_0 : i32, i32
  }
  func.func @transform_5(%arg0: i32) -> (i32, i32) {
    %c0_i32 = arith.constant 0 : i32
    %c0_i32_0 = arith.constant 0 : i32
    return %arg0, %c0_i32 : i32, i32
  }
  func.func @transform_6(%arg0: i32) -> (i32, i32) {
    %c0_i32 = arith.constant 0 : i32
    %c0_i32_0 = arith.constant 0 : i32
    return %arg0, %c0_i32 : i32, i32
  }
}

module attributes {stable_mosaic.version = 11 : i64} {
  func.func @kern(%arg0: i32, %arg1: i32, %arg2: memref<1x8x8xf32, #tpu.memory_space<vmem>>, %arg3: memref<1x8x8xf32, #tpu.memory_space<vmem>>, %arg4: memref<1x8x8xi32, #tpu.memory_space<vmem>>) attributes {dimension_semantics = [#tpu.dimension_semantics<parallel>, #tpu.dimension_semantics<parallel>], iteration_bounds = array<i64: 2, 1>, scalar_prefetch = 0 : i64, scratch_operands = 0 : i64, tpu.core_type = #tpu.core_type<tc>, window_params = [{transform_indices = @transform_0, window_bounds = array<i64: 1, 8, 8>}, {transform_indices = @transform_1, window_bounds = array<i64: 1, 8, 8>}, {transform_indices = @transform_2, window_bounds = array<i64: 1, 8, 8>}]} {
    %c0 = arith.constant 0 : index
    %c0_0 = arith.constant 0 : index
    %c0_1 = arith.constant 0 : index
    %0 = vector.load %arg2[%c0, %c0_0, %c0_1] : memref<1x8x8xf32, #tpu.memory_space<vmem>>, vector<1x8x8xf32>
    %1 = vector.shape_cast %0 : vector<1x8x8xf32> to vector<8x8xf32>
    %c0_2 = arith.constant 0 : index
    %c0_3 = arith.constant 0 : index
    %c0_4 = arith.constant 0 : index
    %2 = vector.load %arg3[%c0_2, %c0_3, %c0_4] : memref<1x8x8xf32, #tpu.memory_space<vmem>>, vector<1x8x8xf32>
    %3 = vector.shape_cast %2 : vector<1x8x8xf32> to vector<8x8xf32>
    %4 = arith.mulf %1, %1 : vector<8x8xf32>
    %cst = arith.constant dense<0.000000e+00> : vector<8xf32>
    %5 = vector.multi_reduction <add>, %4, %cst [1] : vector<8x8xf32> to vector<8xf32>
    %6 = vector.shape_cast %5 : vector<8xf32> to vector<8x1xf32>
    %7 = arith.mulf %3, %3 : vector<8x8xf32>
    %cst_5 = arith.constant dense<0.000000e+00> : vector<8xf32>
    %8 = vector.multi_reduction <add>, %7, %cst_5 [1] : vector<8x8xf32> to vector<8xf32>
    %9 = vector.shape_cast %8 : vector<8xf32> to vector<8x1xf32>
    %10 = tpu.transpose %9, [1, 0] : vector<8x1xf32> -> vector<1x8xf32>
    %11 = vector.broadcast %6 : vector<8x1xf32> to vector<8x8xf32>
    %12 = vector.broadcast %10 : vector<1x8xf32> to vector<8x8xf32>
    %13 = arith.addf %11, %12 : vector<8x8xf32>
    %cst_6 = arith.constant dense<0.000000e+00> : vector<8x8xf32>
    %14 = tpu.matmul %1, %3, %cst_6 {dimension_numbers = #tpu.dot_dimension_numbers<[1], [1], [0], [0], [0, 0, 1, 0], [], []>} : vector<8x8xf32>, vector<8x8xf32>, vector<8x8xf32> -> vector<8x8xf32>
    %cst_7 = arith.constant 2.000000e+00 : f32
    %15 = vector.broadcast %cst_7 : f32 to vector<8x8xf32>
    %16 = arith.mulf %15, %14 : vector<8x8xf32>
    %17 = arith.subf %13, %16 : vector<8x8xf32>
    %c0_i32 = arith.constant 0 : i32
    %18 = vector.broadcast %c0_i32 : i32 to vector<8x8xi32>
    %cst_8 = arith.constant 11.390625 : f32
    %19 = vector.broadcast %cst_8 : f32 to vector<8x8xf32>
    %20 = arith.cmpf ogt, %17, %19 : vector<8x8xf32>
    %21 = arith.extui %20 : vector<8x8xi1> to vector<8x8xi32>
    %22 = arith.addi %18, %21 : vector<8x8xi32>
    %cst_9 = arith.constant 22.6539383 : f32
    %23 = vector.broadcast %cst_9 : f32 to vector<8x8xf32>
    %24 = arith.cmpf ogt, %17, %23 : vector<8x8xf32>
    %25 = arith.extui %24 : vector<8x8xi1> to vector<8x8xi32>
    %26 = arith.addi %22, %25 : vector<8x8xi32>
    %cst_10 = arith.constant 37.7515717 : f32
    %27 = vector.broadcast %cst_10 : f32 to vector<8x8xf32>
    %28 = arith.cmpf ogt, %17, %27 : vector<8x8xf32>
    %29 = arith.extui %28 : vector<8x8xi1> to vector<8x8xi32>
    %30 = arith.addi %26, %29 : vector<8x8xi32>
    %cst_11 = arith.constant 56.6835251 : f32
    %31 = vector.broadcast %cst_11 : f32 to vector<8x8xf32>
    %32 = arith.cmpf ogt, %17, %31 : vector<8x8xf32>
    %33 = arith.extui %32 : vector<8x8xi1> to vector<8x8xi32>
    %34 = arith.addi %30, %33 : vector<8x8xi32>
    %cst_12 = arith.constant 79.4497985 : f32
    %35 = vector.broadcast %cst_12 : f32 to vector<8x8xf32>
    %36 = arith.cmpf ogt, %17, %35 : vector<8x8xf32>
    %37 = arith.extui %36 : vector<8x8xi1> to vector<8x8xi32>
    %38 = arith.addi %34, %37 : vector<8x8xi32>
    %cst_13 = arith.constant 106.050385 : f32
    %39 = vector.broadcast %cst_13 : f32 to vector<8x8xf32>
    %40 = arith.cmpf ogt, %17, %39 : vector<8x8xf32>
    %41 = arith.extui %40 : vector<8x8xi1> to vector<8x8xi32>
    %42 = arith.addi %38, %41 : vector<8x8xi32>
    %cst_14 = arith.constant 136.485306 : f32
    %43 = vector.broadcast %cst_14 : f32 to vector<8x8xf32>
    %44 = arith.cmpf ogt, %17, %43 : vector<8x8xf32>
    %45 = arith.extui %44 : vector<8x8xi1> to vector<8x8xi32>
    %46 = arith.addi %42, %45 : vector<8x8xi32>
    %cst_15 = arith.constant 170.754532 : f32
    %47 = vector.broadcast %cst_15 : f32 to vector<8x8xf32>
    %48 = arith.cmpf ogt, %17, %47 : vector<8x8xf32>
    %49 = arith.extui %48 : vector<8x8xi1> to vector<8x8xi32>
    %50 = arith.addi %46, %49 : vector<8x8xi32>
    %cst_16 = arith.constant 208.858078 : f32
    %51 = vector.broadcast %cst_16 : f32 to vector<8x8xf32>
    %52 = arith.cmpf ogt, %17, %51 : vector<8x8xf32>
    %53 = arith.extui %52 : vector<8x8xi1> to vector<8x8xi32>
    %54 = arith.addi %50, %53 : vector<8x8xi32>
    %cst_17 = arith.constant 250.795944 : f32
    %55 = vector.broadcast %cst_17 : f32 to vector<8x8xf32>
    %56 = arith.cmpf ogt, %17, %55 : vector<8x8xf32>
    %57 = arith.extui %56 : vector<8x8xi1> to vector<8x8xi32>
    %58 = arith.addi %54, %57 : vector<8x8xi32>
    %cst_18 = arith.constant 296.568146 : f32
    %59 = vector.broadcast %cst_18 : f32 to vector<8x8xf32>
    %60 = arith.cmpf ogt, %17, %59 : vector<8x8xf32>
    %61 = arith.extui %60 : vector<8x8xi1> to vector<8x8xi32>
    %62 = arith.addi %58, %61 : vector<8x8xi32>
    %cst_19 = arith.constant 346.174652 : f32
    %63 = vector.broadcast %cst_19 : f32 to vector<8x8xf32>
    %64 = arith.cmpf ogt, %17, %63 : vector<8x8xf32>
    %65 = arith.extui %64 : vector<8x8xi1> to vector<8x8xi32>
    %66 = arith.addi %62, %65 : vector<8x8xi32>
    %cst_20 = arith.constant 399.615479 : f32
    %67 = vector.broadcast %cst_20 : f32 to vector<8x8xf32>
    %68 = arith.cmpf ogt, %17, %67 : vector<8x8xf32>
    %69 = arith.extui %68 : vector<8x8xi1> to vector<8x8xi32>
    %70 = arith.addi %66, %69 : vector<8x8xi32>
    %cst_21 = arith.constant 456.890625 : f32
    %71 = vector.broadcast %cst_21 : f32 to vector<8x8xf32>
    %72 = arith.cmpf ogt, %17, %71 : vector<8x8xf32>
    %73 = arith.extui %72 : vector<8x8xi1> to vector<8x8xi32>
    %74 = arith.addi %70, %73 : vector<8x8xi32>
    %c0_22 = arith.constant 0 : index
    %c0_23 = arith.constant 0 : index
    %c0_24 = arith.constant 0 : index
    %75 = vector.load %arg4[%c0_22, %c0_23, %c0_24] : memref<1x8x8xi32, #tpu.memory_space<vmem>>, vector<1x8x8xi32>
    %76 = vector.shape_cast %75 : vector<1x8x8xi32> to vector<8x8xi32>
    %77 = vector.shape_cast %74 : vector<8x8xi32> to vector<1x8x8xi32>
    tpu.vector_store %arg4[%c0_22, %c0_23, %c0_24], %77 {strides = array<i32>} : memref<1x8x8xi32, #tpu.memory_space<vmem>>, vector<1x8x8xi32>,
    return
  }
  func.func @transform_0(%arg0: i32, %arg1: i32) -> (i32, i32, i32) {
    %c0_i32 = arith.constant 0 : i32
    %c0_i32_0 = arith.constant 0 : i32
    return %arg0, %arg1, %c0_i32 : i32, i32, i32
  }
  func.func @transform_1(%arg0: i32, %arg1: i32) -> (i32, i32, i32) {
    %c0_i32 = arith.constant 0 : i32
    %c0_i32_0 = arith.constant 0 : i32
    %c0_i32_1 = arith.constant 0 : i32
    return %arg0, %c0_i32, %c0_i32_0 : i32, i32, i32
  }
  func.func @transform_2(%arg0: i32, %arg1: i32) -> (i32, i32, i32) {
    %c0_i32 = arith.constant 0 : i32
    %c0_i32_0 = arith.constant 0 : i32
    return %arg0, %arg1, %c0_i32 : i32, i32, i32
  }
}

module attributes {stable_mosaic.version = 11 : i64} {
  func.func @kern(%arg0: i32, %arg1: memref<128x16xbf16, #tpu.memory_space<vmem>>, %arg2: memref<16x8xbf16, #tpu.memory_space<vmem>>, %arg3: memref<1x8xf32, #tpu.memory_space<vmem>>, %arg4: memref<128x8xf32, #tpu.memory_space<vmem>>) attributes {dimension_semantics = [#tpu.dimension_semantics<parallel>], iteration_bounds = array<i64: 1>, scalar_prefetch = 0 : i64, scratch_operands = 0 : i64, tpu.core_type = #tpu.core_type<tc>, window_params = [{transform_indices = @transform_0, window_bounds = array<i64: 128, 16>}, {pipeline_mode = #tpu.pipeline_mode<synchronous>, transform_indices = @transform_1, window_bounds = array<i64: 16, 8>}, {pipeline_mode = #tpu.pipeline_mode<synchronous>, transform_indices = @transform_2, window_bounds = array<i64: 1, 8>}, {transform_indices = @transform_3, window_bounds = array<i64: 128, 8>}]} {
    %c0 = arith.constant 0 : index
    %c0_0 = arith.constant 0 : index
    %0 = vector.load %arg1[%c0, %c0_0] : memref<128x16xbf16, #tpu.memory_space<vmem>>, vector<128x16xbf16>
    %c0_1 = arith.constant 0 : index
    %c0_2 = arith.constant 0 : index
    %1 = vector.load %arg2[%c0_1, %c0_2] : memref<16x8xbf16, #tpu.memory_space<vmem>>, vector<16x8xbf16>
    %cst = arith.constant dense<0.000000e+00> : vector<128x8xf32>
    %2 = tpu.matmul %0, %1, %cst {dimension_numbers = #tpu.dot_dimension_numbers<[1], [0], [0], [1], [0, 0, 1, 1], [], []>} : vector<128x16xbf16>, vector<16x8xbf16>, vector<128x8xf32> -> vector<128x8xf32>
    %c0_3 = arith.constant 0 : index
    %c0_4 = arith.constant 0 : index
    %3 = vector.load %arg3[%c0_3, %c0_4] : memref<1x8xf32, #tpu.memory_space<vmem>>, vector<1x8xf32>
    %4 = vector.broadcast %3 : vector<1x8xf32> to vector<128x8xf32>
    %5 = arith.addf %2, %4 : vector<128x8xf32>
    %c0_5 = arith.constant 0 : index
    %c0_6 = arith.constant 0 : index
    %6 = vector.load %arg4[%c0_5, %c0_6] : memref<128x8xf32, #tpu.memory_space<vmem>>, vector<128x8xf32>
    tpu.vector_store %arg4[%c0_5, %c0_6], %5 {strides = array<i32>} : memref<128x8xf32, #tpu.memory_space<vmem>>, vector<128x8xf32>,
    return
  }
  func.func @transform_0(%arg0: i32) -> (i32, i32) {
    %c0_i32 = arith.constant 0 : i32
    %c0_i32_0 = arith.constant 0 : i32
    return %arg0, %c0_i32 : i32, i32
  }
  func.func @transform_1(%arg0: i32) -> (i32, i32) {
    %c0_i32 = arith.constant 0 : i32
    %c0_i32_0 = arith.constant 0 : i32
    %c0_i32_1 = arith.constant 0 : i32
    return %c0_i32, %c0_i32_0 : i32, i32
  }
  func.func @transform_2(%arg0: i32) -> (i32, i32) {
    %c0_i32 = arith.constant 0 : i32
    %c0_i32_0 = arith.constant 0 : i32
    %c0_i32_1 = arith.constant 0 : i32
    return %c0_i32, %c0_i32_0 : i32, i32
  }
  func.func @transform_3(%arg0: i32) -> (i32, i32) {
    %c0_i32 = arith.constant 0 : i32
    %c0_i32_0 = arith.constant 0 : i32
    return %arg0, %c0_i32 : i32, i32
  }
}

</mosaic_0001>

<bundles_post_ra>
// kernel: folding_trunk_forward.18
= control target key start
LH: loop header
LB: loop body
LE: loop exit
PB: predicated region body
PF: predicated region fallthrough
CT: control target
= control target key end

     0   :  { %vm23_vm0 = vcmask 261120   ;;  %v102_v4 = vmov 32.0   ;;  %s158_s1 = inlined_call_operand.vmem [shape: f32[16,32], index: 1, kind: input, shape index: {}]   ;;  %s159_s2 = inlined_call_operand.vmem [shape: f32[1,32], index: 2, kind: input, shape index: {}]   ;;  %s160_s3 = inlined_call_operand.vmem [shape: f32[1,32], index: 3, kind: input, shape index: {}]   ;;  %s161_s0 = inlined_call_operand.vmem [shape: f32[16,32], index: 0, kind: input, shape index: {}]   ;;  %s162_s4 = inlined_call_operand.vmem [shape: f32[16,32], index: 4, kind: output, shape index: {}]  }
   0x1   :  { %v17_v0 = vld [vmem:[%s158_s1] sm:$0xff]  ;;  %v18_v2 = vld [vmem:[%s158_s1 + $0x8] sm:$0xff]  ;;  %96 = vrcp.f32 %v102_v4 }
   0x2   :  { %v24_v1 = vsel %vm23_vm0, %v17_v0, 0.0  ;;  %v27_v3 = vsel %vm23_vm0, %v18_v2, 0.0  ;;  %v94_v35 = vld [vmem:[%s159_s2] ss:$0 sm:$0xff]  ;;  %v20_v50 = vld [vmem:[%s161_s0 + $0x8] sm:$0xff] }
   0x3   :  { %25 = vadd.xlane.f32.xlu0 %v24_v1  ;;  %v95_v38 = vld [vmem:[%s160_s3] ss:$0 sm:$0xff] }
   0x4   :  { %v19_v42 = vld [vmem:[%s161_s0] sm:$0xff] }
   0x7   :  { %v97_v5 = vpop.eup %96 }
   0x8   :  { %v31_v6 = vmul.f32 32.0, %v97_v5  ;;  %vm35_vm1 = vweird.f32 %v97_v5 }
   0xa   :  { %v32_v7 = vsub.f32 1.0, %v31_v6 }
   0xb   :  { %28 = vadd.xlane.f32.xlu0 %v27_v3 }
   0xc   :  { %v33_v8 = vmul.f32 %v97_v5, %v32_v7 }
   0xe   :  { %v34_v9 = vadd.f32 %v97_v5, %v33_v8 }
  0x10   :  { %v36_v10 = vsel %vm35_vm1, %v97_v5, %v34_v9 }
  0x76   :  { %v26_v11 = vpop.xlane.xlu0 %25 }
  0x77   :  { %v37_v12 = vmul.f32 %v36_v10, %v26_v11 }
  0x79   :  { %v39_v13 = vsub.f32 %v17_v0, %v37_v12 }
  0x7b   :  { %v41_v14 = vmul.f32 %v39_v13, %v39_v13 }
  0x7d   :  { %v43_v15 = vsel %vm23_vm0, %v41_v14, 0.0 }
  0x7e   :  { %44 = vadd.xlane.f32.xlu1 %v43_v15  ;;  %v29_v16 = vpop.xlane.xlu0 %28 }
  0x7f   :  { %v38_v17 = vmul.f32 %v36_v10, %v29_v16 }
  0x81   :  { %v40_v18 = vsub.f32 %v18_v2, %v38_v17 }
  0x83   :  { %v42_v19 = vmul.f32 %v40_v18, %v40_v18 }
  0x85   :  { %v46_v20 = vsel %vm23_vm0, %v42_v19, 0.0 }
  0x86   :  { %47 = vadd.xlane.f32.xlu1 %v46_v20 }
  0xf1   :  { %v45_v21 = vpop.xlane.xlu1 %44 }
  0xf2   :  { %v49_v22 = vmul.f32 %v45_v21, %v36_v10 }
  0xf4   :  { %v51_v23 = vadd.f32 1e-05, %v49_v22 }
  0xf6   :  { %98 = vrsqrt.f32 %v51_v23  ;;  %vm59_vm3 = vweird.f32 %v51_v23 }
  0xf9   :  { %v48_v24 = vpop.xlane.xlu1 %47 }
  0xfa   :  { %v50_v25 = vmul.f32 %v48_v24, %v36_v10 }
  0xfc   :  { %v99_v26 = vpop.eup %98  ;;  %v52_v27 = vadd.f32 1e-05, %v50_v25 }
  0xfd   :  { %v54_v28 = vmul.f32 %v99_v26, %v51_v23  ;;  %vm60_vm2 = vweird.f32 %v99_v26 }
  0xfe   :  { %100 = vrsqrt.f32 %v52_v27  ;;  %vm61_vm4 = vmor %vm59_vm3, %vm60_vm2  ;;  %vm69_vm6 = vweird.f32 %v52_v27 }
  0xff   :  { %v55_v29 = vmul.f32 %v99_v26, %v54_v28 }
 0x101   :  { %v56_v30 = vmul.f32 0.5, %v55_v29 }
 0x103   :  { %v57_v31 = vsub.f32 1.5, %v56_v30 }
 0x104   :  { %v101_v32 = vpop.eup %100 }
 0x105   :  { %v58_v33 = vmul.f32 %v99_v26, %v57_v31  ;;  %v64_v34 = vmul.f32 %v101_v32, %v52_v27  ;;  %vm70_vm5 = vweird.f32 %v101_v32 }
 0x106   :  { %vm71_vm7 = vmor %vm69_vm6, %vm70_vm5 }
 0x107   :  { %v62_v36 = vsel %vm61_vm4, %v99_v26, %v58_v33  ;;  %v65_v37 = vmul.f32 %v101_v32, %v64_v34 }
 0x108   :  { %v73_v39 = vmul.f32 %v62_v36, %v39_v13 }
 0x109   :  { %v66_v40 = vmul.f32 0.5, %v65_v37 }
 0x10a   :  { %v78_v41 = vmul.f32 %v94_v35, %v73_v39 }
 0x10b   :  { %v67_v43 = vsub.f32 1.5, %v66_v40 }
 0x10c   :  { %v83_v44 = vadd.f32 %v95_v38, %v78_v41 }
 0x10d   :  { %v68_v45 = vmul.f32 %v101_v32, %v67_v43 }
 0x10e   :  { %v85_v46 = vadd.f32 %v83_v44, %v19_v42 }
 0x10f   :  { %v72_v47 = vsel %vm71_vm7, %v101_v32, %v68_v45 }
 0x110   :  { %87 = vst.msk [vmem:[%s162_s4] sm:$0xff] %vm23_vm0, %v85_v46  ;;  %v74_v48 = vmul.f32 %v72_v47, %v40_v18 }
 0x112   :  { %v79_v49 = vmul.f32 %v94_v35, %v74_v48 }
 0x114   :  { %v84_v51 = vadd.f32 %v95_v38, %v79_v49 }
 0x116   :  { %v86_v52 = vadd.f32 %v84_v51, %v20_v50 }
 0x118   :  { %88 = vst.msk [vmem:[%s162_s4 + $0x8] sm:$0xff] %vm23_vm0, %v86_v52 }

// kernel: folding_trunk_forward.19
= control target key start
LH: loop header
LB: loop body
LE: loop exit
PB: predicated region body
PF: predicated region fallthrough
CT: control target
= control target key end

     0   :  { %s1140_s24 = smov 0   ;;  %s1142_s25 = smov 0   ;;  %s1497_s0 = inlined_call_operand.vmem [shape: f32[2,8,8,16], index: 0, kind: input, shape index: {}]   ;;  %s1498_s1 = inlined_call_operand.vmem [shape: bf16[2,8,8,16], index: 1, kind: input, shape index: {}]   ;;  %s1499_s2 = inlined_call_operand.vmem [shape: f32[1,16], index: 2, kind: input, shape index: {}]   ;;  %s1500_s3 = inlined_call_operand.vmem [shape: f32[1,16], index: 3, kind: input, shape index: {}]   ;;  %s1501_s4 = inlined_call_operand.vmem [shape: s32[2,8,8,1], index: 4, kind: input, shape index: {}]   ;;  %s1502_s5 = inlined_call_operand.vmem [shape: f32[15,16], index: 5, kind: input, shape index: {}]   ;;  %s1503_s6 = inlined_call_operand.vmem [shape: f32[1,8,8,16], index: 6, kind: input, shape index: {}]   ;;  %s1504_s7 = inlined_call_operand.vmem [shape: bf16[2,8,8,16], index: 7, kind: output, shape index: {}]  }
   0x1   :  { %s1144_s26 = smov 0  }
   0x2 LB: > { %s29_s27 = sadd.s32 1, %s1091_s25  ;;  %p966_p0 = scmp.ge.s32.totalorder %s1095_s26, 1  ;;  %s1095_s26 = sphi %s1144_s26, %s17_s26   ;;  %s1091_s25 = sphi %s1142_s25, %s1506_s25   ;;  %s1087_s24 = sphi %s1140_s24, %s1505_s24  }
   0x3   : > { %p31_p1 = scmp.ge.s32.totalorder %s29_s27, 2  ;;  %p303_p2 = scmp.lt.s32.totalorder %s1095_s26, 3 }
   0x5   : > { %s1508_s27 = smov (%p31_p1, %s29_s27), 0  ;;  %p304_p3 = pnand %p966_p0, %p303_p2 }
   0x6   : > { %p367_p4 = scmp.lt.s32.totalorder (!%p304_p3), %s1087_s24, 1 }
   0x7   : > { %307 = sbr.rel (%p304_p3) target bundleno = 371 (0x173), region = 48 }
   0xc   : > { %v1097_v0 = vmov 0   ;;  %s1510_s24 = smov (!%p367_p4, %s1087_s24), 1  ;;  %vm430_vm0 = vcmask 130048   ;;  %v695_v28 = vld [vmem:[%s1502_s5 + $0x8] sm:$0x7f]  ;;  %vm721_vm1 = vcmask 1046528   ;;  %v644_v31 = vlaneseq }
   0xd   : > { %1052 = vset.pattern.permute.xlu2 %v1097_v0  ;;  %1051 = vset.pattern.permute.xlu1 %v1097_v0  ;;  %s994_s28 = sshll.u32 %s1510_s24, 6  ;;  %s995_s9 = sshll.u32 %s1510_s24, 5  ;;  %v694_v30 = vld [vmem:[%s1502_s5] sm:$0xff]  ;;  %vm696_vm2 = vcmask 121856   ;;  %v1098_v36 = vmov 0.0   ;;  %v1099_v50 = vmov 16.0  }
   0xe   : > { %1050 = vset.pattern.permute.xlu0 %v1097_v0  ;;  %s394_s8 = scalar_lea.vmem %s1501_s4, %s994_s28  ;;  %s384_s12 = scalar_lea.vmem %s1498_s1, %s995_s9  ;;  %1018 = vmatpush.msk.msra.mxu2 %vm721_vm1, %v695_v28  ;;  %v645_v32 = vand.u32 127, %v644_v31  ;;  %1055 = vrcp.f32 %v1099_v50  ;;  %vm814_vm15 = vcmask 125952  }
   0xf   : > { %v641_v1 = vld [vmem:[%s394_s8 + $0x28] sm:$0xff]  ;;  %v640_v2 = vld [vmem:[%s394_s8 + $0x20] sm:$0xff]  ;;  %v643_v4 = vld [vmem:[%s394_s8 + $0x38] sm:$0xff]  ;;  %983 = vmatpush.msk.msra.mxu0 %vm721_vm1, %v695_v28  ;;  %1017 = vmatpush.msk.msra.mxu1 %vm721_vm1, %v695_v28  ;;  %s1333_s21 = scalar_lea.vmem %s1497_s0, %s994_s28  ;;  %s1397_s10 = scalar_lea.vmem %s1504_s7, %s995_s9 }
  0x10   : > { %v636_v3 = vld [vmem:[%s394_s8] sm:$0xff]  ;;  %662 = vperm.xlu2 %1052, %v641_v1   ;;  %659 = vperm.xlu0 %1050, %v640_v2   ;;  %v642_v5 = vld [vmem:[%s394_s8 + $0x30] sm:$0xff]  ;;  %v637_v7 = vld [vmem:[%s394_s8 + $0x8] sm:$0xff] }
  0x11   : > { %647 = vperm.xlu1 %1051, %v636_v3   ;;  %v638_v6 = vld [vmem:[%s394_s8 + $0x10] sm:$0xff]  ;;  %v639_v8 = vld [vmem:[%s394_s8 + $0x18] sm:$0xff]  ;;  %v1172_v9 = vld [vmem:[%s384_s12] sm:$0xff]   ;;  %1019 = vmatpush.msk.msra.mxu3 %vm721_vm1, %v695_v28 }
  0x12   : > { %v1000_v10 = vunpack.c.l.bf16 %v1172_v9  ;;  %v1178_v12 = vld [vmem:[%s384_s12 + $0x8] sm:$0xff]   ;;  %v1001_v14 = vunpack.c.h.bf16 %v1172_v9  ;;  %v1189_v18 = vld [vmem:[%s384_s12 + $0x10] sm:$0xff]   ;;  %v1194_v20 = vld [vmem:[%s384_s12 + $0x18] sm:$0xff]   ;;  %1021 = vmatpush.msra.mxu2 %v694_v30  ;;  %740 = vmatpush.msra.mxu0 %v694_v30 }
  0x13   : > { %v1005_v13 = vunpack.c.h.bf16 %v1178_v12  ;;  %v1004_v15 = vunpack.c.l.bf16 %v1178_v12  ;;  %v1008_v21 = vunpack.c.l.bf16 %v1189_v18  ;;  %v1009_v22 = vunpack.c.h.bf16 %v1189_v18  ;;  %1020 = vmatpush.msra.mxu1 %v694_v30  ;;  %1022 = vmatpush.msra.mxu3 %v694_v30 }
  0x14   : > { %v431_v11 = vsel %vm430_vm0, %v1000_v10, 0.0  ;;  %v434_v17 = vsel %vm430_vm0, %v1001_v14, 0.0  ;;  %v1012_v23 = vunpack.c.l.bf16 %v1194_v20  ;;  %v1013_v27 = vunpack.c.h.bf16 %v1194_v20  ;;  %v1056_v51 = vpop.eup %1055 }
  0x15   : > { %v440_v16 = vsel %vm430_vm0, %v1005_v13, 0.0  ;;  %v437_v19 = vsel %vm430_vm0, %v1004_v15, 0.0  ;;  %v443_v24 = vsel %vm430_vm0, %v1008_v21, 0.0  ;;  %v446_v25 = vsel %vm430_vm0, %v1009_v22, 0.0 }
  0x16   : > { %v449_v26 = vsel %vm430_vm0, %v1012_v23, 0.0  ;;  %v452_v29 = vsel %vm430_vm0, %v1013_v27, 0.0  ;;  %v456_v52 = vmul.f32 16.0, %v1056_v51  ;;  %vm460_vm11 = vweird.f32 %v1056_v51 }
  0x18   : > { %668 = vperm.xlu2 %1052, %v643_v4   ;;  %665 = vperm.xlu0 %1050, %v642_v5   ;;  %v457_v53 = vsub.f32 1.0, %v456_v52 }
  0x19   : > { %653 = vperm.xlu1 %1051, %v638_v6  }
  0x1a   : > { %v458_v54 = vmul.f32 %v1056_v51, %v457_v53 }
  0x1c   : > { %v459_v55 = vadd.f32 %v1056_v51, %v458_v54 }
  0x1e   : > { %v1226_v56 = vsel %vm460_vm11, %v1056_v51, %v459_v55 }
  0x20   : > { %650 = vperm.xlu0 %1050, %v637_v7  }
  0x21   : > { %656 = vperm.xlu1 %1051, %v639_v8  }
  0x41   : > { %432 = vadd.xlane.f32.xlu2 %v431_v11 }
  0x49   : > { %441 = vadd.xlane.f32.xlu2 %v440_v16 }
  0x4a   : > { %435 = vadd.xlane.f32.xlu0 %v434_v17 }
  0x4b   : > { %438 = vadd.xlane.f32.xlu1 %v437_v19 }
  0x51   : > { %444 = vadd.xlane.f32.xlu2 %v443_v24 }
  0x52   : > { %447 = vadd.xlane.f32.xlu0 %v446_v25 }
  0x53   : > { %450 = vadd.xlane.f32.xlu1 %v449_v26 }
  0x59   : > { %453 = vadd.xlane.f32.xlu2 %v452_v29 }
  0x6a   : > { %v663_v35 = vpop.permute.xlu2 %662 }
  0x6b   : > { %vm675_vm5 = vcmp.eq.s32.totalorder %v663_v35, %v645_v32 }
  0x6c   : > { %v980_v41 = vsel %vm675_vm5, 1.0, %v1098_v36 }
  0x72   : > { %v669_v44 = vpop.permute.xlu2 %668 }
  0x73   : > { %vm677_vm8 = vcmp.eq.s32.totalorder %v669_v44, %v645_v32 }
  0x74   : > { %v982_v47 = vsel %vm677_vm8, 1.0, %v1098_v36 }
  0x82   : > { %v660_v33 = vpop.permute.xlu0 %659 }
  0x83   : > { %vm674_vm3 = vcmp.eq.s32.totalorder %v660_v33, %v645_v32  ;;  %v648_v34 = vpop.permute.xlu1 %647 }
  0x84   : > { %v979_v37 = vsel %vm674_vm3, 1.0, %v1098_v36  ;;  %vm670_vm4 = vcmp.eq.s32.totalorder %v648_v34, %v645_v32 }
  0x85   : > { %v975_v38 = vsel %vm670_vm4, 1.0, %v1098_v36  ;;  %988 = vmatmul.msk.f32.vlgmr.msra.gmra.mxu2 %vm696_vm2, %v979_v37 }
  0x86   : > { %984 = vmatmul.msk.f32.vlgmr.msra.gmra.mxu0 %vm696_vm2, %v975_v38 }
  0x8a   : > { %v666_v39 = vpop.permute.xlu0 %665 }
  0x8b   : > { %vm676_vm6 = vcmp.eq.s32.totalorder %v666_v39, %v645_v32  ;;  %v654_v40 = vpop.permute.xlu1 %653 }
  0x8c   : > { %v981_v42 = vsel %vm676_vm6, 1.0, %v1098_v36  ;;  %vm672_vm7 = vcmp.eq.s32.totalorder %v654_v40, %v645_v32 }
  0x8d   : > { %v977_v43 = vsel %vm672_vm7, 1.0, %v1098_v36  ;;  %989 = vmatmul.msk.f32.gmra.mxu2 %vm696_vm2, %v980_v41  ;;  %990 = vmatmul.msk.f32.vlgmr.msra.gmra.mxu3 %vm696_vm2, %v981_v42 }
  0x8e   : > { %986 = vmatmul.msk.f32.vlgmr.msra.gmra.mxu1 %vm696_vm2, %v977_v43 }
  0x92   : > { %v651_v45 = vpop.permute.xlu0 %650 }
  0x93   : > { %vm671_vm9 = vcmp.eq.s32.totalorder %v651_v45, %v645_v32  ;;  %v657_v46 = vpop.permute.xlu1 %656 }
  0x94   : > { %v976_v48 = vsel %vm671_vm9, 1.0, %v1098_v36  ;;  %vm673_vm10 = vcmp.eq.s32.totalorder %v657_v46, %v645_v32 }
  0x95   : > { %v978_v49 = vsel %vm673_vm10, 1.0, %v1098_v36  ;;  %985 = vmatmul.msk.f32.gmra.mxu0 %vm696_vm2, %v976_v48  ;;  %991 = vmatmul.msk.f32.gmra.mxu3 %vm696_vm2, %v982_v47 }
  0x96   : > { %987 = vmatmul.msk.f32.gmra.mxu1 %vm696_vm2, %v978_v49 }
  0xb4   : > { %v433_v57 = vpop.xlane.xlu2 %432 }
  0xb5   : > { %v462_v58 = vmul.f32 %v1226_v56, %v433_v57 }
  0xb7   : > { %v1231_v59 = vsub.f32 %v1000_v10, %v462_v58 }
  0xb9   : > { %v478_v60 = vmul.f32 %v1231_v59, %v1231_v59 }
  0xbb   : > { %v486_v61 = vsel %vm430_vm0, %v478_v60, 0.0  ;;  %v1313_v60 = vld [vmem:[%s1499_s2] ss:$0 sm:$0xff] }
  0xbc   : > { %v442_v62 = vpop.xlane.xlu2 %441  ;;  %487 = vadd.xlane.f32.xlu0 %v486_v61 }
  0xbd   : > { %v465_v63 = vmul.f32 %v1226_v56, %v442_v62  ;;  %v436_v0 = vpop.xlane.xlu0 %435 }
  0xbe   : > { %v463_v1 = vmul.f32 %v1226_v56, %v436_v0  ;;  %v439_v2 = vpop.xlane.xlu1 %438 }
  0xbf   : > { %v1240_v3 = vsub.f32 %v1005_v13, %v465_v63  ;;  %v464_v4 = vmul.f32 %v1226_v56, %v439_v2 }
  0xc0   : > { %v1245_v5 = vsub.f32 %v1001_v14, %v463_v1 }
  0xc1   : > { %v1249_v6 = vsub.f32 %v1004_v15, %v464_v4  ;;  %v481_v7 = vmul.f32 %v1240_v3, %v1240_v3 }
  0xc2   : > { %v479_v8 = vmul.f32 %v1245_v5, %v1245_v5 }
  0xc3   : > { %v495_v10 = vsel %vm430_vm0, %v481_v7, 0.0  ;;  %v480_v11 = vmul.f32 %v1249_v6, %v1249_v6 }
  0xc4   : > { %496 = vadd.xlane.f32.xlu0 %v495_v10  ;;  %v445_v13 = vpop.xlane.xlu2 %444  ;;  %v489_v9 = vsel %vm430_vm0, %v479_v8, 0.0 }
  0xc5   : > { %v466_v14 = vmul.f32 %v1226_v56, %v445_v13  ;;  %v448_v12 = vpop.xlane.xlu0 %447  ;;  %490 = vadd.xlane.f32.xlu1 %v489_v9  ;;  %v492_v15 = vsel %vm430_vm0, %v480_v11, 0.0  ;;  %v1338_v11 = vld [vmem:[%s1500_s3] ss:$0 sm:$0xff] }
  0xc6   : > { %v467_v16 = vmul.f32 %v1226_v56, %v448_v12  ;;  %493 = vadd.xlane.f32.xlu2 %v492_v15  ;;  %v451_v17 = vpop.xlane.xlu1 %450 }
  0xc7   : > { %v1264_v19 = vsub.f32 %v1008_v21, %v466_v14  ;;  %v468_v24 = vmul.f32 %v1226_v56, %v451_v17 }
  0xc8   : > { %v1269_v25 = vsub.f32 %v1009_v22, %v467_v16 }
  0xc9   : > { %v1273_v26 = vsub.f32 %v1012_v23, %v468_v24  ;;  %v482_v28 = vmul.f32 %v1264_v19, %v1264_v19  ;;  %v766_v24 = vld [vmem:[%s1333_s21] sm:$0xff] }
  0xca   : > { %v483_v29 = vmul.f32 %v1269_v25, %v1269_v25 }
  0xcb   : > { %v498_v30 = vsel %vm430_vm0, %v482_v28, 0.0  ;;  %v484_v21 = vmul.f32 %v1273_v26, %v1273_v26 }
  0xcc   : > { %v454_v31 = vpop.xlane.xlu2 %453  ;;  %v501_v18 = vsel %vm430_vm0, %v483_v29, 0.0 }
  0xcd   : > { %v469_v22 = vmul.f32 %v1226_v56, %v454_v31  ;;  %499 = vadd.xlane.f32.xlu1 %v498_v30  ;;  %v504_v23 = vsel %vm430_vm0, %v484_v21, 0.0 }
  0xce   : > { %502 = vadd.xlane.f32.xlu2 %v501_v18  ;;  %505 = vadd.xlane.f32.xlu0 %v504_v23 }
  0xcf   : > { %v1287_v32 = vsub.f32 %v1013_v27, %v469_v22 }
  0xd1   : > { %v485_v33 = vmul.f32 %v1287_v32, %v1287_v32 }
  0xd3   : > { %v507_v34 = vsel %vm430_vm0, %v485_v33, 0.0 }
  0xd5   : > { %508 = vadd.xlane.f32.xlu1 %v507_v34 }
 0x103   : > { %v742_v33 = vpop.f32.mrf.mxu0 }
 0x10b   : > { %v1352_v21 = vpop.f32.mrf.mxu1 }
 0x12f   : > { %v488_v35 = vpop.xlane.xlu0 %487 }
 0x130   : > { %v510_v36 = vmul.f32 %v488_v35, %v1226_v56 }
 0x132   : > { %v518_v37 = vadd.f32 1e-05, %v510_v36 }
 0x134   : > { %1057 = vrsqrt.f32 %v518_v37  ;;  %vm532_vm13 = vweird.f32 %v518_v37 }
 0x137   : > { %v497_v38 = vpop.xlane.xlu0 %496 }
 0x138   : > { %v513_v39 = vmul.f32 %v497_v38, %v1226_v56  ;;  %v491_v40 = vpop.xlane.xlu1 %490 }
 0x139   : > { %v494_v41 = vpop.xlane.xlu2 %493  ;;  %v511_v20 = vmul.f32 %v491_v40, %v1226_v56 }
 0x13a   : > { %v1058_v27 = vpop.eup %1057  ;;  %v1295_v42 = vadd.f32 1e-05, %v513_v39  ;;  %v512_v43 = vmul.f32 %v494_v41, %v1226_v56 }
 0x13b   : > { %v527_v44 = vmul.f32 %v1058_v27, %v518_v37  ;;  %v1298_v45 = vadd.f32 1e-05, %v511_v20  ;;  %vm533_vm12 = vweird.f32 %v1058_v27  ;;  %v790_v37 = vld [vmem:[%s1503_s6] sm:$0xff] }
 0x13c   : > { %1059 = vrsqrt.f32 %v1295_v42  ;;  %v1301_v46 = vadd.f32 1e-05, %v512_v43  ;;  %vm534_vm14 = vmor %vm532_vm13, %vm533_vm12  ;;  %vm562_vm0 = vweird.f32 %v1295_v42 }
 0x13d   : > { %v528_v47 = vmul.f32 %v1058_v27, %v527_v44  ;;  %1061 = vrsqrt.f32 %v1298_v45  ;;  %vm542_vm6 = vweird.f32 %v1298_v45 }
 0x13e   : > { %1063 = vrsqrt.f32 %v1301_v46  ;;  %vm552_vm2 = vweird.f32 %v1301_v46 }
 0x13f   : > { %v529_v48 = vmul.f32 0.5, %v528_v47 }
 0x140   : > { %v500_v49 = vpop.xlane.xlu1 %499 }
 0x141   : > { %v530_v50 = vsub.f32 1.5, %v529_v48  ;;  %v503_v51 = vpop.xlane.xlu2 %502  ;;  %v506_v52 = vpop.xlane.xlu0 %505  ;;  %v514_v53 = vmul.f32 %v500_v49, %v1226_v56 }
 0x142   : > { %v1060_v54 = vpop.eup %1059  ;;  %v515_v55 = vmul.f32 %v503_v51, %v1226_v56  ;;  %v516_v57 = vmul.f32 %v506_v52, %v1226_v56 }
 0x143   : > { %v1308_v58 = vpop.eup %1061  ;;  %v531_v61 = vmul.f32 %v1058_v27, %v530_v50  ;;  %v557_v62 = vmul.f32 %v1060_v54, %v1295_v42  ;;  %v1324_v4 = vadd.f32 1e-05, %v514_v53  ;;  %vm563_vm1 = vweird.f32 %v1060_v54 }
 0x144   : > { %v1316_v63 = vpop.eup %1063  ;;  %v537_v0 = vmul.f32 %v1308_v58, %v1298_v45  ;;  %v1320_v1 = vadd.f32 1e-05, %v515_v55  ;;  %v1322_v2 = vadd.f32 1e-05, %v516_v57  ;;  %vm543_vm3 = vweird.f32 %v1308_v58  ;;  %vm564_vm5 = vmor %vm562_vm0, %vm563_vm1  ;;  %v767_v55 = vld [vmem:[%s1333_s21 + $0x8] sm:$0xff] }
 0x145   : > { %v535_v7 = vsel %vm534_vm14, %v1058_v27, %v531_v61  ;;  %v558_v8 = vmul.f32 %v1060_v54, %v557_v62  ;;  %v547_v10 = vmul.f32 %v1316_v63, %v1301_v46  ;;  %vm553_vm4 = vweird.f32 %v1316_v63  ;;  %vm544_vm8 = vmor %vm542_vm6, %vm543_vm3 }
 0x146   : > { %v606_v13 = vmul.f32 %v535_v7, %v1231_v59  ;;  %v538_v9 = vmul.f32 %v1308_v58, %v537_v0  ;;  %1065 = vrsqrt.f32 %v1320_v1  ;;  %vm582_vm7 = vweird.f32 %v1320_v1  ;;  %vm554_vm10 = vmor %vm552_vm2, %vm553_vm4 }
 0x147   : > { %v559_v14 = vmul.f32 0.5, %v558_v8  ;;  %v548_v12 = vmul.f32 %v1316_v63, %v547_v10  ;;  %1067 = vrsqrt.f32 %v1322_v2  ;;  %vm592_vm9 = vweird.f32 %v1322_v2  ;;  %v1415_v10 = vpop.f32.mrf.mxu2 }
 0x148   : > { %v617_v15 = vmul.f32 %v1313_v60, %v606_v13  ;;  %v539_v16 = vmul.f32 0.5, %v538_v9  ;;  %1069 = vrsqrt.f32 %v1324_v4  ;;  %v509_v17 = vpop.xlane.xlu1 %508  ;;  %v751_v13 = vpop.f32.mrf.mxu1  ;;  %v793_v9 = vld [vmem:[%s1503_s6 + $0x18] sm:$0xff]  ;;  %vm572_vm1 = vweird.f32 %v1324_v4 }
 0x149   : > { %v560_v28 = vsub.f32 1.5, %v559_v14  ;;  %v549_v59 = vmul.f32 0.5, %v548_v12  ;;  %v517_v22 = vmul.f32 %v509_v17, %v1226_v56 }
 0x14a   : > { %v628_v29 = vadd.f32 %v1338_v11, %v617_v15  ;;  %v540_v30 = vsub.f32 1.5, %v539_v16  ;;  %v745_v16 = vpop.f32.mrf.mxu0 }
 0x14b   : > { %v561_v31 = vmul.f32 %v1060_v54, %v560_v28  ;;  %v550_v18 = vsub.f32 1.5, %v549_v59  ;;  %v1387_v47 = vadd.f32 1e-05, %v517_v22  ;;  %v791_v28 = vld [vmem:[%s1503_s6 + $0x8] sm:$0xff] }
 0x14c   : > { %v1356_v23 = vpop.eup %1065  ;;  %v774_v34 = vadd.f32 %v766_v24, %v628_v29  ;;  %v541_v35 = vmul.f32 %v1308_v58, %v540_v30  ;;  %v792_v29 = vld [vmem:[%s1503_s6 + $0x10] sm:$0xff] }
 0x14d   : > { %v1363_v36 = vpop.eup %1067  ;;  %v565_v56 = vsel %vm564_vm5, %v1060_v54, %v561_v31  ;;  %v551_v38 = vmul.f32 %v1316_v63, %v550_v18  ;;  %v577_v39 = vmul.f32 %v1356_v23, %v1320_v1  ;;  %vm583_vm11 = vweird.f32 %v1356_v23 }
 0x14e   : > { %v1374_v40 = vpop.eup %1069  ;;  %v782_v41 = vadd.f32 %v774_v34, %v742_v33  ;;  %v609_v20 = vmul.f32 %v565_v56, %v1240_v3  ;;  %v545_v27 = vsel %vm544_vm8, %v1308_v58, %v541_v35  ;;  %v587_v42 = vmul.f32 %v1363_v36, %v1322_v2  ;;  %v768_v58 = vld [vmem:[%s1333_s21 + $0x10] sm:$0xff]  ;;  %vm584_vm13 = vmor %vm582_vm7, %vm583_vm11 }
 0x14f   : > { %v555_v43 = vsel %vm554_vm10, %v1316_v63, %v551_v38  ;;  %v607_v44 = vmul.f32 %v545_v27, %v1245_v5  ;;  %v578_v45 = vmul.f32 %v1356_v23, %v577_v39  ;;  %v769_v5 = vld [vmem:[%s1333_s21 + $0x18] sm:$0xff]  ;;  %v567_v52 = vmul.f32 %v1374_v40, %v1324_v4  ;;  %v772_v27 = vld [vmem:[%s1333_s21 + $0x30] sm:$0xff] }
 0x150   : > { %v798_v3 = vadd.f32 %v790_v37, %v782_v41  ;;  %v620_v48 = vmul.f32 %v1313_v60, %v609_v20  ;;  %v608_v46 = vmul.f32 %v555_v43, %v1249_v6  ;;  %v588_v49 = vmul.f32 %v1363_v36, %v587_v42 }
 0x151   : > { %v618_v50 = vmul.f32 %v1313_v60, %v607_v44  ;;  %v579_v51 = vmul.f32 0.5, %v578_v45  ;;  %v568_v63 = vmul.f32 %v1374_v40, %v567_v52  ;;  %1071 = vrsqrt.f32 %v1387_v47 }
 0x152   : > { %v806_v53 = vpack.c.bf16 %v798_v3, %v798_v3  ;;  %v631_v6 = vadd.f32 %v1338_v11, %v620_v48  ;;  %v619_v54 = vmul.f32 %v1313_v60, %v608_v46  ;;  %v589_v57 = vmul.f32 0.5, %v588_v49  ;;  %v757_v48 = vpop.f32.mrf.mxu2  ;;  %v795_v46 = vld [vmem:[%s1503_s6 + $0x28] sm:$0xff] }
 0x153   : > { %v629_v61 = vadd.f32 %v1338_v11, %v618_v50  ;;  %v580_v62 = vsub.f32 1.5, %v579_v51  ;;  %vm593_vm12 = vweird.f32 %v1363_v36  ;;  %v569_v15 = vmul.f32 0.5, %v568_v63  ;;  %v760_v50 = vpop.f32.mrf.mxu3  ;;  %v796_v51 = vld [vmem:[%s1503_s6 + $0x30] sm:$0xff] }
 0x154   : > { %815 = vst.msk [vmem:[%s1397_s10] sm:$0xf] %vm814_vm15, %v806_v53  ;;  %v777_v0 = vadd.f32 %v769_v5, %v631_v6  ;;  %v630_v7 = vadd.f32 %v1338_v11, %v619_v54  ;;  %v590_v8 = vsub.f32 1.5, %v589_v57  ;;  %vm594_vm14 = vmor %vm592_vm9, %vm593_vm12  ;;  %vm573_vm0 = vweird.f32 %v1374_v40  ;;  %v770_v5 = vld [vmem:[%s1333_s21 + $0x20] sm:$0xff] }
 0x155   : > { %v775_v14 = vadd.f32 %v767_v55, %v629_v61  ;;  %v581_v12 = vmul.f32 %v1356_v23, %v580_v62  ;;  %v570_v18 = vsub.f32 1.5, %v569_v15  ;;  %vm574_vm2 = vmor %vm572_vm1, %vm573_vm0  ;;  %vm602_vm4 = vweird.f32 %v1387_v47  ;;  %v794_v61 = vld [vmem:[%s1503_s6 + $0x20] sm:$0xff] }
 0x156   : > { %v785_v17 = vadd.f32 %v777_v0, %v751_v13  ;;  %v776_v24 = vadd.f32 %v768_v58, %v630_v7  ;;  %v591_v59 = vmul.f32 %v1363_v36, %v590_v8 }
 0x157   : > { %v783_v30 = vadd.f32 %v775_v14, %v745_v16  ;;  %v585_v31 = vsel %vm584_vm13, %v1356_v23, %v581_v12  ;;  %v1072_v35 = vpop.eup %1071  ;;  %v571_v2 = vmul.f32 %v1374_v40, %v570_v18  ;;  %v773_v14 = vld [vmem:[%s1333_s21 + $0x38] sm:$0xff] }
 0x158   : > { %v801_v1 = vadd.f32 %v793_v9, %v785_v17  ;;  %v784_v22 = vadd.f32 %v776_v24, %v1352_v21  ;;  %v611_v33 = vmul.f32 %v585_v31, %v1269_v25  ;;  %v595_v34 = vsel %vm594_vm14, %v1363_v36, %v591_v59  ;;  %v771_v36 = vld [vmem:[%s1333_s21 + $0x28] sm:$0xff]  ;;  %v797_v16 = vld [vmem:[%s1503_s6 + $0x38] sm:$0xff] }
 0x159   : > { %v799_v37 = vadd.f32 %v791_v28, %v783_v30  ;;  %v612_v23 = vmul.f32 %v595_v34, %v1273_v26  ;;  %v597_v25 = vmul.f32 %v1072_v35, %v1387_v47  ;;  %v575_v20 = vsel %vm574_vm2, %v1374_v40, %v571_v2 }
 0x15a   : > { %v809_v56 = vpack.c.bf16 %v801_v1, %v801_v1  ;;  %v800_v38 = vadd.f32 %v792_v29, %v784_v22  ;;  %v622_v21 = vmul.f32 %v1313_v60, %v611_v33  ;;  %v610_v42 = vmul.f32 %v575_v20, %v1264_v19 }
 0x15b   : > { %v807_v39 = vpack.c.bf16 %v799_v37, %v799_v37  ;;  %v623_v41 = vmul.f32 %v1313_v60, %v612_v23  ;;  %v598_v43 = vmul.f32 %v1072_v35, %v597_v25  ;;  %vm603_vm3 = vweird.f32 %v1072_v35 }
 0x15c   : > { %818 = vst.msk [vmem:[%s1397_s10 + $0xc] sm:$0xf] %vm814_vm15, %v809_v56  ;;  %v808_v26 = vpack.c.bf16 %v800_v38, %v800_v38  ;;  %v633_v4 = vadd.f32 %v1338_v11, %v622_v21  ;;  %v621_v3 = vmul.f32 %v1313_v60, %v610_v42  ;;  %vm604_vm5 = vmor %vm602_vm4, %vm603_vm3 }
 0x15d   : > { %816 = vst.msk [vmem:[%s1397_s10 + $0x4] sm:$0xf] %vm814_vm15, %v807_v39  ;;  %v634_v44 = vadd.f32 %v1338_v11, %v623_v41  ;;  %v599_v40 = vmul.f32 0.5, %v598_v43 }
 0x15e   : > { %817 = vst.msk [vmem:[%s1397_s10 + $0x8] sm:$0xf] %vm814_vm15, %v808_v26  ;;  %v779_v45 = vadd.f32 %v771_v36, %v633_v4  ;;  %v632_v52 = vadd.f32 %v1338_v11, %v621_v3 }
 0x15f   : > { %v780_v49 = vadd.f32 %v772_v27, %v634_v44  ;;  %v600_v53 = vsub.f32 1.5, %v599_v40 }
 0x160   : > { %v787_v19 = vadd.f32 %v779_v45, %v757_v48  ;;  %v778_v55 = vadd.f32 %v770_v5, %v632_v52 }
 0x161   : > { %v788_v6 = vadd.f32 %v780_v49, %v760_v50  ;;  %v601_v57 = vmul.f32 %v1072_v35, %v600_v53 }
 0x162   : > { %v803_v54 = vadd.f32 %v795_v46, %v787_v19  ;;  %v786_v63 = vadd.f32 %v778_v55, %v1415_v10  ;;  %v763_v10 = vpop.f32.mrf.mxu3 }
 0x163   : > { %v804_v58 = vadd.f32 %v796_v51, %v788_v6  ;;  %v605_v0 = vsel %vm604_vm5, %v1072_v35, %v601_v57 }
 0x164   : > { %v811_v62 = vpack.c.bf16 %v803_v54, %v803_v54  ;;  %v613_v8 = vmul.f32 %v605_v0, %v1287_v32  ;;  %v802_v13 = vadd.f32 %v794_v61, %v786_v63 }
 0x165   : > { %v812_v7 = vpack.c.bf16 %v804_v58, %v804_v58 }
 0x166   : > { %820 = vst.msk [vmem:[%s1397_s10 + $0x14] sm:$0xf] %vm814_vm15, %v811_v62  ;;  %v624_v47 = vmul.f32 %v1313_v60, %v613_v8  ;;  %v810_v9 = vpack.c.bf16 %v802_v13, %v802_v13 }
 0x167   : > { %821 = vst.msk [vmem:[%s1397_s10 + $0x18] sm:$0xf] %vm814_vm15, %v812_v7 }
 0x168   : > { %v635_v12 = vadd.f32 %v1338_v11, %v624_v47  ;;  %819 = vst.msk [vmem:[%s1397_s10 + $0x10] sm:$0xf] %vm814_vm15, %v810_v9 }
 0x16a   : > { %v781_v15 = vadd.f32 %v773_v14, %v635_v12 }
 0x16c   : > { %v789_v32 = vadd.f32 %v781_v15, %v763_v10 }
 0x16e   : > { %v805_v17 = vadd.f32 %v797_v16, %v789_v32 }
 0x170   : > { %v813_v24 = vpack.c.bf16 %v805_v17, %v805_v17 }
 0x172   : > { %822 = vst.msk [vmem:[%s1397_s10 + $0x1c] sm:$0xf] %vm814_vm15, %v813_v24 }
 0x173 PF: > { %s17_s26 = sadd.s32 1, %s1095_s26   ;;  %s1505_s24 = smov %s1091_s25 }
 0x174   : > { %p14_p5 = scmp.ge.s32.totalorder %s17_s26, 4   ;;  %s1506_s25 = smov %s1508_s27 }
 0x176   :  { %16 = sbr.rel (!%p14_p5) target bundleno = 2 (0x2), region = 87 }

// kernel: folding_trunk_forward.21
= control target key start
LH: loop header
LB: loop body
LE: loop exit
PB: predicated region body
PF: predicated region fallthrough
CT: control target
= control target key end

     0   :  { %s1545_s17 = smov 0   ;;  %s1547_s18 = smov 0   ;;  %s1943_s0 = inlined_call_operand.vmem [shape: f32[2,8,8], index: 0, kind: input, shape index: {}, may-alias: {0,1}]   ;;  %s1944_s1 = inlined_call_operand.vmem [shape: f32[2,8,8], index: 1, kind: input, shape index: {}, may-alias: {0,1}]   ;;  %s1945_s2 = inlined_call_operand.vmem [shape: bf16[2,8,8,16], index: 2, kind: input, shape index: {}, may-alias: {2,11}]   ;;  %s1946_s3 = inlined_call_operand.vmem [shape: bf16[16,16], index: 3, kind: input, shape index: {}]   ;;  %s1947_s4 = inlined_call_operand.vmem [shape: f32[1,16], index: 4, kind: input, shape index: {}]   ;;  %s1948_s5 = inlined_call_operand.vmem [shape: f32[1,16], index: 5, kind: input, shape index: {}]   ;;  %s1949_s6 = inlined_call_operand.vmem [shape: f32[1,16], index: 6, kind: input, shape index: {}]   ;;  %s1950_s7 = inlined_call_operand.vmem [shape: bf16[16,64], index: 7, kind: input, shape index: {}]   ;;  %s1951_s8 = inlined_call_operand.vmem [shape: f32[1,64], index: 8, kind: input, shape index: {}]   ;;  %s1952_s9 = inlined_call_operand.vmem [shape: bf16[64,16], index: 9, kind: input, shape index: {}]   ;;  %s1953_s10 = inlined_call_operand.vmem [shape: f32[1,16], index: 10, kind: input, shape index: {}]   ;;  %s1954_s11 = inlined_call_operand.vmem [shape: bf16[2,8,8,16], index: 11, kind: output, shape index: {}, may-alias: {2,11}]  }
   0x1   :  { %s1549_s19 = smov 0  }
   0x2 LB: > { %s33_s20 = sadd.s32 1, %s1473_s18  ;;  %p1299_p0 = scmp.ge.s32.totalorder %s1477_s19, 1  ;;  %s1477_s19 = sphi %s1549_s19, %s21_s19   ;;  %s1473_s18 = sphi %s1547_s18, %s1960_s18   ;;  %s1469_s17 = sphi %s1545_s17, %s1959_s17  }
   0x3   : > { %p35_p1 = scmp.ge.s32.totalorder %s33_s20, 2  ;;  %p381_p2 = scmp.lt.s32.totalorder %s1477_s19, 3 }
   0x5   : > { %s1962_s20 = smov (%p35_p1, %s33_s20), 0  ;;  %p382_p3 = pnand %p1299_p0, %p381_p2 }
   0x6   : > { %p440_p4 = scmp.lt.s32.totalorder (!%p382_p3), %s1469_s17, 1  ;;  %s1481_s28 = smov (!%p382_p3), 124  }
   0x7   : > { %385 = sbr.rel (%p382_p3) target bundleno = 857 (0x359), region = 64 }
   0xc   : > { %v1479_v0 = vmov 0   ;;  %v1480_v1 = vmov 1   ;;  %s1964_s17 = smov (!%p440_p4, %s1469_s17), 1  ;;  %v1482_v9 = vmov 2   ;;  %v1483_v11 = vmov 3  }
   0xd   : > { %1402 = vset.pattern.permute.xlu1 %v1479_v0  ;;  %1404 = vset.pattern.permute.xlu2 %v1480_v1  ;;  %s1300_s21 = sshll.u32 %s1964_s17, 3  ;;  %v475_v18 = vld [vmem:[%s1946_s3] sm:$0xf]  ;;  %vm484_vm0 = vcmask 1041408   ;;  %v476_v19 = vld [vmem:[%s1946_s3 + $0x4] sm:$0xf] }
   0xe   : > { %1401 = vset.pattern.permute.xlu0 %v1479_v0  ;;  %s450_s24 = scalar_lea.vmem %s1944_s1, %s1300_s21  ;;  %s446_s27 = scalar_lea.vmem %s1943_s0, %s1300_s21  ;;  %v486_v20 = vsel %vm484_vm0, %v475_v18, 0  ;;  %v566_v21 = vunpack.c.l.b16 %v475_v18  ;;  %v634_v22 = vsel %vm484_vm0, %v476_v19, 0  ;;  %v698_v23 = vunpack.c.l.b16 %v476_v19 }
   0xf   : > { %v473_v2 = vld [vmem:[%s450_s24] sm:$0xff]  ;;  %495 = vmatpush.bf16.msra.mxu0 %v486_v20  ;;  %643 = vmatpush.bf16.msra.mxu2 %v634_v22  ;;  %vm480_vm1 = vcmask 31744   ;;  %s1340_s14 = sshll.u32 %s1964_s17, 5  ;;  %vm803_vm2 = vcmask 130048  }
  0x10   : > { %v474_v3 = vpack.c.bf16 %v473_v2, %v473_v2  ;;  %v1575_v4 = vld [vmem:[%s446_s27] sm:$0xff]  ;;  %v567_v24 = vpack.c.b16 %v566_v21, %v566_v21  ;;  %v699_v25 = vpack.c.b16 %v698_v23, %v698_v23  ;;  %s1639_s21 = scalar_lea.vmem %s1945_s2, %s1340_s14  ;;  %s1909_s30 = scalar_lea.vmem %s1954_s11, %s1340_s14 }
  0x11   : > { %v506_v5 = vrot.slane %v1575_v4, 5  ;;  %v505_v7 = vrot.slane %v1575_v4, 4  ;;  %v509_v10 = vperm.slane %v1575_v4, 0  ;;  %v502_v12 = vrot.slane %v1575_v4, 1  ;;  %v1642_v62 = vld [vmem:[%s1639_s21 + $0x10] sm:$0xff]   ;;  %v1648_v2 = vld [vmem:[%s1639_s21 + $0x18] sm:$0xff]  }
  0x12   : > { %478 = vrot.lane.b32.xlu0 %v474_v3, %s1481_s28  ;;  %v507_v14 = vrot.slane %v1575_v4, 6  ;;  %v508_v16 = vrot.slane %v1575_v4, 7  ;;  %v568_v26 = vrot.slane %v567_v24, 2  ;;  %v700_v27 = vrot.slane %v699_v25, 2 }
  0x13   : > { %v514_v6 = vperm.slane %v506_v5, 0  ;;  %v513_v8 = vperm.slane %v505_v7, 0  ;;  %v510_v13 = vperm.slane %v502_v12, 0  ;;  %v504_v30 = vrot.slane %v1575_v4, 3 }
  0x14   : > { %v515_v15 = vperm.slane %v507_v14, 0  ;;  %v516_v17 = vperm.slane %v508_v16, 0  ;;  %v570_v28 = vsel %vm484_vm0, %v568_v26, 0  ;;  %v702_v29 = vsel %vm484_vm0, %v700_v27, 0 }
  0x15   : > { %538 = vperm.xlu1 %1402, %v514_v6   ;;  %606 = vperm.xlu2 %1404, %v514_v6   ;;  %v512_v31 = vperm.slane %v504_v30, 0  ;;  %v503_v32 = vrot.slane %v1575_v4, 2  ;;  %v1357_v3 = vunpack.c.l.bf16 %v1642_v62  ;;  %v1361_v16 = vunpack.c.l.bf16 %v1648_v2 }
  0x16   : > { %579 = vmatpush.bf16.msra.mxu1 %v570_v28  ;;  %711 = vmatpush.bf16.msra.mxu3 %v702_v29 }
  0x17   : > { %v511_v33 = vperm.slane %v503_v32, 0 }
  0x1a   : > { %534 = vperm.xlu0 %1401, %v513_v8  }
  0x1d   : > { %1403 = vset.pattern.permute.xlu1 %v1480_v1  ;;  %1405 = vset.pattern.permute.xlu2 %v1482_v9 }
  0x1e   : > { %602 = vperm.xlu1 %1403, %v513_v8   ;;  %666 = vperm.xlu2 %1405, %v513_v8  }
  0x22   : > { %1412 = vset.pattern.permute.xlu0 %v1482_v9 }
  0x23   : > { %650 = vperm.xlu0 %1412, %v509_v10  }
  0x26   : > { %1406 = vset.pattern.permute.xlu1 %v1482_v9  ;;  %1407 = vset.pattern.permute.xlu2 %v1483_v11 }
  0x27   : > { %670 = vperm.xlu1 %1406, %v514_v6   ;;  %734 = vperm.xlu2 %1407, %v513_v8  }
  0x2b   : > { %1413 = vset.pattern.permute.xlu0 %v1483_v11 }
  0x2c   : > { %738 = vperm.xlu0 %1413, %v514_v6  }
  0x2f   : > { %1408 = vset.pattern.permute.xlu1 %v1479_v0  ;;  %1409 = vset.pattern.permute.xlu2 %v1479_v0 }
  0x30   : > { %518 = vperm.xlu1 %1408, %v509_v10   ;;  %522 = vperm.xlu2 %1409, %v510_v13  }
  0x34   : > { %742 = vperm.xlu0 %1413, %v515_v15  }
  0x38   : > { %1410 = vset.pattern.permute.xlu1 %v1480_v1  ;;  %1411 = vset.pattern.permute.xlu2 %v1480_v1 }
  0x39   : > { %586 = vperm.xlu1 %1410, %v509_v10   ;;  %590 = vperm.xlu2 %1411, %v510_v13  }
  0x3c   : > { %1422 = vset.pattern.permute.xlu0 %v1480_v1 }
  0x3d   : > { %614 = vperm.xlu0 %1422, %v516_v17  }
  0x41   : > { %1414 = vset.pattern.permute.xlu1 %v1482_v9  ;;  %1415 = vset.pattern.permute.xlu2 %v1479_v0 }
  0x42   : > { %654 = vperm.xlu1 %1414, %v510_v13   ;;  %542 = vperm.xlu2 %1415, %v515_v15  }
  0x45   : > { %598 = vperm.xlu0 %1422, %v512_v31  }
  0x4a   : > { %1416 = vset.pattern.permute.xlu1 %v1479_v0  ;;  %1417 = vset.pattern.permute.xlu2 %v1480_v1 }
  0x4b   : > { %546 = vperm.xlu1 %1416, %v516_v17   ;;  %610 = vperm.xlu2 %1417, %v515_v15  }
  0x4d   : > { %1431 = vset.pattern.permute.xlu0 %v1483_v11 }
  0x53   : > { %1418 = vset.pattern.permute.xlu1 %v1483_v11  ;;  %1419 = vset.pattern.permute.xlu2 %v1483_v11 }
  0x54   : > { %718 = vperm.xlu1 %1418, %v509_v10   ;;  %722 = vperm.xlu2 %1419, %v510_v13  }
  0x5c   : > { %1420 = vset.pattern.permute.xlu1 %v1482_v9  ;;  %1421 = vset.pattern.permute.xlu2 %v1482_v9 }
  0x5d   : > { %674 = vperm.xlu1 %1420, %v515_v15   ;;  %678 = vperm.xlu2 %1421, %v516_v17  }
  0x65   : > { %1423 = vset.pattern.permute.xlu1 %v1483_v11  ;;  %1424 = vset.pattern.permute.xlu2 %v1479_v0 }
  0x66   : > { %746 = vperm.xlu1 %1423, %v516_v17   ;;  %526 = vperm.xlu2 %1424, %v511_v33  }
  0x6e   : > { %1425 = vset.pattern.permute.xlu1 %v1479_v0  ;;  %1426 = vset.pattern.permute.xlu2 %v1480_v1  ;;  %v1645_v1 = vld [vmem:[%s1639_s21] sm:$0xff]  }
  0x6f   : > { %530 = vperm.xlu1 %1425, %v512_v31   ;;  %594 = vperm.xlu2 %1426, %v511_v33   ;;  %v607_v35 = vpop.permute.xlu2 %606  ;;  %v1349_v12 = vunpack.c.l.bf16 %v1645_v1  ;;  %v1350_v17 = vunpack.c.h.bf16 %v1645_v1 }
  0x77   : > { %1427 = vset.pattern.permute.xlu1 %v1482_v9  ;;  %1428 = vset.pattern.permute.xlu2 %v1482_v9  ;;  %v1358_v9 = vunpack.c.h.bf16 %v1642_v62 }
  0x78   : > { %658 = vperm.xlu1 %1427, %v511_v33   ;;  %662 = vperm.xlu2 %1428, %v512_v31   ;;  %v667_v37 = vpop.permute.xlu2 %666 }
  0x80   : > { %1429 = vset.pattern.permute.xlu1 %v1483_v11  ;;  %1430 = vset.pattern.permute.xlu2 %v1483_v11 }
  0x81   : > { %726 = vperm.xlu1 %1429, %v511_v33   ;;  %730 = vperm.xlu2 %1430, %v512_v31   ;;  %v1623_v39 = vpop.permute.xlu2 %734 }
  0x84   : > { %v479_v34 = vpop.permute.xlu0 %478 }
  0x85   : > { %1306 = vmatmul.msk.bf16.vlgmr.msra.gmra.mxu0 %vm480_vm1, %v479_v34  ;;  %1307 = vmatmul.msk.bf16.vlgmr.msra.gmra.mxu1 %vm480_vm1, %v479_v34 }
  0x86   : > { %1308 = vmatmul.msk.bf16.vlgmr.msra.gmra.mxu2 %vm480_vm1, %v479_v34  ;;  %1309 = vmatmul.msk.bf16.vlgmr.msra.gmra.mxu3 %vm480_vm1, %v479_v34 }
  0x87   : > { %v539_v36 = vpop.permute.xlu1 %538 }
  0x8a   : > { %v523_v41 = vpop.permute.xlu2 %522 }
  0x8c   : > { %v535_v47 = vpop.permute.xlu0 %534 }
  0x90   : > { %v603_v38 = vpop.permute.xlu1 %602 }
  0x93   : > { %v591_v43 = vpop.permute.xlu2 %590 }
  0x95   : > { %v651_v50 = vpop.permute.xlu0 %650 }
  0x99   : > { %v671_v40 = vpop.permute.xlu1 %670 }
  0x9c   : > { %v543_v45 = vpop.permute.xlu2 %542 }
  0x9e   : > { %v739_v53 = vpop.permute.xlu0 %738 }
  0xa2   : > { %v519_v42 = vpop.permute.xlu1 %518 }
  0xa5   : > { %v611_v48 = vpop.permute.xlu2 %610 }
  0xa6   : > { %v743_v56 = vpop.permute.xlu0 %742 }
  0xab   : > { %v587_v44 = vpop.permute.xlu1 %586 }
  0xae   : > { %v1627_v51 = vpop.permute.xlu2 %722 }
  0xaf   : > { %v615_v59 = vpop.permute.xlu0 %614 }
  0xb4   : > { %v1625_v46 = vpop.permute.xlu1 %654 }
  0xb7   : > { %v1629_v54 = vpop.permute.xlu2 %678  ;;  %v599_v4 = vpop.permute.xlu0 %598 }
  0xbd   : > { %v547_v49 = vpop.permute.xlu1 %546 }
  0xc0   : > { %v527_v57 = vpop.permute.xlu2 %526 }
  0xc6   : > { %v719_v52 = vpop.permute.xlu1 %718 }
  0xc9   : > { %v595_v60 = vpop.permute.xlu2 %594 }
  0xcf   : > { %v675_v55 = vpop.permute.xlu1 %674 }
  0xd2   : > { %v663_v13 = vpop.permute.xlu2 %662 }
  0xd8   : > { %v1631_v58 = vpop.permute.xlu1 %746 }
  0xe1   : > { %v531_v61 = vpop.permute.xlu1 %530 }
  0xea   : > { %v659_v30 = vpop.permute.xlu1 %658 }
 0x102   : > { %v497_v63 = vpop.f32.mrf.mxu0  ;;  %v581_v0 = vpop.f32.mrf.mxu1 }
 0x103   : > { %v553_v5 = vmul.f32 %v535_v47, %v497_v63  ;;  %v621_v6 = vmul.f32 %v603_v38, %v581_v0  ;;  %v554_v7 = vmul.f32 %v539_v36, %v497_v63  ;;  %v622_v8 = vmul.f32 %v607_v35, %v581_v0 }
 0x104   : > { %v549_v10 = vmul.f32 %v519_v42, %v497_v63  ;;  %v617_v11 = vmul.f32 %v587_v44, %v581_v0  ;;  %v555_v14 = vmul.f32 %v543_v45, %v497_v63  ;;  %v623_v15 = vmul.f32 %v611_v48, %v581_v0 }
 0x105   : > { %v552_v18 = vmul.f32 %v531_v61, %v497_v63  ;;  %v620_v19 = vmul.f32 %v599_v4, %v581_v0  ;;  %v551_v22 = vmul.f32 %v527_v57, %v497_v63  ;;  %v619_v23 = vmul.f32 %v595_v60, %v581_v0 }
 0x106   : > { %v629_v26 = vadd.f32 %v621_v6, %v553_v5  ;;  %v630_v27 = vadd.f32 %v622_v8, %v554_v7  ;;  %v550_v28 = vmul.f32 %v523_v41, %v497_v63  ;;  %v618_v29 = vmul.f32 %v591_v43, %v581_v0 }
 0x107   : > { %v625_v33 = vadd.f32 %v617_v11, %v549_v10  ;;  %v556_v34 = vmul.f32 %v547_v49, %v497_v63  ;;  %v631_v38 = vadd.f32 %v623_v15, %v555_v14  ;;  %v624_v42 = vmul.f32 %v615_v59, %v581_v0  ;;  %v1432_v49 = vld [vmem:[%s1947_s4] ss:$0 sm:$0xff] }
 0x108   : > { %v626_v43 = vadd.f32 %v618_v29, %v550_v28  ;;  %v628_v10 = vadd.f32 %v620_v19, %v552_v18  ;;  %v1362_v14 = vunpack.c.h.bf16 %v1648_v2 }
 0x109   : > { %v645_v20 = vpop.f32.mrf.mxu2  ;;  %v1655_v21 = vpop.f32.mrf.mxu3  ;;  %v632_v7 = vadd.f32 %v624_v42, %v556_v34 }
 0x10a   : > { %v499_v24 = vpop.f32.mrf.mxu0  ;;  %v583_v25 = vpop.f32.mrf.mxu1  ;;  %v685_v31 = vmul.f32 %v667_v37, %v645_v20  ;;  %v686_v32 = vmul.f32 %v671_v40, %v645_v20  ;;  %v753_v35 = vmul.f32 %v1623_v39, %v1655_v21  ;;  %v681_v36 = vmul.f32 %v651_v50, %v645_v20 }
 0x10b   : > { %v754_v47 = vmul.f32 %v739_v53, %v1655_v21  ;;  %v687_v48 = vmul.f32 %v675_v55, %v645_v20  ;;  %v749_v41 = vmul.f32 %v719_v52, %v1655_v21  ;;  %v682_v37 = vmul.f32 %v1625_v46, %v645_v20 }
 0x10c   : > { %v693_v44 = vadd.f32 %v685_v31, %v629_v26  ;;  %v694_v45 = vadd.f32 %v686_v32, %v630_v27  ;;  %v689_v57 = vadd.f32 %v681_v36, %v625_v33  ;;  %v755_v59 = vmul.f32 %v743_v56, %v1655_v21 }
 0x10d   : > { %v695_v50 = vadd.f32 %v687_v48, %v631_v38  ;;  %v683_v60 = vmul.f32 %v659_v30, %v645_v20  ;;  %v690_v62 = vadd.f32 %v682_v37, %v626_v43  ;;  %v750_v53 = vmul.f32 %v1627_v51, %v1655_v21 }
 0x10e   : > { %v761_v40 = vadd.f32 %v753_v35, %v693_v44  ;;  %v762_v39 = vadd.f32 %v754_v47, %v694_v45  ;;  %v757_v61 = vadd.f32 %v749_v41, %v689_v57  ;;  %v684_v55 = vmul.f32 %v663_v13, %v645_v20  ;;  %v731_v13 = vpop.permute.xlu2 %730 }
 0x10f   : > { %v763_v4 = vadd.f32 %v755_v59, %v695_v50  ;;  %v758_v6 = vadd.f32 %v750_v53, %v690_v62  ;;  %v688_v8 = vmul.f32 %v1629_v54, %v645_v20  ;;  %v627_v51 = vadd.f32 %v619_v23, %v551_v22  ;;  %v1363_v20 = vld [vmem:[%s1639_s21 + $0x8] sm:$0xff]  }
 0x110   : > { %v785_v0 = vadd.f32 %v1357_v3, %v761_v40  ;;  %v786_v46 = vadd.f32 %v1358_v9, %v762_v39  ;;  %v781_v5 = vadd.f32 %v1349_v12, %v757_v61  ;;  %v756_v9 = vmul.f32 %v1631_v58, %v1655_v21  ;;  %v727_v12 = vpop.permute.xlu1 %726 }
 0x111   : > { %v647_v52 = vpop.f32.mrf.mxu2  ;;  %v715_v63 = vpop.f32.mrf.mxu3  ;;  %v696_v3 = vadd.f32 %v688_v8, %v632_v7  ;;  %v692_v24 = vadd.f32 %v684_v55, %v628_v10  ;;  %v787_v19 = vadd.f32 %v1361_v16, %v763_v4  ;;  %v691_v22 = vadd.f32 %v683_v60, %v627_v51 }
 0x112   : > { %v1669_v56 = vadd.f32 %v1432_v49, %v785_v0  ;;  %v1671_v11 = vadd.f32 %v1432_v49, %v786_v46  ;;  %v1674_v15 = vadd.f32 %v1432_v49, %v781_v5  ;;  %v782_v58 = vadd.f32 %v1350_v17, %v758_v6 }
 0x113   : > { %v764_v25 = vadd.f32 %v756_v9, %v696_v3  ;;  %v752_v26 = vmul.f32 %v731_v13, %v1655_v21  ;;  %v751_v27 = vmul.f32 %v727_v12, %v1655_v21  ;;  %v1354_v29 = vunpack.c.h.bf16 %v1363_v20 }
 0x114   : > { %v816_v54 = vsel %vm803_vm2, %v1669_v56, 0.0  ;;  %v819_v18 = vsel %vm803_vm2, %v1671_v11, 0.0  ;;  %v804_v23 = vsel %vm803_vm2, %v1674_v15, 0.0  ;;  %v1691_v16 = vadd.f32 %v1432_v49, %v787_v19 }
 0x115   : > { %817 = vadd.xlane.f32.xlu0 %v816_v54  ;;  %820 = vadd.xlane.f32.xlu1 %v819_v18  ;;  %v788_v28 = vadd.f32 %v1362_v14, %v764_v25  ;;  %v760_v2 = vadd.f32 %v752_v26, %v692_v24  ;;  %v1353_v30 = vunpack.c.l.bf16 %v1363_v20  ;;  %v759_v31 = vadd.f32 %v751_v27, %v691_v22 }
 0x116   : > { %805 = vadd.xlane.f32.xlu2 %v804_v23  ;;  %v1693_v32 = vadd.f32 %v1432_v49, %v782_v58  ;;  %v822_v1 = vsel %vm803_vm2, %v1691_v16, 0.0  ;;  %v1484_v45 = vmov 16.0  }
 0x117   : > { %v1695_v33 = vadd.f32 %v1432_v49, %v788_v28  ;;  %v784_v34 = vadd.f32 %v1354_v29, %v760_v2  ;;  %v783_v35 = vadd.f32 %v1353_v30, %v759_v31  ;;  %1437 = vrcp.f32 %v1484_v45 }
 0x118   : > { %v807_v21 = vsel %vm803_vm2, %v1693_v32, 0.0 }
 0x119   : > { %v825_v17 = vsel %vm803_vm2, %v1695_v33, 0.0  ;;  %v1703_v36 = vadd.f32 %v1432_v49, %v784_v34  ;;  %v1705_v38 = vadd.f32 %v1432_v49, %v783_v35  ;;  %v1342_v35 = vld [vmem:[%s1950_s7] sm:$0xff] }
 0x11a   : > { %1366 = vmatpush.bf16.msrb.mxu2 %v1342_v35  ;;  %1044 = vmatpush.bf16.msrb.mxu0 %v1342_v35 }
 0x11b   : > { %v813_v42 = vsel %vm803_vm2, %v1703_v36, 0.0  ;;  %v810_v44 = vsel %vm803_vm2, %v1705_v38, 0.0 }
 0x11d   : > { %823 = vadd.xlane.f32.xlu0 %v822_v1  ;;  %826 = vadd.xlane.f32.xlu1 %v825_v17  ;;  %v1438_v47 = vpop.eup %1437 }
 0x11e   : > { %808 = vadd.xlane.f32.xlu2 %v807_v21  ;;  %v829_v48 = vmul.f32 16.0, %v1438_v47  ;;  %vm833_vm3 = vweird.f32 %v1438_v47 }
 0x120   : > { %v830_v57 = vsub.f32 1.0, %v829_v48 }
 0x122   : > { %v831_v41 = vmul.f32 %v1438_v47, %v830_v57 }
 0x124   : > { %v832_v43 = vadd.f32 %v1438_v47, %v831_v41 }
 0x125   : > { %814 = vadd.xlane.f32.xlu0 %v813_v42 }
 0x126   : > { %811 = vadd.xlane.f32.xlu2 %v810_v44  ;;  %v1711_v37 = vsel %vm833_vm3, %v1438_v47, %v832_v43 }
 0x188   : > { %v818_v40 = vpop.xlane.xlu0 %817  ;;  %v821_v49 = vpop.xlane.xlu1 %820 }
 0x189   : > { %v839_v39 = vmul.f32 %v1711_v37, %v818_v40  ;;  %v840_v50 = vmul.f32 %v1711_v37, %v821_v49  ;;  %v806_v59 = vpop.xlane.xlu2 %805 }
 0x18a   : > { %v835_v60 = vmul.f32 %v1711_v37, %v806_v59 }
 0x18b   : > { %v1717_v61 = vsub.f32 %v1669_v56, %v839_v39  ;;  %v1720_v62 = vsub.f32 %v1671_v11, %v840_v50 }
 0x18c   : > { %v1723_v53 = vsub.f32 %v1674_v15, %v835_v60 }
 0x18d   : > { %v855_v55 = vmul.f32 %v1717_v61, %v1717_v61  ;;  %v856_v52 = vmul.f32 %v1720_v62, %v1720_v62 }
 0x18e   : > { %v851_v63 = vmul.f32 %v1723_v53, %v1723_v53 }
 0x18f   : > { %v871_v0 = vsel %vm803_vm2, %v855_v55, 0.0  ;;  %v874_v46 = vsel %vm803_vm2, %v856_v52, 0.0 }
 0x190   : > { %v824_v4 = vpop.xlane.xlu0 %823  ;;  %872 = vadd.xlane.f32.xlu1 %v871_v0  ;;  %v827_v5 = vpop.xlane.xlu1 %826  ;;  %875 = vadd.xlane.f32.xlu2 %v874_v46  ;;  %v859_v6 = vsel %vm803_vm2, %v851_v63, 0.0 }
 0x191   : > { %v841_v7 = vmul.f32 %v1711_v37, %v824_v4  ;;  %v842_v8 = vmul.f32 %v1711_v37, %v827_v5  ;;  %860 = vadd.xlane.f32.xlu0 %v859_v6  ;;  %v809_v10 = vpop.xlane.xlu2 %808 }
 0x192   : > { %v836_v14 = vmul.f32 %v1711_v37, %v809_v10 }
 0x193   : > { %v1738_v51 = vsub.f32 %v1691_v16, %v841_v7  ;;  %v1741_v13 = vsub.f32 %v1695_v33, %v842_v8 }
 0x194   : > { %v1744_v3 = vsub.f32 %v1693_v32, %v836_v14 }
 0x195   : > { %v857_v9 = vmul.f32 %v1738_v51, %v1738_v51  ;;  %v858_v12 = vmul.f32 %v1741_v13, %v1741_v13 }
 0x196   : > { %v852_v24 = vmul.f32 %v1744_v3, %v1744_v3 }
 0x197   : > { %v877_v54 = vsel %vm803_vm2, %v857_v9, 0.0  ;;  %v880_v18 = vsel %vm803_vm2, %v858_v12, 0.0 }
 0x198   : > { %878 = vadd.xlane.f32.xlu2 %v877_v54  ;;  %v815_v19 = vpop.xlane.xlu0 %814  ;;  %v862_v20 = vsel %vm803_vm2, %v852_v24, 0.0 }
 0x199   : > { %v838_v22 = vmul.f32 %v1711_v37, %v815_v19  ;;  %881 = vadd.xlane.f32.xlu0 %v880_v18  ;;  %863 = vadd.xlane.f32.xlu1 %v862_v20  ;;  %v812_v23 = vpop.xlane.xlu2 %811 }
 0x19a   : > { %v837_v58 = vmul.f32 %v1711_v37, %v812_v23 }
 0x19b   : > { %v1758_v25 = vsub.f32 %v1703_v36, %v838_v22 }
 0x19c   : > { %v1761_v26 = vsub.f32 %v1705_v38, %v837_v58 }
 0x19d   : > { %v854_v27 = vmul.f32 %v1758_v25, %v1758_v25 }
 0x19e   : > { %v853_v28 = vmul.f32 %v1761_v26, %v1761_v26 }
 0x19f   : > { %v868_v29 = vsel %vm803_vm2, %v854_v27, 0.0 }
 0x1a0   : > { %869 = vadd.xlane.f32.xlu2 %v868_v29  ;;  %v865_v2 = vsel %vm803_vm2, %v853_v28, 0.0 }
 0x1a1   : > { %866 = vadd.xlane.f32.xlu1 %v865_v2 }
 0x203   : > { %v873_v30 = vpop.xlane.xlu1 %872  ;;  %v876_v31 = vpop.xlane.xlu2 %875 }
 0x204   : > { %v887_v34 = vmul.f32 %v873_v30, %v1711_v37  ;;  %v861_v1 = vpop.xlane.xlu0 %860  ;;  %v888_v17 = vmul.f32 %v876_v31, %v1711_v37 }
 0x205   : > { %v883_v21 = vmul.f32 %v861_v1, %v1711_v37 }
 0x206   : > { %v895_v42 = vadd.f32 1e-05, %v887_v34  ;;  %v896_v44 = vadd.f32 1e-05, %v888_v17  ;;  %v1812_v34 = vld [vmem:[%s1948_s5] ss:$0 sm:$0xff] }
 0x207   : > { %v891_v45 = vadd.f32 1e-05, %v883_v21 }
 0x208   : > { %1439 = vrsqrt.f32 %v895_v42  ;;  %vm945_vm5 = vweird.f32 %v895_v42  ;;  %vm955_vm6 = vweird.f32 %v896_v44 }
 0x209   : > { %1441 = vrsqrt.f32 %v891_v45  ;;  %vm905_vm10 = vweird.f32 %v891_v45 }
 0x20a   : > { %1443 = vrsqrt.f32 %v896_v44 }
 0x20b   : > { %v879_v47 = vpop.xlane.xlu2 %878 }
 0x20c   : > { %v882_v48 = vpop.xlane.xlu0 %881  ;;  %v864_v57 = vpop.xlane.xlu1 %863  ;;  %v889_v41 = vmul.f32 %v879_v47, %v1711_v37 }
 0x20d   : > { %v890_v43 = vmul.f32 %v882_v48, %v1711_v37  ;;  %v884_v40 = vmul.f32 %v864_v57, %v1711_v37 }
 0x20e   : > { %v1440_v49 = vpop.eup %1439  ;;  %v1778_v39 = vadd.f32 1e-05, %v889_v41  ;;  %v1346_v41 = vld [vmem:[%s1952_s9 + $0x18] sm:$0xff] }
 0x20f   : > { %v1780_v50 = vpop.eup %1441  ;;  %v940_v59 = vmul.f32 %v1440_v49, %v895_v42  ;;  %v1782_v60 = vadd.f32 1e-05, %v890_v43  ;;  %v1784_v55 = vadd.f32 1e-05, %v884_v40  ;;  %vm946_vm4 = vweird.f32 %v1440_v49  ;;  %1367 = vmatpush.bf16.msrb.mxu3 %v1346_v41  ;;  %1131 = vmatpush.bf16.msrb.mxu1 %v1346_v41 }
 0x210   : > { %v1444_v52 = vpop.eup %1443  ;;  %v900_v63 = vmul.f32 %v1780_v50, %v891_v45  ;;  %1445 = vrsqrt.f32 %v1778_v39  ;;  %vm947_vm8 = vmor %vm945_vm5, %vm946_vm4  ;;  %vm906_vm9 = vweird.f32 %v1780_v50  ;;  %vm965_vm5 = vweird.f32 %v1778_v39 }
 0x211   : > { %v941_v0 = vmul.f32 %v1440_v49, %v940_v59  ;;  %v950_v46 = vmul.f32 %v1444_v52, %v896_v44  ;;  %1447 = vrsqrt.f32 %v1782_v60  ;;  %vm956_vm7 = vweird.f32 %v1444_v52  ;;  %vm1819_vm12 = vmor %vm905_vm10, %vm906_vm9 }
 0x212   : > { %v901_v4 = vmul.f32 %v1780_v50, %v900_v63  ;;  %1449 = vrsqrt.f32 %v1784_v55  ;;  %vm957_vm11 = vmor %vm955_vm6, %vm956_vm7  ;;  %vm975_vm13 = vweird.f32 %v1782_v60  ;;  %vm915_vm3 = vweird.f32 %v1784_v55 }
 0x213   : > { %v942_v5 = vmul.f32 0.5, %v941_v0  ;;  %v951_v6 = vmul.f32 %v1444_v52, %v950_v46  ;;  %v870_v7 = vpop.xlane.xlu2 %869 }
 0x214   : > { %v902_v8 = vmul.f32 0.5, %v901_v4  ;;  %v867_v10 = vpop.xlane.xlu1 %866  ;;  %v886_v24 = vmul.f32 %v870_v7, %v1711_v37 }
 0x215   : > { %v943_v14 = vsub.f32 1.5, %v942_v5  ;;  %v952_v9 = vmul.f32 0.5, %v951_v6  ;;  %v885_v12 = vmul.f32 %v867_v10, %v1711_v37 }
 0x216   : > { %v1793_v54 = vpop.eup %1445  ;;  %v903_v18 = vsub.f32 1.5, %v902_v8  ;;  %v1807_v31 = vadd.f32 1e-05, %v886_v24 }
 0x217   : > { %v1795_v19 = vpop.eup %1447  ;;  %v944_v20 = vmul.f32 %v1440_v49, %v943_v14  ;;  %v953_v22 = vsub.f32 1.5, %v952_v9  ;;  %v960_v23 = vmul.f32 %v1793_v54, %v1778_v39  ;;  %v1804_v28 = vadd.f32 1e-05, %v885_v12 }
 0x218   : > { %v1450_v58 = vpop.eup %1449  ;;  %v904_v27 = vmul.f32 %v1780_v50, %v903_v18  ;;  %v970_v37 = vmul.f32 %v1795_v19, %v1782_v60  ;;  %vm976_vm14 = vweird.f32 %v1795_v19  ;;  %vm966_vm0 = vweird.f32 %v1793_v54 }
 0x219   : > { %v948_v29 = vsel %vm947_vm8, %v1440_v49, %v944_v20  ;;  %v954_v2 = vmul.f32 %v1444_v52, %v953_v22  ;;  %v910_v30 = vmul.f32 %v1450_v58, %v1784_v55  ;;  %v961_v35 = vmul.f32 %v1793_v54, %v960_v23  ;;  %vm1849_vm1 = vmor %vm975_vm13, %vm976_vm14 }
 0x21a   : > { %v983_v1 = vmul.f32 %v948_v29, %v1717_v61  ;;  %v971_v17 = vmul.f32 %v1795_v19, %v970_v37  ;;  %1451 = vrsqrt.f32 %v1804_v28  ;;  %v1827_v61 = vld [vmem:[%s1949_s6] ss:$0 sm:$0xff]  ;;  %v908_v44 = vsel %vm1819_vm12, %v1780_v50, %v904_v27  ;;  %vm967_vm6 = vmor %vm965_vm5, %vm966_vm0 }
 0x21b   : > { %v958_v42 = vsel %vm957_vm11, %v1444_v52, %v954_v2  ;;  %v911_v47 = vmul.f32 %v1450_v58, %v910_v30  ;;  %v962_v57 = vmul.f32 0.5, %v961_v35  ;;  %1453 = vrsqrt.f32 %v1807_v31 }
 0x21c   : > { %v984_v45 = vmul.f32 %v958_v42, %v1720_v62  ;;  %v972_v48 = vmul.f32 0.5, %v971_v17  ;;  %v994_v40 = vmul.f32 %v1812_v34, %v983_v1  ;;  %v979_v62 = vmul.f32 %v908_v44, %v1723_v53 }
 0x21d   : > { %v912_v43 = vmul.f32 0.5, %v911_v47  ;;  %v963_v59 = vsub.f32 1.5, %v962_v57  ;;  %vm916_vm15 = vweird.f32 %v1450_v58  ;;  %vm925_vm8 = vweird.f32 %v1804_v28 }
 0x21e   : > { %v973_v49 = vsub.f32 1.5, %v972_v48  ;;  %v995_v50 = vmul.f32 %v1812_v34, %v984_v45  ;;  %v1005_v63 = vadd.f32 %v1827_v61, %v994_v40  ;;  %vm917_vm4 = vmor %vm915_vm3, %vm916_vm15  ;;  %v990_v9 = vmul.f32 %v1812_v34, %v979_v62 }
 0x21f   : > { %v913_v52 = vsub.f32 1.5, %v912_v43  ;;  %v964_v46 = vmul.f32 %v1793_v54, %v963_v59  ;;  %vm935_vm11 = vweird.f32 %v1807_v31  ;;  %v1435_v43 = vld [vmem:[%s1951_s8] ss:$0 sm:$0xff]  ;;  %vm1172_vm13 = vcmask 125952  }
 0x220   : > { %v974_v0 = vmul.f32 %v1795_v19, %v973_v49  ;;  %v1006_v4 = vadd.f32 %v1827_v61, %v995_v50  ;;  %v1452_v5 = vpop.eup %1451 }
 0x221   : > { %v914_v53 = vmul.f32 %v1450_v58, %v913_v52  ;;  %v920_v7 = vmul.f32 %v1452_v5, %v1804_v28  ;;  %v1454_v8 = vpop.eup %1453  ;;  %v968_v24 = vsel %vm967_vm6, %v1793_v54, %v964_v46  ;;  %vm926_vm7 = vweird.f32 %v1452_v5 }
 0x222   : > { %v978_v10 = vsel %vm1849_vm1, %v1795_v19, %v974_v0  ;;  %v1011_v60 = vpack.c.bf16 %v1006_v4, %v1005_v63  ;;  %v930_v18 = vmul.f32 %v1454_v8, %v1807_v31  ;;  %v985_v23 = vmul.f32 %v968_v24, %v1738_v51  ;;  %vm927_vm10 = vmor %vm925_vm8, %vm926_vm7 }
 0x223   : > { %v918_v14 = vsel %vm917_vm4, %v1450_v58, %v914_v53  ;;  %v921_v55 = vmul.f32 %v1452_v5, %v920_v7  ;;  %v986_v19 = vmul.f32 %v978_v10, %v1741_v13  ;;  %v1001_v58 = vadd.f32 %v1827_v61, %v990_v9 }
 0x224   : > { %v980_v12 = vmul.f32 %v918_v14, %v1744_v3  ;;  %1316 = vmatmul.msk.bf16.vlgmr.msrb.gmra.mxu2 %vm803_vm2, %v1011_v60  ;;  %v931_v20 = vmul.f32 %v1454_v8, %v930_v18  ;;  %vm936_vm9 = vweird.f32 %v1454_v8  ;;  %v996_v30 = vmul.f32 %v1812_v34, %v985_v23 }
 0x225   : > { %v922_v39 = vmul.f32 0.5, %v921_v55  ;;  %v997_v13 = vmul.f32 %v1812_v34, %v986_v19  ;;  %vm937_vm12 = vmor %vm935_vm11, %vm936_vm9  ;;  %v1436_v19 = vld [vmem:[%s1953_s10] ss:$0 sm:$0xff] }
 0x226   : > { %v991_v22 = vmul.f32 %v1812_v34, %v980_v12  ;;  %v932_v3 = vmul.f32 0.5, %v931_v20  ;;  %v1007_v21 = vadd.f32 %v1827_v61, %v996_v30 }
 0x227   : > { %v923_v27 = vsub.f32 1.5, %v922_v39  ;;  %v1008_v42 = vadd.f32 %v1827_v61, %v997_v13 }
 0x228   : > { %v1002_v54 = vadd.f32 %v1827_v61, %v991_v22  ;;  %v933_v29 = vsub.f32 1.5, %v932_v3 }
 0x229   : > { %v924_v37 = vmul.f32 %v1452_v5, %v923_v27  ;;  %v1012_v45 = vpack.c.bf16 %v1008_v42, %v1007_v21 }
 0x22a   : > { %v1009_v2 = vpack.c.bf16 %v1002_v54, %v1001_v58  ;;  %v934_v51 = vmul.f32 %v1454_v8, %v933_v29 }
 0x22b   : > { %v928_v1 = vsel %vm927_vm10, %v1452_v5, %v924_v37 }
 0x22c   : > { %1314 = vmatmul.msk.bf16.vlgmr.msrb.gmra.mxu0 %vm803_vm2, %v1009_v2  ;;  %v981_v17 = vmul.f32 %v928_v1, %v1761_v26  ;;  %v938_v35 = vsel %vm937_vm12, %v1454_v8, %v934_v51  ;;  %v1344_v26 = vld [vmem:[%s1952_s9 + $0x8] sm:$0xff] }
 0x22d   : > { %v982_v28 = vmul.f32 %v938_v35, %v1758_v25  ;;  %v1345_v25 = vld [vmem:[%s1952_s9 + $0x10] sm:$0xff] }
 0x22e   : > { %v992_v47 = vmul.f32 %v1812_v34, %v981_v17  ;;  %1368 = vmatpush.bf16.msrb.mxu3 %v1345_v25  ;;  %1132 = vmatpush.bf16.msrb.mxu1 %v1345_v25 }
 0x22f   : > { %v993_v44 = vmul.f32 %v1812_v34, %v982_v28  ;;  %v1343_v34 = vld [vmem:[%s1952_s9] sm:$0xff] }
 0x230   : > { %v1003_v31 = vadd.f32 %v1827_v61, %v992_v47 }
 0x231   : > { %v1004_v48 = vadd.f32 %v1827_v61, %v993_v44 }
 0x232   : > { %1369 = vmatpush.bf16.msrb.mxu3 %v1344_v26  ;;  %1133 = vmatpush.bf16.msrb.mxu1 %v1344_v26 }
 0x233   : > { %v1010_v57 = vpack.c.bf16 %v1004_v48, %v1003_v31 }
 0x234   : > { %1317 = vmatmul.msk.bf16.gmra.mxu2 %vm803_vm2, %v1012_v45 }
 0x236   : > { %1370 = vmatpush.bf16.msrb.mxu3 %v1343_v34  ;;  %1134 = vmatpush.bf16.msrb.mxu1 %v1343_v34 }
 0x23c   : > { %1315 = vmatmul.msk.bf16.gmra.mxu0 %vm803_vm2, %v1010_v57  ;;  %vm1114_vm2 = vcmask 523264  }
 0x2a7   : > { %v1056_v61 = vpop.f32.mrf.mxu2 }
 0x2a8   : > { %v1057_v40 = vadd.f32 %v1435_v43, %v1056_v61 }
 0x2a9   : > { %v1046_v41 = vpop.f32.mrf.mxu0 }
 0x2aa   : > { %v1047_v49 = vadd.f32 %v1435_v43, %v1046_v41  ;;  %v1070_v63 = vmax.f32 %v1057_v40, 0.0 }
 0x2ac   : > { %v1066_v46 = vmax.f32 %v1047_v49, 0.0 }
 0x2af   : > { %v1058_v59 = vpop.f32.mrf.mxu2 }
 0x2b0   : > { %v1059_v50 = vadd.f32 %v1435_v43, %v1058_v59 }
 0x2b1   : > { %v1048_v62 = vpop.f32.mrf.mxu0 }
 0x2b2   : > { %v1049_v52 = vadd.f32 %v1435_v43, %v1048_v62  ;;  %v1071_v0 = vmax.f32 %v1059_v50, 0.0 }
 0x2b4   : > { %v1067_v4 = vmax.f32 %v1049_v52, 0.0  ;;  %v1076_v5 = vpack.c.bf16 %v1071_v0, %v1070_v63 }
 0x2b6   : > { %v1074_v6 = vpack.c.bf16 %v1067_v4, %v1066_v46  ;;  %1336 = vmatmul.msk.bf16.vlgmr.msrb.gmra.mxu3 %vm1114_vm2, %v1076_v5 }
 0x2b7   : > { %v1061_v53 = vpop.f32.mrf.mxu2 }
 0x2b8   : > { %1334 = vmatmul.msk.bf16.vlgmr.msrb.gmra.mxu1 %vm1114_vm2, %v1074_v6  ;;  %v1062_v8 = vadd.f32 %v1435_v43, %v1061_v53 }
 0x2b9   : > { %v1051_v7 = vpop.f32.mrf.mxu0 }
 0x2ba   : > { %v1052_v10 = vadd.f32 %v1435_v43, %v1051_v7  ;;  %v1072_v24 = vmax.f32 %v1062_v8, 0.0 }
 0x2bc   : > { %v1068_v18 = vmax.f32 %v1052_v10, 0.0 }
 0x2bf   : > { %v1063_v14 = vpop.f32.mrf.mxu2 }
 0x2c0   : > { %v1064_v60 = vadd.f32 %v1435_v43, %v1063_v14 }
 0x2c1   : > { %v1053_v9 = vpop.f32.mrf.mxu0 }
 0x2c2   : > { %v1054_v12 = vadd.f32 %v1435_v43, %v1053_v9  ;;  %v1073_v55 = vmax.f32 %v1064_v60, 0.0 }
 0x2c4   : > { %v1069_v39 = vmax.f32 %v1054_v12, 0.0  ;;  %v1077_v20 = vpack.c.bf16 %v1073_v55, %v1072_v24 }
 0x2c6   : > { %v1075_v22 = vpack.c.bf16 %v1069_v39, %v1068_v18  ;;  %1337 = vmatmul.msk.bf16.gmra.mxu3 %vm1114_vm2, %v1077_v20 }
 0x2c8   : > { %1335 = vmatmul.msk.bf16.gmra.mxu1 %vm1114_vm2, %v1075_v22 }
 0x335   : > { %v1136_v23 = vpop.f32.mrf.mxu1 }
 0x336   : > { %v1137_v58 = vadd.f32 %v1436_v19, %v1136_v23 }
 0x338   : > { %v1156_v27 = vadd.f32 %v1137_v58, %v1674_v15 }
 0x339   : > { %v1146_v54 = vpop.f32.mrf.mxu3 }
 0x33a   : > { %v1164_v3 = vpack.c.bf16 %v1156_v27, %v1156_v27  ;;  %v1147_v37 = vadd.f32 %v1436_v19, %v1146_v54 }
 0x33c   : > { %1173 = vst.msk [vmem:[%s1909_s30] sm:$0xf] %vm1172_vm13, %v1164_v3  ;;  %v1160_v29 = vadd.f32 %v1147_v37, %v1669_v56 }
 0x33d   : > { %v1138_v2 = vpop.f32.mrf.mxu1 }
 0x33e   : > { %v1139_v15 = vadd.f32 %v1436_v19, %v1138_v2  ;;  %v1168_v30 = vpack.c.bf16 %v1160_v29, %v1160_v29 }
 0x340   : > { %v1157_v13 = vadd.f32 %v1139_v15, %v1693_v32  ;;  %1177 = vst.msk [vmem:[%s1909_s30 + $0x10] sm:$0xf] %vm1172_vm13, %v1168_v30 }
 0x341   : > { %v1148_v51 = vpop.f32.mrf.mxu3 }
 0x342   : > { %v1165_v1 = vpack.c.bf16 %v1157_v13, %v1157_v13  ;;  %v1149_v17 = vadd.f32 %v1436_v19, %v1148_v51 }
 0x344   : > { %1174 = vst.msk [vmem:[%s1909_s30 + $0x4] sm:$0xf] %vm1172_vm13, %v1165_v1  ;;  %v1161_v35 = vadd.f32 %v1149_v17, %v1671_v11 }
 0x345   : > { %v1141_v28 = vpop.f32.mrf.mxu1 }
 0x346   : > { %v1142_v21 = vadd.f32 %v1436_v19, %v1141_v28  ;;  %v1169_v42 = vpack.c.bf16 %v1161_v35, %v1161_v35 }
 0x348   : > { %v1158_v56 = vadd.f32 %v1142_v21, %v1705_v38  ;;  %1178 = vst.msk [vmem:[%s1909_s30 + $0x14] sm:$0xf] %vm1172_vm13, %v1169_v42 }
 0x349   : > { %v1151_v32 = vpop.f32.mrf.mxu3 }
 0x34a   : > { %v1166_v47 = vpack.c.bf16 %v1158_v56, %v1158_v56  ;;  %v1152_v44 = vadd.f32 %v1436_v19, %v1151_v32 }
 0x34c   : > { %1175 = vst.msk [vmem:[%s1909_s30 + $0x8] sm:$0xf] %vm1172_vm13, %v1166_v47  ;;  %v1162_v45 = vadd.f32 %v1152_v44, %v1691_v16 }
 0x34d   : > { %v1143_v31 = vpop.f32.mrf.mxu1 }
 0x34e   : > { %v1144_v48 = vadd.f32 %v1436_v19, %v1143_v31  ;;  %v1170_v57 = vpack.c.bf16 %v1162_v45, %v1162_v45 }
 0x350   : > { %v1159_v11 = vadd.f32 %v1144_v48, %v1703_v36  ;;  %1179 = vst.msk [vmem:[%s1909_s30 + $0x18] sm:$0xf] %vm1172_vm13, %v1170_v57 }
 0x351   : > { %v1153_v26 = vpop.f32.mrf.mxu3 }
 0x352   : > { %v1167_v25 = vpack.c.bf16 %v1159_v11, %v1159_v11  ;;  %v1154_v38 = vadd.f32 %v1436_v19, %v1153_v26 }
 0x354   : > { %1176 = vst.msk [vmem:[%s1909_s30 + $0xc] sm:$0xf] %vm1172_vm13, %v1167_v25  ;;  %v1163_v34 = vadd.f32 %v1154_v38, %v1695_v33 }
 0x356   : > { %v1171_v61 = vpack.c.bf16 %v1163_v34, %v1163_v34 }
 0x358   : > { %1180 = vst.msk [vmem:[%s1909_s30 + $0x1c] sm:$0xf] %vm1172_vm13, %v1171_v61 }
 0x359 PF: > { %s21_s19 = sadd.s32 1, %s1477_s19   ;;  %s1959_s17 = smov %s1473_s18 }
 0x35a   : > { %p18_p5 = scmp.ge.s32.totalorder %s21_s19, 4   ;;  %s1960_s18 = smov %s1962_s20 }
 0x35c   :  { %20 = sbr.rel (!%p18_p5) target bundleno = 2 (0x2), region = 100 }

// kernel: folding_trunk_forward.24
= control target key start
LH: loop header
LB: loop body
LE: loop exit
PB: predicated region body
PF: predicated region fallthrough
CT: control target
= control target key end

     0   :  { %vm38_vm0 = vcmask 261120   ;;  %vm56_vm1 = vcmask 130048   ;;  %s116_s1 = inlined_call_operand.vmem [shape: bf16[32,16], index: 1, kind: input, shape index: {}]   ;;  %s117_s0 = inlined_call_operand.vmem [shape: f32[16,32], index: 0, kind: input, shape index: {}]   ;;  %s118_s2 = inlined_call_operand.vmem [shape: f32[1,16], index: 2, kind: input, shape index: {}]   ;;  %s119_s3 = inlined_call_operand.vmem [shape: f32[16,16], index: 3, kind: output, shape index: {}]  }
   0x1   :  { %v73_v0 = vld [vmem:[%s116_s1 + $0x8] sm:$0xff]  ;;  %v72_v1 = vld [vmem:[%s116_s1] sm:$0xff] }
   0x2   :  { %48 = vmatpush.bf16.msra.mxu0 %v73_v0  ;;  %v15_v2 = vld [vmem:[%s117_s0] sm:$0xff]  ;;  %v16_v3 = vld [vmem:[%s117_s0 + $0x8] sm:$0xff] }
   0x3   :  { %v17_v4 = vpack.c.bf16 %v16_v3, %v15_v2  ;;  %v74_v5 = vld [vmem:[%s118_s2] ss:$0 sm:$0xff] }
   0x6   :  { %49 = vmatpush.bf16.msra.mxu0 %v72_v1 }
   0x9   :  { %71 = vmatmul.msk.bf16.vlgmr.msra.gmra.mxu0 %vm38_vm0, %v17_v4 }
  0x86   :  { %v51_v6 = vpop.f32.mrf.mxu0 }
  0x87   :  { %v52_v7 = vadd.f32 %v74_v5, %v51_v6 }
  0x89   :  { %57 = vst.msk [vmem:[%s119_s3] sm:$0xff] %vm56_vm1, %v52_v7 }
  0x8e   :  { %v53_v8 = vpop.f32.mrf.mxu0 }
  0x8f   :  { %v54_v9 = vadd.f32 %v74_v5, %v53_v8 }
  0x91   :  { %58 = vst.msk [vmem:[%s119_s3 + $0x8] sm:$0xff] %vm56_vm1, %v54_v9 }

// kernel: folding_trunk_forward.25
= control target key start
LH: loop header
LB: loop body
LE: loop exit
PB: predicated region body
PF: predicated region fallthrough
CT: control target
= control target key end

     0   :  { %vm28_vm0 = vcmask 130048   ;;  %s267_s0 = inlined_call_operand.vmem [shape: f32[16,16], index: 0, kind: input, shape index: {}]   ;;  %s268_s1 = inlined_call_operand.vmem [shape: f32[1,16], index: 1, kind: input, shape index: {}]   ;;  %s269_s2 = inlined_call_operand.vmem [shape: f32[1,16], index: 2, kind: input, shape index: {}]   ;;  %s270_s3 = inlined_call_operand.vmem [shape: bf16[16,9], index: 3, kind: input, shape index: {}]   ;;  %s271_s4 = inlined_call_operand.vmem [shape: f32[1,9], index: 4, kind: input, shape index: {}]   ;;  %s272_s5 = inlined_call_operand.hbm [shape: f32[16,16], index: 5, kind: output, shape index: {0}]   ;;  %s273_s6 = inlined_call_operand.vmem [shape: f32[16,9], index: 6, kind: output, shape index: {1}]  }
   0x1   :  { %v24_v0 = vld [vmem:[%s267_s0] sm:$0xff] }
   0x2   :  { %v29_v1 = vsel %vm28_vm0, %v24_v0, 0.0 }
   0x3   :  { %30 = vadd.xlane.f32.xlu0 %v29_v1 }
   0x4   :  { %12 = vsyncpa [#allocation3], 0  ;;  %v25_v2 = vld [vmem:[%s267_s0 + $0x8] sm:$0xff]  ;;  %v194_v4 = vmov 16.0   ;;  %v154_v21 = vld [vmem:[%s270_s3] sm:$0xff]  ;;  %s133_s7 = sshll.u32 %s272_s5, 4  ;;  %s134_s7 = int_to_ptr.hbm [resolvable:$true] %s133_s7 }
   0x5   :  { %v32_v3 = vsel %vm28_vm0, %v25_v2, 0.0  ;;  %162 = vrcp.f32 %v194_v4  ;;  %113 = vmatpush.bf16.msra.mxu0 %v154_v21  ;;  %v159_v36 = vld [vmem:[%s268_s1] ss:$0 sm:$0xff]  ;;  %s195_s1 = smov [#allocation2]   ;;  %s196_s8 = smov 128   ;;  %vm124_vm8 = vcmask 72704  }
   0x6   :  { %v160_v40 = vld [vmem:[%s269_s2] ss:$0 sm:$0xff]  ;;  %s131_s2 = sshll.u32 %s195_s1, 4  ;;  %s197_s9 = smov 8   ;;  %s132_s2 = int_to_ptr.vmem [resolvable:$true] %s131_s2 }
   0x7   :  { %v161_v51 = vld [vmem:[%s271_s4] ss:$0 sm:$0xff] }
   0xb   :  { %33 = vadd.xlane.f32.xlu0 %v32_v3  ;;  %v163_v5 = vpop.eup %162 }
   0xc   :  { %v36_v6 = vmul.f32 16.0, %v163_v5  ;;  %vm40_vm1 = vweird.f32 %v163_v5 }
   0xe   :  { %v37_v7 = vsub.f32 1.0, %v36_v6 }
  0x10   :  { %v38_v8 = vmul.f32 %v163_v5, %v37_v7 }
  0x12   :  { %v39_v9 = vadd.f32 %v163_v5, %v38_v8 }
  0x14   :  { %v41_v10 = vsel %vm40_vm1, %v163_v5, %v39_v9 }
  0x76   :  { %v31_v11 = vpop.xlane.xlu0 %30 }
  0x77   :  { %v42_v12 = vmul.f32 %v41_v10, %v31_v11 }
  0x79   :  { %v44_v13 = vsub.f32 %v24_v0, %v42_v12 }
  0x7b   :  { %v46_v14 = vmul.f32 %v44_v13, %v44_v13 }
  0x7d   :  { %v48_v15 = vsel %vm28_vm0, %v46_v14, 0.0 }
  0x7e   :  { %49 = vadd.xlane.f32.xlu1 %v48_v15  ;;  %v34_v16 = vpop.xlane.xlu0 %33 }
  0x7f   :  { %v43_v17 = vmul.f32 %v41_v10, %v34_v16 }
  0x81   :  { %v45_v18 = vsub.f32 %v25_v2, %v43_v17 }
  0x83   :  { %v47_v19 = vmul.f32 %v45_v18, %v45_v18 }
  0x85   :  { %v51_v20 = vsel %vm28_vm0, %v47_v19, 0.0 }
  0x86   :  { %52 = vadd.xlane.f32.xlu1 %v51_v20 }
  0xf1   :  { %v50_v22 = vpop.xlane.xlu1 %49 }
  0xf2   :  { %v54_v23 = vmul.f32 %v50_v22, %v41_v10 }
  0xf4   :  { %v56_v24 = vadd.f32 1e-05, %v54_v23 }
  0xf6   :  { %164 = vrsqrt.f32 %v56_v24  ;;  %vm64_vm3 = vweird.f32 %v56_v24 }
  0xf9   :  { %v53_v25 = vpop.xlane.xlu1 %52 }
  0xfa   :  { %v55_v26 = vmul.f32 %v53_v25, %v41_v10 }
  0xfc   :  { %v165_v27 = vpop.eup %164  ;;  %v57_v28 = vadd.f32 1e-05, %v55_v26 }
  0xfd   :  { %v59_v29 = vmul.f32 %v165_v27, %v56_v24  ;;  %vm65_vm2 = vweird.f32 %v165_v27 }
  0xfe   :  { %166 = vrsqrt.f32 %v57_v28  ;;  %vm66_vm4 = vmor %vm64_vm3, %vm65_vm2  ;;  %vm74_vm6 = vweird.f32 %v57_v28 }
  0xff   :  { %v60_v30 = vmul.f32 %v165_v27, %v59_v29 }
 0x101   :  { %v61_v31 = vmul.f32 0.5, %v60_v30 }
 0x103   :  { %v62_v32 = vsub.f32 1.5, %v61_v31 }
 0x104   :  { %v167_v33 = vpop.eup %166 }
 0x105   :  { %v63_v34 = vmul.f32 %v165_v27, %v62_v32  ;;  %v69_v35 = vmul.f32 %v167_v33, %v57_v28  ;;  %vm75_vm5 = vweird.f32 %v167_v33 }
 0x106   :  { %vm76_vm7 = vmor %vm74_vm6, %vm75_vm5 }
 0x107   :  { %v67_v37 = vsel %vm66_vm4, %v165_v27, %v63_v34  ;;  %v70_v38 = vmul.f32 %v167_v33, %v69_v35 }
 0x108   :  { %v78_v39 = vmul.f32 %v67_v37, %v44_v13 }
 0x109   :  { %v71_v41 = vmul.f32 0.5, %v70_v38 }
 0x10a   :  { %v83_v42 = vmul.f32 %v159_v36, %v78_v39 }
 0x10b   :  { %v72_v43 = vsub.f32 1.5, %v71_v41 }
 0x10c   :  { %v88_v44 = vadd.f32 %v160_v40, %v83_v42 }
 0x10d   :  { %v73_v45 = vmul.f32 %v167_v33, %v72_v43 }
 0x10e   :  { %122 = vst.msk [vmem:[#allocation2] sm:$0xff] %vm28_vm0, %v88_v44 }
 0x10f   :  { %v77_v46 = vsel %vm76_vm7, %v167_v33, %v73_v45 }
 0x110   :  { %v79_v47 = vmul.f32 %v77_v46, %v45_v18 }
 0x112   :  { %v84_v48 = vmul.f32 %v159_v36, %v79_v47 }
 0x114   :  { %v89_v49 = vadd.f32 %v160_v40, %v84_v48 }
 0x116   :  { %v90_v50 = vpack.c.bf16 %v89_v49, %v88_v44  ;;  %123 = vst.msk [vmem:[#allocation2 + $0x8] sm:$0xff] %vm28_vm0, %v89_v49 }
 0x117   :  { %139 = dma.vmem_to_hbm [thread:$0]  %s132_s2, 256, %s134_s7, [#allocation3], %s196_s8, %s196_s8, %s197_s9  }
 0x118   :  { %153 = vmatmul.msk.bf16.vlgmr.msra.gmra.mxu0 %vm28_vm0, %v90_v50 }
 0x195   :  { %v115_v52 = vpop.f32.mrf.mxu0 }
 0x196   :  { %v116_v53 = vadd.f32 %v161_v51, %v115_v52 }
 0x198   :  { %v120_v54 = vmul.f32 10.0, %v116_v53 }
 0x19a   :  { %125 = vst.msk [vmem:[%s273_s6] sm:$0xff] %vm124_vm8, %v120_v54 }
 0x19d   :  { %v117_v55 = vpop.f32.mrf.mxu0 }
 0x19e   :  { %v118_v56 = vadd.f32 %v161_v51, %v117_v55 }
 0x1a0   :  { %v121_v57 = vmul.f32 10.0, %v118_v56 }
 0x1a2   :  { %126 = vst.msk [vmem:[%s273_s6 + $0x8] sm:$0xff] %vm124_vm8, %v121_v57 }
 0x1a3   :  { %192 = dma.done.wait [#allocation3], 256  }
 0x1a4   :  { %193 = vsyncadd [#allocation3], 4294967040 }
 0x1a5   :  { %148 = vsyncpa [#allocation3], 1 }

// kernel: folding_trunk_forward.20
= control target key start
LH: loop header
LB: loop body
LE: loop exit
PB: predicated region body
PF: predicated region fallthrough
CT: control target
= control target key end

     0   :  { %s3697_s0 = inlined_call_operand.vmem [shape: f32[2,8,32], index: 0, kind: input, shape index: {}, may-alias: {0,1}]   ;;  %s3698_s1 = inlined_call_operand.vmem [shape: f32[2,8,32], index: 1, kind: input, shape index: {}, may-alias: {0,1}]   ;;  %s3699_s2 = inlined_call_operand.vmem [shape: bf16[2,8,8,16], index: 2, kind: input, shape index: {}]   ;;  %s3700_s3 = inlined_call_operand.vmem [shape: f32[2,8,1], index: 3, kind: input, shape index: {}, may-alias: {3,4}]   ;;  %s3701_s4 = inlined_call_operand.vmem [shape: f32[2,8,1], index: 4, kind: input, shape index: {}, may-alias: {3,4}]   ;;  %s3702_s5 = inlined_call_operand.vmem [shape: f32[1,32], index: 5, kind: input, shape index: {}]   ;;  %s3703_s6 = inlined_call_operand.vmem [shape: f32[1,32], index: 6, kind: input, shape index: {}]   ;;  %s3704_s7 = inlined_call_operand.vmem [shape: bf16[32,32], index: 7, kind: input, shape index: {}]   ;;  %s3705_s8 = inlined_call_operand.vmem [shape: f32[1,32], index: 8, kind: input, shape index: {}]   ;;  %s3706_s9 = inlined_call_operand.vmem [shape: bf16[32,64], index: 9, kind: input, shape index: {}]   ;;  %s3707_s10 = inlined_call_operand.vmem [shape: f32[1,64], index: 10, kind: input, shape index: {}]   ;;  %s3708_s11 = inlined_call_operand.vmem [shape: f32[1,16], index: 11, kind: input, shape index: {}]   ;;  %s3709_s12 = inlined_call_operand.vmem [shape: f32[1,16], index: 12, kind: input, shape index: {}]   ;;  %s3710_s13 = inlined_call_operand.vmem [shape: bf16[16,4], index: 13, kind: input, shape index: {}]   ;;  %s3711_s14 = inlined_call_operand.vmem [shape: f32[1,4], index: 14, kind: input, shape index: {}]   ;;  %s3712_s15 = inlined_call_operand.vmem [shape: bf16[32,32], index: 15, kind: input, shape index: {}]   ;;  %s3713_s16 = inlined_call_operand.vmem [shape: f32[1,32], index: 16, kind: input, shape index: {}]   ;;  %s3714_s17 = inlined_call_operand.vmem [shape: f32[1,32], index: 17, kind: input, shape index: {}]   ;;  %s3715_s18 = inlined_call_operand.vmem [shape: f32[1,32], index: 18, kind: input, shape index: {}]   ;;  %s3716_s19 = inlined_call_operand.vmem [shape: bf16[32,128], index: 19, kind: input, shape index: {}]   ;;  %s3717_s20 = inlined_call_operand.vmem [shape: f32[1,128], index: 20, kind: input, shape index: {}]   ;;  %s3718_s21 = inlined_call_operand.vmem [shape: bf16[128,32], index: 21, kind: input, shape index: {}]   ;;  %s3719_s22 = inlined_call_operand.vmem [shape: f32[1,32], index: 22, kind: input, shape index: {}]   ;;  %s3720_s23 = inlined_call_operand.vmem [shape: f32[1,32], index: 23, kind: input, shape index: {}]   ;;  %s3721_s24 = inlined_call_operand.vmem [shape: f32[1,32], index: 24, kind: input, shape index: {}]   ;;  %s3722_s25 = inlined_call_operand.vmem [shape: bf16[32,8], index: 25, kind: input, shape index: {}]   ;;  %s3723_s26 = inlined_call_operand.vmem [shape: f32[1,8], index: 26, kind: input, shape index: {}]   ;;  %s3724_s27 = inlined_call_operand.vmem [shape: f32[2,8,32], index: 27, kind: output, shape index: {0}]   ;;  %s3725_s28 = inlined_call_operand.vmem [shape: f32[2,8,8], index: 28, kind: output, shape index: {1}]  }
   0x1   :  { %3730 = sst [smem:[#allocation7_spill]] %s3697_s0 }
   0x2   :  { %3731 = sst [smem:[#allocation8_spill]] %s3698_s1 }
   0x3   :  { %3732 = sst [smem:[#allocation9_spill]] %s3699_s2 }
   0x4   :  { %3733 = sst [smem:[#allocation10_spill]] %s3700_s3 }
   0x5   :  { %3734 = sst [smem:[#allocation11_spill]] %s3701_s4 }
   0x6   :  { %3735 = sst [smem:[#allocation12_spill]] %s3702_s5  ;;  %s3034_s5 = smov 0  }
   0x7   :  { %3736 = sst [smem:[#allocation13_spill]] %s3703_s6 }
   0x8   :  { %3737 = sst [smem:[#allocation14_spill]] %s3704_s7 }
   0x9   :  { %3738 = sst [smem:[#allocation15_spill]] %s3705_s8  ;;  %s3032_s8 = smov 0  }
   0xa   :  { %3739 = sst [smem:[#allocation16_spill]] %s3706_s9  ;;  %s3036_s9 = smov 0  }
   0xb   :  { %3740 = sst [smem:[#allocation17_spill]] %s3707_s10 }
   0xc   :  { %3741 = sst [smem:[#allocation18_spill]] %s3708_s11 }
   0xd   :  { %3742 = sst [smem:[#allocation19_spill]] %s3709_s12 }
   0xe LB: > { %s58_s30 = sadd.s32 1, %s2866_s5  ;;  %p2581_p0 = scmp.ge.s32.totalorder %s2870_s9, 1  ;;  %s2870_s9 = sphi %s3036_s9, %s39_s9   ;;  %s2866_s5 = sphi %s3034_s5, %s3767_s5   ;;  %s2862_s8 = sphi %s3032_s8, %s3766_s8  }
   0xf   : > { %p60_p1 = scmp.ge.s32.totalorder %s58_s30, 2  ;;  %p856_p2 = scmp.lt.s32.totalorder %s2870_s9, 3 }
  0x11   : > { %s3769_s30 = smov (%p60_p1, %s58_s30), 0  ;;  %p857_p3 = pnand %p2581_p0, %p856_p2 }
  0x12   : > { %3743 = sst [smem:[#allocation6_spill]] %s3769_s30  ;;  %p974_p4 = scmp.lt.s32.totalorder (!%p857_p3), %s2862_s8, 1 }
  0x13   : > { %860 = sbr.rel (%p857_p3) target bundleno = 2813 (0xafd), region = 128  ;;  %s3744_s11 = sld [smem:[#allocation7_spill]] (!%p857_p3) }
  0x14   : > { %s3745_s12 = sld [smem:[#allocation9_spill]] (!%p857_p3)  ;;  %s2881_s30 = smov (!%p857_p3), 88  }
  0x15   : > { %s3746_s10 = sld [smem:[#allocation8_spill]] (!%p857_p3)  ;;  %s2885_s7 = smov (!%p857_p3), 80  }
  0x16   : > { %s3747_s2 = sld [smem:[#allocation14_spill]] (!%p857_p3) }
  0x17   : > { %s3757_s4 = sld [smem:[#allocation15_spill]] (!%p857_p3) }
  0x18   : > { %s3771_s8 = smov (!%p974_p4, %s2862_s8), 1  ;;  %vm1037_vm0 = vcmask 261120   ;;  %vm1224_vm1 = vcmask 130048   ;;  %v2872_v17 = vmov 32.0   ;;  %v2873_v20 = vmov 16.0  }
  0x19   : > { %s3050_s3 = sshll.u32 %s3771_s8, 3  ;;  %s2681_s6 = sshll.u32 %s3771_s8, 5  ;;  %2795 = vrcp.f32 %v2872_v17 }
  0x1a   : > { %s3056_s29 = scalar_lea.vmem %s3744_s11, %s3050_s3  ;;  %s3061_s1 = scalar_lea.vmem %s3745_s12, %s2681_s6  ;;  %2797 = vrcp.f32 %v2873_v20 }
  0x1b   : > { %v1034_v0 = vld [vmem:[%s3056_s29] sm:$0xff]  ;;  %s987_s0 = scalar_lea.vmem %s3746_s10, %s3050_s3  ;;  %v3079_v8 = vld [vmem:[%s3061_s1 + $0x8] sm:$0xff]   ;;  %v3084_v11 = vld [vmem:[%s3061_s1 + $0x10] sm:$0xff]   ;;  %s3748_s8 = sld [smem:[#allocation16_spill]] }
  0x1c   : > { %v3065_v1 = vld [vmem:[%s3061_s1] sm:$0xff]   ;;  %v1038_v2 = vsel %vm1037_vm0, %v1034_v0, 0.0  ;;  %v2705_v10 = vunpack.c.l.bf16 %v3079_v8  ;;  %v2709_v12 = vunpack.c.l.bf16 %v3084_v11  ;;  %v2710_v15 = vunpack.c.h.bf16 %v3084_v11  ;;  %v3094_v26 = vld [vmem:[%s3061_s1 + $0x18] sm:$0xff]   ;;  %s3750_s12 = sld [smem:[#allocation12_spill]] }
  0x1d   : > { %v2701_v3 = vunpack.c.l.bf16 %v3065_v1  ;;  %1039 = vadd.xlane.f32.xlu0 %v1038_v2  ;;  %v1128_v5 = vld [vmem:[%s987_s0] sm:$0xff]  ;;  %v2702_v6 = vunpack.c.h.bf16 %v3065_v1  ;;  %v2713_v28 = vunpack.c.l.bf16 %v3094_v26  ;;  %v2706_v53 = vunpack.c.h.bf16 %v3079_v8  ;;  %s3754_s11 = sld [smem:[#allocation19_spill]] }
  0x1e   : > { %v1132_v7 = vsel %vm1037_vm0, %v1128_v5, 0.0  ;;  %v1231_v13 = vsel %vm1224_vm1, %v2705_v10, 0.0  ;;  %v1237_v14 = vsel %vm1224_vm1, %v2709_v12, 0.0  ;;  %v1240_v16 = vsel %vm1224_vm1, %v2710_v15, 0.0  ;;  %s3758_s6 = sld [smem:[#allocation17_spill]] }
  0x1f   : > { %v1225_v4 = vsel %vm1224_vm1, %v2701_v3, 0.0  ;;  %v1228_v9 = vsel %vm1224_vm1, %v2702_v6, 0.0  ;;  %v2796_v18 = vpop.eup %2795  ;;  %v1243_v30 = vsel %vm1224_vm1, %v2713_v28, 0.0  ;;  %v1234_v56 = vsel %vm1224_vm1, %v2706_v53, 0.0  ;;  %s3764_s1 = sld [smem:[#allocation11_spill]] }
  0x20   : > { %1226 = vadd.xlane.f32.xlu2 %v1225_v4  ;;  %v1042_v19 = vmul.f32 32.0, %v2796_v18  ;;  %v2798_v22 = vpop.eup %2797  ;;  %vm1046_vm2 = vweird.f32 %v2796_v18  ;;  %v2714_v4 = vunpack.c.h.bf16 %v3094_v26 }
  0x21   : > { %v1250_v24 = vmul.f32 16.0, %v2798_v22  ;;  %vm1254_vm3 = vweird.f32 %v2798_v22  ;;  %s3749_s10 = smov %s3748_s8  ;;  %v2685_v11 = vld [vmem:[%s3748_s8 + $0x8] sm:$0xff]  ;;  %s3751_s8 = sld [smem:[#allocation13_spill]] }
  0x22   : > { %v1043_v21 = vsub.f32 1.0, %v1042_v19  ;;  %1199 = vmatpush.bf16.msra.mxu1 %v2685_v11 }
  0x23   : > { %v1251_v27 = vsub.f32 1.0, %v1250_v24 }
  0x24   : > { %v1044_v23 = vmul.f32 %v2796_v18, %v1043_v21 }
  0x25   : > { %1133 = vadd.xlane.f32.xlu0 %v1132_v7  ;;  %v1252_v32 = vmul.f32 %v2798_v22, %v1251_v27 }
  0x26   : > { %v1045_v25 = vadd.f32 %v2796_v18, %v1044_v23 }
  0x27   : > { %v1253_v36 = vadd.f32 %v2798_v22, %v1252_v32  ;;  %s3752_s0 = smov %s3751_s8 }
  0x28   : > { %1229 = vadd.xlane.f32.xlu2 %v1228_v9  ;;  %v3097_v29 = vsel %vm1046_vm2, %v2796_v18, %v1045_v25  ;;  %v2683_v9 = vld [vmem:[%s3747_s2 + $0x8] sm:$0xff] }
  0x29   : > { %v3108_v39 = vsel %vm1254_vm3, %v2798_v22, %v1253_v36  ;;  %1105 = vmatpush.bf16.msra.mxu0 %v2683_v9 }
  0x2d   : > { %1232 = vadd.xlane.f32.xlu0 %v1231_v13 }
  0x30   : > { %1238 = vadd.xlane.f32.xlu2 %v1237_v14  ;;  %v2684_v14 = vld [vmem:[%s3749_s10] sm:$0xff] }
  0x31   : > { %1200 = vmatpush.bf16.msra.mxu1 %v2684_v14 }
  0x35   : > { %1241 = vadd.xlane.f32.xlu0 %v1240_v16 }
  0x3d   : > { %1244 = vadd.xlane.f32.xlu0 %v1243_v30 }
  0x90   : > { %v1040_v31 = vpop.xlane.xlu0 %1039 }
  0x91   : > { %v1048_v33 = vmul.f32 %v3097_v29, %v1040_v31 }
  0x93   : > { %v1227_v34 = vpop.xlane.xlu2 %1226  ;;  %v3103_v35 = vsub.f32 %v1034_v0, %v1048_v33 }
  0x94   : > { %v1256_v50 = vmul.f32 %v3108_v39, %v1227_v34  ;;  %v2686_v34 = vld [vmem:[%s3710_s13] sm:$0xff] }
  0x95   : > { %v1050_v37 = vmul.f32 %v3103_v35, %v3103_v35  ;;  %1465 = vmatpush.bf16.msra.mxu2 %v2686_v34 }
  0x96   : > { %v3129_v55 = vsub.f32 %v2701_v3, %v1256_v50 }
  0x97   : > { %v1051_v38 = vsel %vm1037_vm0, %v1050_v37, 0.0 }
  0x98   : > { %1052 = vadd.xlane.f32.xlu1 %v1051_v38  ;;  %v1134_v40 = vpop.xlane.xlu0 %1133  ;;  %v1272_v61 = vmul.f32 %v3129_v55, %v3129_v55 }
  0x99   : > { %v1142_v41 = vmul.f32 %v1134_v40, %v3097_v29 }
  0x9a   : > { %v1280_v63 = vsel %vm1224_vm1, %v1272_v61, 0.0 }
  0x9b   : > { %v1230_v42 = vpop.xlane.xlu2 %1229  ;;  %v3111_v43 = vsub.f32 %v1128_v5, %v1142_v41 }
  0x9c   : > { %v1257_v44 = vmul.f32 %v3108_v39, %v1230_v42 }
  0x9d   : > { %v1144_v46 = vmul.f32 %v3111_v43, %v3111_v43 }
  0x9e   : > { %v3114_v45 = vsub.f32 %v2702_v6, %v1257_v44  ;;  %v1246_v6 = vsel %vm1224_vm1, %v2714_v4, 0.0 }
  0x9f   : > { %v1145_v47 = vsel %vm1037_vm0, %v1144_v46, 0.0  ;;  %v2778_v46 = vld [vmem:[%s3750_s12] ss:$0 sm:$0xff] }
  0xa0   : > { %v1273_v48 = vmul.f32 %v3114_v45, %v3114_v45  ;;  %1146 = vadd.xlane.f32.xlu1 %v1145_v47  ;;  %v1233_v49 = vpop.xlane.xlu0 %1232 }
  0xa1   : > { %v1258_v52 = vmul.f32 %v3108_v39, %v1233_v49 }
  0xa2   : > { %v1283_v51 = vsel %vm1224_vm1, %v1273_v48, 0.0 }
  0xa3   : > { %1284 = vadd.xlane.f32.xlu2 %v1283_v51  ;;  %v3125_v54 = vsub.f32 %v2705_v10, %v1258_v52  ;;  %v1239_v1 = vpop.xlane.xlu2 %1238  ;;  %v2682_v10 = vld [vmem:[%s3747_s2] sm:$0xff] }
  0xa4   : > { %v1260_v3 = vmul.f32 %v3108_v39, %v1239_v1  ;;  %1106 = vmatpush.bf16.msra.mxu0 %v2682_v10  ;;  %v2779_v52 = vld [vmem:[%s3751_s8] ss:$0 sm:$0xff]  ;;  %s3753_s8 = sld [smem:[#allocation18_spill]] }
  0xa5   : > { %v1274_v57 = vmul.f32 %v3125_v54, %v3125_v54 }
  0xa6   : > { %v3148_v5 = vsub.f32 %v2709_v12, %v1260_v3  ;;  %v2780_v3 = vld [vmem:[%s3750_s12] ss:$0 sm:$0xff] }
  0xa7   : > { %v1286_v58 = vsel %vm1224_vm1, %v1274_v57, 0.0 }
  0xa8   : > { %1235 = vadd.xlane.f32.xlu1 %v1234_v56  ;;  %v1242_v59 = vpop.xlane.xlu0 %1241  ;;  %v1276_v7 = vmul.f32 %v3148_v5, %v3148_v5 }
  0xa9   : > { %v1261_v60 = vmul.f32 %v3108_v39, %v1242_v59 }
  0xaa   : > { %v1292_v8 = vsel %vm1224_vm1, %v1276_v7, 0.0 }
  0xab   : > { %1287 = vadd.xlane.f32.xlu2 %v1286_v58  ;;  %v3138_v62 = vsub.f32 %v2710_v15, %v1261_v60 }
  0xad   : > { %v1277_v0 = vmul.f32 %v3138_v62, %v3138_v62 }
  0xaf   : > { %v1295_v2 = vsel %vm1224_vm1, %v1277_v0, 0.0 }
  0xb0   : > { %1281 = vadd.xlane.f32.xlu1 %v1280_v63  ;;  %v1245_v25 = vpop.xlane.xlu0 %1244 }
  0xb1   : > { %v1262_v32 = vmul.f32 %v3108_v39, %v1245_v25 }
  0xb3   : > { %1296 = vadd.xlane.f32.xlu2 %v1295_v2  ;;  %v3185_v44 = vsub.f32 %v2713_v28, %v1262_v32 }
  0xb5   : > { %v1278_v59 = vmul.f32 %v3185_v44, %v3185_v44 }
  0xb7   : > { %v1298_v2 = vsel %vm1224_vm1, %v1278_v59, 0.0 }
  0xb8   : > { %1247 = vadd.xlane.f32.xlu1 %v1246_v6 }
  0xc0   : > { %1293 = vadd.xlane.f32.xlu1 %v1292_v8  ;;  %v2781_v8 = vld [vmem:[%s3752_s0] ss:$0 sm:$0xff] }
 0x10b   : > { %v1053_v12 = vpop.xlane.xlu1 %1052 }
 0x10c   : > { %v1054_v13 = vmul.f32 %v1053_v12, %v3097_v29 }
 0x10e   : > { %v1055_v15 = vadd.f32 1e-05, %v1054_v13 }
 0x110   : > { %2799 = vrsqrt.f32 %v1055_v15  ;;  %vm1062_vm5 = vweird.f32 %v1055_v15 }
 0x113   : > { %v1147_v16 = vpop.xlane.xlu1 %1146 }
 0x114   : > { %v1148_v17 = vmul.f32 %v1147_v16, %v3097_v29 }
 0x116   : > { %v1285_v18 = vpop.xlane.xlu2 %1284  ;;  %v2800_v19 = vpop.eup %2799  ;;  %v1149_v20 = vadd.f32 1e-05, %v1148_v17 }
 0x117   : > { %v1305_v21 = vmul.f32 %v1285_v18, %v3108_v39  ;;  %v1057_v22 = vmul.f32 %v2800_v19, %v1055_v15  ;;  %vm1063_vm4 = vweird.f32 %v2800_v19 }
 0x118   : > { %2801 = vrsqrt.f32 %v1149_v20  ;;  %vm1064_vm6 = vmor %vm1062_vm5, %vm1063_vm4  ;;  %vm1156_vm8 = vweird.f32 %v1149_v20 }
 0x119   : > { %v3171_v23 = vadd.f32 1e-05, %v1305_v21  ;;  %v1058_v24 = vmul.f32 %v2800_v19, %v1057_v22 }
 0x11b   : > { %2803 = vrsqrt.f32 %v3171_v23  ;;  %v1059_v27 = vmul.f32 0.5, %v1058_v24  ;;  %v1236_v30 = vpop.xlane.xlu1 %1235  ;;  %vm1336_vm10 = vweird.f32 %v3171_v23 }
 0x11c   : > { %v1259_v31 = vmul.f32 %v3108_v39, %v1236_v30 }
 0x11d   : > { %v1060_v33 = vsub.f32 1.5, %v1059_v27 }
 0x11e   : > { %v2802_v36 = vpop.eup %2801  ;;  %v3179_v37 = vsub.f32 %v2706_v53, %v1259_v31  ;;  %v3229_v31 = vld [vmem:[%s3754_s11] ss:$0 sm:$0xff]  ;;  %s2875_s11 = smov 120  }
 0x11f   : > { %v1061_v38 = vmul.f32 %v2800_v19, %v1060_v33  ;;  %v1151_v40 = vmul.f32 %v2802_v36, %v1149_v20  ;;  %vm1157_vm7 = vweird.f32 %v2802_v36 }
 0x120   : > { %v1275_v42 = vmul.f32 %v3179_v37, %v3179_v37  ;;  %vm1158_vm9 = vmor %vm1156_vm8, %vm1157_vm7 }
 0x121   : > { %v2804_v41 = vpop.eup %2803  ;;  %v1065_v47 = vsel %vm1064_vm6, %v2800_v19, %v1061_v38  ;;  %v1152_v48 = vmul.f32 %v2802_v36, %v1151_v40 }
 0x122   : > { %v1331_v49 = vmul.f32 %v2804_v41, %v3171_v23  ;;  %v1289_v50 = vsel %vm1224_vm1, %v1275_v42, 0.0  ;;  %v1066_v51 = vmul.f32 %v1065_v47, %v3103_v35  ;;  %vm1337_vm11 = vweird.f32 %v2804_v41  ;;  %v3222_v23 = vld [vmem:[%s3753_s8] ss:$0 sm:$0xff] }
 0x123   : > { %v1153_v53 = vmul.f32 0.5, %v1152_v48  ;;  %1290 = vadd.xlane.f32.xlu0 %v1289_v50  ;;  %v1282_v28 = vpop.xlane.xlu1 %1281  ;;  %vm1338_vm12 = vmor %vm1336_vm10, %vm1337_vm11 }
 0x124   : > { %v1332_v56 = vmul.f32 %v2804_v41, %v1331_v49  ;;  %v1304_v57 = vmul.f32 %v1282_v28, %v3108_v39  ;;  %v1070_v58 = vmul.f32 %v2778_v46, %v1066_v51 }
 0x125   : > { %v1154_v60 = vsub.f32 1.5, %v1153_v53 }
 0x126   : > { %v1312_v61 = vadd.f32 1e-05, %v1304_v57  ;;  %v1074_v63 = vadd.f32 %v2779_v52, %v1070_v58  ;;  %v1333_v35 = vmul.f32 0.5, %v1332_v56 }
 0x127   : > { %v1155_v0 = vmul.f32 %v2802_v36, %v1154_v60 }
 0x128   : > { %2805 = vrsqrt.f32 %v1312_v61  ;;  %v1075_v1 = vpack.c.bf16 %v1074_v63, %v1074_v63  ;;  %v1334_v9 = vsub.f32 1.5, %v1333_v35  ;;  %vm1326_vm13 = vweird.f32 %v1312_v61 }
 0x129   : > { %v1159_v6 = vsel %vm1158_vm9, %v2802_v36, %v1155_v0  ;;  %v1288_v36 = vpop.xlane.xlu2 %1287 }
 0x12a   : > { %2598 = vmatmul.msk.bf16.vlgmr.msra.gmra.mxu0 %vm1037_vm0, %v1075_v1  ;;  %v1160_v7 = vmul.f32 %v1159_v6, %v3111_v43  ;;  %v1335_v43 = vmul.f32 %v2804_v41, %v1334_v9  ;;  %v1306_v38 = vmul.f32 %v1288_v36, %v3108_v39 }
 0x12b   : > { %v1248_v10 = vpop.xlane.xlu1 %1247  ;;  %1299 = vadd.xlane.f32.xlu0 %v1298_v2 }
 0x12c   : > { %v1263_v11 = vmul.f32 %v3108_v39, %v1248_v10  ;;  %v1164_v12 = vmul.f32 %v2780_v3, %v1160_v7  ;;  %v1339_v21 = vsel %vm1338_vm12, %v2804_v41, %v1335_v43 }
 0x12e   : > { %v2806_v13 = vpop.eup %2805  ;;  %v3212_v14 = vsub.f32 %v2714_v4, %v1263_v11  ;;  %v1168_v15 = vadd.f32 %v2781_v8, %v1164_v12  ;;  %v1401_v4 = vmul.f32 %v1339_v21, %v3114_v45  ;;  %v2784_v8 = vld [vmem:[%s3757_s4] ss:$0 sm:$0xff]  ;;  %s3763_s4 = sld [smem:[#allocation10_spill]] }
 0x12f   : > { %v1321_v16 = vmul.f32 %v2806_v13, %v1312_v61  ;;  %vm1327_vm14 = vweird.f32 %v2806_v13 }
 0x130   : > { %v1169_v17 = vpack.c.bf16 %v1168_v15, %v1168_v15  ;;  %v1279_v18 = vmul.f32 %v3212_v14, %v3212_v14  ;;  %vm1328_vm15 = vmor %vm1326_vm13, %vm1327_vm14  ;;  %v1412_v30 = vmul.f32 %v3222_v23, %v1401_v4  ;;  %vm1123_vm13 = vcmask 64512  }
 0x131   : > { %v1322_v19 = vmul.f32 %v2806_v13, %v1321_v16  ;;  %v1297_v41 = vpop.xlane.xlu2 %1296  ;;  %v2874_v16 = vmov 0  }
 0x132   : > { %2607 = vmatmul.msk.bf16.vlgmr.msra.gmra.mxu1 %vm1037_vm0, %v1169_v17  ;;  %v1301_v20 = vsel %vm1224_vm1, %v1279_v18, 0.0  ;;  %v1423_v33 = vadd.f32 %v3229_v31, %v1412_v30  ;;  %v1309_v47 = vmul.f32 %v1297_v41, %v3108_v39  ;;  %2759 = vset.pattern.permute.xlu2 %v2874_v16 }
 0x133   : > { %v1323_v22 = vmul.f32 0.5, %v1322_v19  ;;  %1302 = vadd.xlane.f32.xlu1 %v1301_v20  ;;  %v1294_v40 = vpop.xlane.xlu1 %1293  ;;  %2761 = vset.pattern.permute.xlu0 %v2874_v16 }
 0x134   : > { %v1308_v46 = vmul.f32 %v1294_v40, %v3108_v39  ;;  %v3240_v50 = vadd.f32 1e-05, %v1309_v47  ;;  %2757 = vset.pattern.permute.xlu1 %v2874_v16  ;;  %s1007_s8 = scalar_lea.vmem %s3763_s4, %s3050_s3  ;;  %s1014_s4 = scalar_lea.vmem %s3764_s1, %s3050_s3 }
 0x135   : > { %v1324_v26 = vsub.f32 1.5, %v1323_v22  ;;  %s2886_s1 = smov 72  }
 0x136   : > { %v3238_v49 = vadd.f32 1e-05, %v1308_v46  ;;  %vm1376_vm10 = vweird.f32 %v3240_v50 }
 0x137   : > { %v1325_v24 = vmul.f32 %v2806_v13, %v1324_v26 }
 0x138   : > { %vm1366_vm8 = vweird.f32 %v3238_v49 }
 0x139   : > { %v1329_v25 = vsel %vm1328_vm15, %v2806_v13, %v1325_v24 }
 0x13a   : > { %v1400_v27 = vmul.f32 %v1329_v25, %v3129_v55  ;;  %v1314_v55 = vadd.f32 1e-05, %v1306_v38  ;;  %v2785_v25 = vld [vmem:[%s3758_s6] ss:$0 sm:$0xff]  ;;  %s2882_s6 = smov 104  }
 0x13c   : > { %v1411_v32 = vmul.f32 %v3222_v23, %v1400_v27  ;;  %2807 = vrsqrt.f32 %v1314_v55  ;;  %vm1346_vm2 = vweird.f32 %v1314_v55 }
 0x13d   : > { %2809 = vrsqrt.f32 %v3238_v49 }
 0x13e   : > { %v1422_v45 = vadd.f32 %v3229_v31, %v1411_v32  ;;  %2811 = vrsqrt.f32 %v3240_v50 }
 0x140   : > { %v1430_v34 = vpack.c.bf16 %v1423_v33, %v1422_v45 }
 0x142   : > { %2612 = vmatmul.msk.bf16.vlgmr.msra.gmra.mxu2 %vm1224_vm1, %v1430_v34  ;;  %v2808_v42 = vpop.eup %2807 }
 0x143   : > { %v1341_v48 = vmul.f32 %v2808_v42, %v1314_v55  ;;  %v3245_v57 = vpop.eup %2809  ;;  %vm1347_vm3 = vweird.f32 %v2808_v42 }
 0x144   : > { %v3247_v60 = vpop.eup %2811  ;;  %v1361_v61 = vmul.f32 %v3245_v57, %v3238_v49  ;;  %vm3254_vm4 = vmor %vm1346_vm2, %vm1347_vm3  ;;  %vm1367_vm9 = vweird.f32 %v3245_v57 }
 0x145   : > { %v1342_v51 = vmul.f32 %v2808_v42, %v1341_v48  ;;  %v1371_v1 = vmul.f32 %v3247_v60, %v3240_v50  ;;  %vm1377_vm11 = vweird.f32 %v3247_v60  ;;  %vm3290_vm12 = vmor %vm1366_vm8, %vm1367_vm9  ;;  %vm1579_vm8 = vcmask 1043459  }
 0x146   : > { %v1362_v6 = vmul.f32 %v3245_v57, %v1361_v61  ;;  %vm3302_vm14 = vmor %vm1376_vm10, %vm1377_vm11  ;;  %vm1581_vm9 = vcmask 1044484   ;;  %vm1583_vm10 = vcmask 1045509   ;;  %vm1585_vm11 = vcmask 1046534  }
 0x147   : > { %v1343_v28 = vmul.f32 0.5, %v1342_v51  ;;  %v1372_v11 = vmul.f32 %v3247_v60, %v1371_v1 }
 0x148   : > { %v1363_v17 = vmul.f32 0.5, %v1362_v6 }
 0x149   : > { %v1344_v58 = vsub.f32 1.5, %v1343_v28  ;;  %v1373_v22 = vmul.f32 0.5, %v1372_v11 }
 0x14a   : > { %v1364_v4 = vsub.f32 1.5, %v1363_v17 }
 0x14b   : > { %v1345_v35 = vmul.f32 %v2808_v42, %v1344_v58  ;;  %v1374_v30 = vsub.f32 1.5, %v1373_v22 }
 0x14c   : > { %v1365_v36 = vmul.f32 %v3245_v57, %v1364_v4 }
 0x14d   : > { %v1349_v10 = vsel %vm3254_vm4, %v2808_v42, %v1345_v35  ;;  %v1375_v42 = vmul.f32 %v3247_v60, %v1374_v30  ;;  %v1487_v35 = vld [vmem:[%s1007_s8] sm:$0xff]  ;;  %s2878_s8 = smov 96  }
 0x14e   : > { %v1402_v20 = vmul.f32 %v1349_v10, %v3125_v54  ;;  %v2786_v10 = vld [vmem:[%s3711_s14] ss:$0 sm:$0xff] }
 0x14f   : > { %v1379_v58 = vsel %vm3302_vm14, %v3247_v60, %v1375_v42  ;;  %vm1114_vm14 = vcmask 7168  }
 0x150   : > { %v1413_v27 = vmul.f32 %v3222_v23, %v1402_v20 }
 0x152   : > { %v1424_v40 = vadd.f32 %v3229_v31, %v1413_v27 }
 0x196   : > { %v1291_v52 = vpop.xlane.xlu0 %1290 }
 0x197   : > { %v1307_v53 = vmul.f32 %v1291_v52, %v3108_v39  ;;  %v1369_v52 = vsel %vm3290_vm12, %v3245_v57, %v1365_v36  ;;  %vm1587_vm12 = vcmask 1047559  }
 0x198   : > { %v1404_v57 = vmul.f32 %v1369_v52, %v3148_v5 }
 0x199   : > { %v1315_v56 = vadd.f32 1e-05, %v1307_v53 }
 0x19b   : > { %2813 = vrsqrt.f32 %v1315_v56  ;;  %vm1356_vm6 = vweird.f32 %v1315_v56 }
 0x19e   : > { %v1300_v59 = vpop.xlane.xlu0 %1299 }
 0x19f   : > { %v1310_v0 = vmul.f32 %v1300_v59, %v3108_v39 }
 0x1a1   : > { %v2814_v63 = vpop.eup %2813  ;;  %v3262_v9 = vadd.f32 1e-05, %v1310_v0  ;;  %v1405_v0 = vmul.f32 %v1379_v58, %v3138_v62 }
 0x1a2   : > { %v1351_v2 = vmul.f32 %v2814_v63, %v1315_v56  ;;  %vm1357_vm5 = vweird.f32 %v2814_v63 }
 0x1a3   : > { %2815 = vrsqrt.f32 %v3262_v9  ;;  %vm1358_vm7 = vmor %vm1356_vm6, %vm1357_vm5  ;;  %v1416_v60 = vmul.f32 %v3222_v23, %v1405_v0  ;;  %vm1386_vm3 = vweird.f32 %v3262_v9 }
 0x1a4   : > { %v1352_v7 = vmul.f32 %v2814_v63, %v1351_v2  ;;  %v1415_v2 = vmul.f32 %v3222_v23, %v1404_v57 }
 0x1a6   : > { %v1353_v12 = vmul.f32 0.5, %v1352_v7  ;;  %v1303_v13 = vpop.xlane.xlu1 %1302  ;;  %v1426_v5 = vadd.f32 %v3229_v31, %v1415_v2  ;;  %v1427_v7 = vadd.f32 %v3229_v31, %v1416_v60 }
 0x1a7   : > { %v1311_v15 = vmul.f32 %v1303_v13, %v3108_v39  ;;  %v1108_v43 = vpop.f32.mrf.mxu0 }
 0x1a8   : > { %v1354_v18 = vsub.f32 1.5, %v1353_v12  ;;  %v1109_v19 = vadd.f32 %v2784_v8, %v1108_v43  ;;  %v1432_v11 = vpack.c.bf16 %v1427_v7, %v1426_v5 }
 0x1a9   : > { %v3273_v21 = vadd.f32 1e-05, %v1311_v15  ;;  %v3284_v32 = vpop.eup %2815 }
 0x1aa   : > { %v1355_v39 = vmul.f32 %v2814_v63, %v1354_v18  ;;  %v1112_v26 = vmul.f32 0.35355338, %v1109_v19  ;;  %v1381_v46 = vmul.f32 %v3284_v32, %v3262_v9  ;;  %vm1387_vm4 = vweird.f32 %v3284_v32 }
 0x1ab   : > { %2817 = vrsqrt.f32 %v3273_v21  ;;  %vm1396_vm15 = vweird.f32 %v3273_v21  ;;  %vm1388_vm6 = vmor %vm1386_vm3, %vm1387_vm4 }
 0x1ac   : > { %v1359_v24 = vsel %vm1358_vm7, %v2814_v63, %v1355_v39  ;;  %1113 = vst.msk [vmem:[#allocation2] sm:$0xff] %vm1037_vm0, %v1112_v26  ;;  %v1382_v59 = vmul.f32 %v3284_v32, %v1381_v46  ;;  %v2876_v39 = vmov 1   ;;  %v2877_v46 = vmov 3  }
 0x1ad   : > { %v1403_v54 = vmul.f32 %v1359_v24, %v3179_v37  ;;  %vm1577_vm7 = vcmask 1042434  }
 0x1ae   : > { %v1383_v1 = vmul.f32 0.5, %v1382_v59 }
 0x1af   : > { %v1110_v45 = vpop.f32.mrf.mxu0  ;;  %v1202_v33 = vpop.f32.mrf.mxu1  ;;  %v1414_v34 = vmul.f32 %v3222_v23, %v1403_v54 }
 0x1b0   : > { %v1203_v37 = vadd.f32 %v2785_v25, %v1202_v33  ;;  %v1384_v6 = vsub.f32 1.5, %v1383_v1 }
 0x1b1   : > { %v2818_v38 = vpop.eup %2817  ;;  %v1425_v41 = vadd.f32 %v3229_v31, %v1414_v34 }
 0x1b2   : > { %v1391_v47 = vmul.f32 %v2818_v38, %v3273_v21  ;;  %v3300_v48 = vpack.c.bf16 %v1203_v37, %v1203_v37  ;;  %vm1397_vm2 = vweird.f32 %v2818_v38  ;;  %v1385_v8 = vmul.f32 %v3284_v32, %v1384_v6 }
 0x1b3   : > { %v1431_v50 = vpack.c.bf16 %v1425_v41, %v1424_v40  ;;  %v1530_v51 = vld [vmem:[#allocation2] sm:$0xff]  ;;  %vm1398_vm5 = vmor %vm1396_vm15, %vm1397_vm2  ;;  %vm1649_vm15 = vcmask 1043456  }
 0x1b4   : > { %v1392_v53 = vmul.f32 %v2818_v38, %v1391_v47  ;;  %1672 = vrot.lane.b32.xlu2 %v3300_v48, %s2875_s11  ;;  %v1595_v56 = vsel %vm1123_vm13, %v3300_v48, 0  ;;  %v3312_v28 = vpack.c.bf16 %v1530_v51, %v1530_v51  ;;  %v1389_v9 = vsel %vm1388_vm6, %v3284_v32, %v1385_v8  ;;  %v1488_v40 = vld [vmem:[%s1014_s4] sm:$0xff] }
 0x1b5   : > { %2613 = vmatmul.msk.bf16.gmra.mxu2 %vm1224_vm1, %v1431_v50  ;;  %1604 = vmatpush.bf16.xpose.msra.mxu3 %v1595_v56  ;;  %v1406_v17 = vmul.f32 %v1389_v9, %v3185_v44 }
 0x1b6   : > { %1670 = vrot.lane.b32.xlu0 %v3312_v28, %s2875_s11  ;;  %v1393_v63 = vmul.f32 0.5, %v1392_v53  ;;  %s2884_s11 = smov 112  }
 0x1b7   : > { %v1204_v61 = vpop.f32.mrf.mxu1  ;;  %v1417_v20 = vmul.f32 %v3222_v23, %v1406_v17 }
 0x1b8   : > { %v1394_v3 = vsub.f32 1.5, %v1393_v63  ;;  %v1565_v63 = vlaneseq }
 0x1ba   : > { %v1395_v62 = vmul.f32 %v2818_v38, %v1394_v3 }
 0x1bc   : > { %2617 = vmatmul.msk.bf16.vlgmr.msra.gmra.mxu3 %vm1123_vm13, %v3312_v28  ;;  %1523 = vperm.xlu2 %2759, %v1487_v35   ;;  %v1399_v12 = vsel %vm1398_vm5, %v2818_v38, %v1395_v62  ;;  %v3400_v35 = vand.u32 127, %v1565_v63  ;;  %v2879_v63 = vmov -1e+30  }
 0x1bd   : > { %v1407_v43 = vmul.f32 %v1399_v12, %v3212_v14  ;;  %v1428_v14 = vadd.f32 %v3229_v31, %v1417_v20  ;;  %1116 = vst.msk [vmem:[#allocation3 + $0x8] sm:$0xff] %vm1114_vm14, %v2879_v63 }
 0x1be   : > { %1115 = vst.msk [vmem:[#allocation3] sm:$0xff] %vm1114_vm14, %v2879_v63 }
 0x1bf   : > { %v1418_v18 = vmul.f32 %v3222_v23, %v1407_v43  ;;  %1117 = vst.msk [vmem:[#allocation3 + $0x10] sm:$0xff] %vm1114_vm14, %v2879_v63 }
 0x1c0   : > { %1118 = vst.msk [vmem:[#allocation3 + $0x18] sm:$0xff] %vm1114_vm14, %v2879_v63 }
 0x1c1   : > { %v1429_v22 = vadd.f32 %v3229_v31, %v1418_v18 }
 0x1c3   : > { %v1433_v26 = vpack.c.bf16 %v1429_v22, %v1428_v14 }
 0x1c5   : > { %v1467_v13 = vpop.f32.mrf.mxu2  ;;  %2614 = vmatmul.msk.bf16.gmra.mxu2 %vm1224_vm1, %v1432_v11 }
 0x1c6   : > { %v3341_v15 = vadd.f32 %v2786_v10, %v1467_v13 }
 0x1c8   : > { %1542 = vperm.xlu1 %2757, %v3341_v15  }
 0x1cd   : > { %v1469_v19 = vpop.f32.mrf.mxu2 }
 0x1ce   : > { %v3348_v21 = vadd.f32 %v2786_v10, %v1469_v19 }
 0x1d0   : > { %2758 = vset.pattern.permute.xlu1 %v2876_v39  ;;  %1545 = vperm.xlu2 %2759, %v3348_v21  }
 0x1d1   : > { %1675 = vperm.xlu1 %2758, %v3341_v15  }
 0x1d5   : > { %2615 = vmatmul.msk.bf16.gmra.mxu2 %vm1224_vm1, %v1433_v26  ;;  %vm1575_vm1 = vcmask 1041409  }
 0x1d8   : > { %2760 = vset.pattern.permute.xlu2 %v2876_v39 }
 0x1d9   : > { %1678 = vperm.xlu2 %2760, %v3348_v21  }
 0x1e1   : > { %2763 = vset.pattern.permute.xlu2 %v2874_v16 }
 0x20e   : > { %v1673_v44 = vpop.permute.xlu2 %1672 }
 0x20f   : > { %v1718_v23 = vsel %vm1123_vm13, %v1673_v44, 0 }
 0x210   : > { %1727 = vmatpush.bf16.xpose.msrb.mxu1 %v1718_v23 }
 0x216   : > { %v1524_v49 = vpop.permute.xlu2 %1523 }
 0x228   : > { %v1671_v4 = vpop.permute.xlu0 %1670 }
 0x229   : > { %2619 = vmatmul.msk.bf16.vlgmr.msrb.gmra.mxu1 %vm1123_vm13, %v1671_v4 }
 0x22a   : > { %v1546_v51 = vpop.permute.xlu2 %1545 }
 0x22b   : > { %v1568_v6 = vperm.slane %v1546_v51, %v3400_v35 }
 0x233   : > { %v1679_v53 = vpop.permute.xlu2 %1678 }
 0x234   : > { %v1699_v7 = vperm.slane %v1679_v53, %v3400_v35 }
 0x238   : > { %v1472_v24 = vpop.f32.mrf.mxu2 }
 0x239   : > { %v3359_v25 = vadd.f32 %v2786_v10, %v1472_v24 }
 0x23a   : > { %v1543_v47 = vpop.permute.xlu1 %1542 }
 0x23b   : > { %1548 = vperm.xlu0 %2761, %v3359_v25   ;;  %v1567_v2 = vperm.slane %v1543_v47, %v3400_v35 }
 0x23d   : > { %v1576_v8 = vsel %vm1575_vm1, %v1568_v6, %v1567_v2  ;;  %v3461_v2 = vld [vmem:[#allocation3] sm:$0xff] }
 0x23f   : > { %v3362_v31 = vpop.f32.mrf.mxu3 }
 0x240   : > { %v1474_v54 = vpop.f32.mrf.mxu2 }
 0x241   : > { %v3364_v27 = vadd.f32 %v2786_v10, %v1474_v54 }
 0x243   : > { %1684 = vperm.xlu1 %2758, %v3364_v27   ;;  %1551 = vperm.xlu2 %2763, %v3364_v27   ;;  %v1676_v50 = vpop.permute.xlu1 %1675 }
 0x244   : > { %2762 = vset.pattern.permute.xlu0 %v2876_v39  ;;  %v1698_v5 = vperm.slane %v1676_v50, %v3400_v35 }
 0x245   : > { %1681 = vperm.xlu0 %2762, %v3359_v25  }
 0x246   : > { %v1706_v13 = vsel %vm1575_vm1, %v1699_v7, %v1698_v5 }
 0x247   : > { %v1608_v30 = vpop.f32.mrf.mxu3 }
 0x248   : > { %v1477_v32 = vpop.f32.mrf.mxu2 }
 0x249   : > { %v3369_v45 = vadd.f32 %v2786_v10, %v1477_v32 }
 0x24b   : > { %2764 = vset.pattern.permute.xlu1 %v2874_v16 }
 0x24c   : > { %1554 = vperm.xlu1 %2764, %v3369_v45  }
 0x24d   : > { %1687 = vperm.xlu0 %2762, %v3369_v45  }
 0x250   : > { %v1479_v33 = vpop.f32.mrf.mxu2 }
 0x251   : > { %v3374_v34 = vadd.f32 %v2786_v10, %v1479_v33 }
 0x253   : > { %1557 = vperm.xlu2 %2763, %v3374_v34  }
 0x254   : > { %2765 = vset.pattern.permute.xlu1 %v2876_v39 }
 0x255   : > { %1690 = vperm.xlu1 %2765, %v3374_v34  }
 0x258   : > { %v1482_v36 = vpop.f32.mrf.mxu2 }
 0x259   : > { %v3378_v37 = vadd.f32 %v2786_v10, %v1482_v36 }
 0x25b   : > { %1693 = vperm.xlu0 %2762, %v3378_v37  }
 0x25d   : > { %2766 = vset.pattern.permute.xlu1 %v2874_v16 }
 0x25e   : > { %1560 = vperm.xlu1 %2766, %v3378_v37  }
 0x260   : > { %v1484_v38 = vpop.f32.mrf.mxu2 }
 0x261   : > { %v3383_v55 = vadd.f32 %v2786_v10, %v1484_v38 }
 0x263   : > { %1563 = vperm.xlu2 %2763, %v3383_v55   ;;  %2768 = vset.pattern.permute.xlu0 %v2874_v16 }
 0x26b   : > { %2767 = vset.pattern.permute.xlu2 %v2876_v39 }
 0x26c   : > { %1696 = vperm.xlu2 %2767, %v3383_v55  }
 0x274   : > { %2769 = vset.pattern.permute.xlu2 %v2874_v16 }
 0x293   : > { %1489 = vxpose.xlu1.b32.start.end [1/1] (short) (narrow) %v1488_v40, 8 }
 0x29d   : > { %v1552_v59 = vpop.permute.xlu2 %1551 }
 0x29e   : > { %v1570_v9 = vperm.slane %v1552_v59, %v3400_v35 }
 0x2a6   : > { %v3393_v41 = vpop.f32.mrf.mxu1 }
 0x2ad   : > { %v1549_v56 = vpop.permute.xlu0 %1548  ;;  %v1558_v61 = vpop.permute.xlu2 %1557 }
 0x2ae   : > { %v1731_v42 = vpop.f32.mrf.mxu1  ;;  %v1569_v3 = vperm.slane %v1549_v56, %v3400_v35  ;;  %v1572_v44 = vperm.slane %v1558_v61, %v3400_v35 }
 0x2b0   : > { %v1578_v11 = vsel %vm1577_vm7, %v1569_v3, %v1576_v8  ;;  %v2883_v8 = vmov 2  }
 0x2b1   : > { %v1580_v20 = vsel %vm1579_vm8, %v1570_v9, %v1578_v11 }
 0x2b5   : > { %v1685_v52 = vpop.permute.xlu1 %1684 }
 0x2b6   : > { %v1701_v19 = vperm.slane %v1685_v52, %v3400_v35 }
 0x2b7   : > { %v1682_v57 = vpop.permute.xlu0 %1681 }
 0x2b8   : > { %v1700_v62 = vperm.slane %v1682_v57, %v3400_v35 }
 0x2ba   : > { %v1707_v17 = vsel %vm1577_vm7, %v1700_v62, %v1706_v13 }
 0x2bb   : > { %v1708_v23 = vsel %vm1579_vm8, %v1701_v19, %v1707_v17 }
 0x2bd   : > { %v1564_v60 = vpop.permute.xlu2 %1563 }
 0x2be   : > { %v1555_v58 = vpop.permute.xlu1 %1554  ;;  %v1574_v40 = vperm.slane %v1564_v60, %v3400_v35 }
 0x2bf   : > { %v1688_v1 = vpop.permute.xlu0 %1687  ;;  %v1571_v12 = vperm.slane %v1555_v58, %v3400_v35 }
 0x2c0   : > { %v1702_v18 = vperm.slane %v1688_v1, %v3400_v35  ;;  %v3459_v1 = vld [vmem:[#allocation3 + $0x8] sm:$0xff] }
 0x2c1   : > { %v1582_v39 = vsel %vm1581_vm9, %v1571_v12, %v1580_v20 }
 0x2c2   : > { %v1709_v4 = vsel %vm1581_vm9, %v1702_v18, %v1708_v23  ;;  %v1584_v30 = vsel %vm1583_vm10, %v1572_v44, %v1582_v39 }
 0x2c6   : > { %v1697_v24 = vpop.permute.xlu2 %1696 }
 0x2c7   : > { %v1691_v0 = vpop.permute.xlu1 %1690  ;;  %v1705_v42 = vperm.slane %v1697_v24, %v3400_v35 }
 0x2c8   : > { %v1703_v22 = vperm.slane %v1691_v0, %v3400_v35  ;;  %v2880_v0 = vmov 0.0  }
 0x2c9   : > { %1119 = vst.msk [vmem:[#allocation4] sm:$0xff] %vm1114_vm14, %v2880_v0 }
 0x2ca   : > { %v1710_v54 = vsel %vm1583_vm10, %v1703_v22, %v1709_v4  ;;  %1120 = vst.msk [vmem:[#allocation4 + $0x8] sm:$0xff] %vm1114_vm14, %v2880_v0 }
 0x2cb   : > { %1121 = vst.msk [vmem:[#allocation4 + $0x10] sm:$0xff] %vm1114_vm14, %v2880_v0 }
 0x2cc   : > { %1122 = vst.msk [vmem:[#allocation4 + $0x18] sm:$0xff] %vm1114_vm14, %v2880_v0 }
 0x2cd   : > { %v1694_v43 = vpop.permute.xlu0 %1693  ;;  %1124 = vst.msk [vmem:[#allocation5] sm:$0xff] %vm1123_vm13, %v2880_v0 }
 0x2ce   : > { %v1704_v14 = vperm.slane %v1694_v43, %v3400_v35  ;;  %1125 = vst.msk [vmem:[#allocation5 + $0x8] sm:$0xff] %vm1123_vm13, %v2880_v0 }
 0x2cf   : > { %1126 = vst.msk [vmem:[#allocation5 + $0x10] sm:$0xff] %vm1123_vm13, %v2880_v0 }
 0x2d0   : > { %v1561_v10 = vpop.permute.xlu1 %1560  ;;  %v1711_v33 = vsel %vm1585_vm11, %v1704_v14, %v1710_v54  ;;  %1127 = vst.msk [vmem:[#allocation5 + $0x18] sm:$0xff] %vm1123_vm13, %v2880_v0 }
 0x2d1   : > { %v1573_v26 = vperm.slane %v1561_v10, %v3400_v35  ;;  %v1712_v51 = vsel %vm1587_vm12, %v1705_v42, %v1711_v33 }
 0x2d2   : > { %v1730_v58 = vadd.f32 %v3393_v41, %v1712_v51 }
 0x2d3   : > { %v1586_v36 = vsel %vm1585_vm11, %v1573_v26, %v1584_v30 }
 0x2d4   : > { %v1588_v50 = vsel %vm1587_vm12, %v1574_v40, %v1586_v36 }
 0x2d5   : > { %v1607_v56 = vadd.f32 %v3362_v31, %v1588_v50 }
 0x2e6   : > { %2774 = vset.pattern.permute.xlu1 %v2877_v46 }
 0x2ed   : > { %1644 = vrot.lane.b32.xlu1 %v3300_v48, %s2878_s8  ;;  %s1021_s8 = scalar_lea.vmem %s3724_s27, %s3050_s3 }
 0x2f5   : > { %1925 = vperm.xlu1 %2774, %v3359_v25  }
 0x2fd   : > { %1934 = vperm.xlu1 %2774, %v3374_v34  }
 0x305   : > { %2777 = vset.pattern.permute.xlu1 %v2874_v16 }
 0x337   : > { %v1505_v32 = vpop.trf.xlu1 }
 0x338   : > { %v1526_v38 = vperm.slane %v1505_v32, 0 }
 0x33a   : > { %v1527_v47 = vmul.f32 %v1526_v38, %v1524_v49 }
 0x33c   : > { %v2616_v52 = vadd.f32 -1.0, %v1527_v47 }
 0x33e   : > { %v3432_v53 = vmul.f32 1e+09, %v2616_v52 }
 0x340   : > { %v3437_v59 = vadd.f32 %v1607_v56, %v3432_v53  ;;  %v3440_v57 = vadd.f32 %v1730_v58, %v3432_v53 }
 0x342   : > { %v1612_v49 = vsel %vm1123_vm13, %v3437_v59, -inf  ;;  %v1736_v61 = vsel %vm1123_vm13, %v3440_v57, -inf }
 0x343   : > { %1613 = vmax.xlane.f32.xlu0 %v1612_v49  ;;  %1737 = vmax.xlane.f32.xlu2 %v1736_v61 }
 0x35f   : > { %v1645_v31 = vpop.permute.xlu1 %1644 }
 0x360   : > { %v1651_v41 = vsel %vm1649_vm15, %v1645_v31, 0 }
 0x361   : > { %1660 = vmatpush.bf16.msrb.mxu0 %v1651_v41 }
 0x367   : > { %v1926_v30 = vpop.permute.xlu1 %1925 }
 0x368   : > { %v1944_v47 = vperm.slane %v1926_v30, %v3400_v35 }
 0x3b6   : > { %v1738_v3 = vpop.xlane.xlu2 %1737  ;;  %v1614_v60 = vpop.xlane.xlu0 %1613 }
 0x3b7   : > { %v3464_v6 = vmax.f32 %v3459_v1, %v1738_v3  ;;  %v3467_v5 = vmax.f32 %v3461_v2, %v1614_v60 }
 0x3b9   : > { %v1740_v62 = vsub.f32 %v3459_v1, %v3464_v6  ;;  %1791 = vst.msk [vmem:[#allocation3 + $0x8] sm:$0xff] %vm1114_vm14, %v3464_v6  ;;  %v1616_v7 = vsub.f32 %v3461_v2, %v3467_v5  ;;  %1745 = vperm.xlu2 %2769, %v3464_v6   ;;  %1621 = vperm.xlu0 %2768, %v3467_v5  }
 0x3ba   : > { %1668 = vst.msk [vmem:[#allocation3] sm:$0xff] %vm1114_vm14, %v3467_v5 }
 0x3c1   : > { %1768 = vrot.lane.b32.xlu2 %v3300_v48, %s2881_s30  ;;  %1916 = vrot.lane.b32.xlu0 %v3300_v48, %s2882_s6 }
 0x3c2   : > { %2771 = vset.pattern.permute.xlu0 %v2883_v8  ;;  %2770 = vset.pattern.permute.xlu2 %v2883_v8 }
 0x3c9   : > { %1794 = vrot.lane.b32.xlu2 %v3300_v48, %s2884_s11  ;;  %1914 = vrot.lane.b32.xlu0 %v3312_v28, %s2882_s6 }
 0x3d1   : > { %1792 = vrot.lane.b32.xlu2 %v3312_v28, %s2884_s11  ;;  %1800 = vperm.xlu0 %2771, %v3348_v21  }
 0x3d9   : > { %1797 = vperm.xlu2 %2770, %v3341_v15   ;;  %1809 = vperm.xlu0 %2771, %v3369_v45  }
 0x3e1   : > { %1803 = vperm.xlu2 %2770, %v3359_v25   ;;  %1815 = vperm.xlu0 %2771, %v3378_v37  }
 0x3e9   : > { %1806 = vperm.xlu2 %2770, %v3364_v27   ;;  %2772 = vset.pattern.permute.xlu0 %v2877_v46 }
 0x3ea   : > { %1919 = vperm.xlu0 %2772, %v3341_v15  }
 0x3f1   : > { %1812 = vperm.xlu2 %2770, %v3374_v34  }
 0x3f2   : > { %1931 = vperm.xlu0 %2772, %v3369_v45  }
 0x3f9   : > { %1818 = vperm.xlu2 %2770, %v3383_v55  }
 0x3fa   : > { %1940 = vperm.xlu0 %2772, %v3383_v55  }
 0x401   : > { %2773 = vset.pattern.permute.xlu2 %v2877_v46 }
 0x402   : > { %1922 = vperm.xlu2 %2773, %v3348_v21   ;;  %2775 = vset.pattern.permute.xlu0 %v2874_v16 }
 0x40a   : > { %1928 = vperm.xlu2 %2773, %v3364_v27  }
 0x412   : > { %1937 = vperm.xlu2 %2773, %v3378_v37  }
 0x413   : > { %v1746_v28 = vpop.permute.xlu2 %1745 }
 0x414   : > { %v1748_v15 = vsub.f32 %v3440_v57, %v1746_v28 }
 0x416   : > { %v1749_v25 = vmul.f32 1.442695, %v1748_v15 }
 0x418   : > { %2819 = vpow2.f32 %v1749_v25 }
 0x41a   : > { %2776 = vset.pattern.permute.xlu2 %v2874_v16 }
 0x41b   : > { %v1769_v45 = vpop.permute.xlu2 %1768 }
 0x41c   : > { %v1774_v34 = vsel %vm1649_vm15, %v1769_v45, 0 }
 0x41d   : > { %1783 = vmatpush.bf16.msrb.mxu3 %v1774_v34 }
 0x41e   : > { %v3504_v55 = vpop.eup %2819 }
 0x41f   : > { %v1767_v21 = vpack.c.bf16 %v3504_v55, %v3504_v55  ;;  %v1754_v2 = vsel %vm1123_vm13, %v3504_v55, 0.0 }
 0x421   : > { %2620 = vmatmul.msk.bf16.vlgmr.msrb.gmra.mxu3 %vm1123_vm13, %v1767_v21 }
 0x423   : > { %v1795_v27 = vpop.permute.xlu2 %1794 }
 0x424   : > { %v1840_v37 = vsel %vm1123_vm13, %v1795_v27, 0 }
 0x425   : > { %1849 = vmatpush.bf16.xpose.msra.mxu0 %v1840_v37 }
 0x42b   : > { %v1622_v46 = vpop.permute.xlu0 %1621  ;;  %v1793_v17 = vpop.permute.xlu2 %1792 }
 0x42c   : > { %v1624_v10 = vsub.f32 %v3437_v59, %v1622_v46  ;;  %v1935_v59 = vpop.permute.xlu1 %1934 }
 0x42d   : > { %v1947_v0 = vperm.slane %v1935_v59, %v3400_v35 }
 0x42e   : > { %v1625_v11 = vmul.f32 1.442695, %v1624_v10 }
 0x430   : > { %2821 = vpow2.f32 %v1625_v11 }
 0x433   : > { %v1917_v16 = vpop.permute.xlu0 %1916  ;;  %v1798_v18 = vpop.permute.xlu2 %1797 }
 0x434   : > { %v1962_v12 = vsel %vm1123_vm13, %v1917_v16, 0  ;;  %v1820_v57 = vperm.slane %v1798_v18, %v3400_v35 }
 0x435   : > { %1971 = vmatpush.bf16.xpose.msra.mxu3 %v1962_v12 }
 0x436   : > { %v3512_v13 = vpop.eup %2821 }
 0x437   : > { %v1642_v9 = vpack.c.bf16 %v3512_v13, %v3512_v13 }
 0x439   : > { %2618 = vmatmul.msk.bf16.vlgmr.msrb.gmra.mxu0 %vm1123_vm13, %v1642_v9 }
 0x43b   : > { %v1915_v43 = vpop.permute.xlu0 %1914  ;;  %v1804_v19 = vpop.permute.xlu2 %1803 }
 0x43c   : > { %2623 = vmatmul.msk.bf16.vlgmr.msra.gmra.mxu3 %vm1123_vm13, %v1915_v43  ;;  %v1822_v3 = vperm.slane %v1804_v19, %v3400_v35 }
 0x443   : > { %v1807_v20 = vpop.permute.xlu2 %1806  ;;  %v1801_v22 = vpop.permute.xlu0 %1800 }
 0x444   : > { %v1821_v50 = vperm.slane %v1801_v22, %v3400_v35  ;;  %v1823_v25 = vperm.slane %v1807_v20, %v3400_v35 }
 0x446   : > { %v1828_v61 = vsel %vm1575_vm1, %v1821_v50, %v1820_v57 }
 0x447   : > { %v1829_v60 = vsel %vm1577_vm7, %v1822_v3, %v1828_v61 }
 0x448   : > { %v1830_v21 = vsel %vm1579_vm8, %v1823_v25, %v1829_v60  ;;  %v1741_v60 = vmul.f32 1.442695, %v1740_v62 }
 0x449   : > { %2621 = vmatmul.msk.bf16.vlgmr.msra.gmra.mxu0 %vm1123_vm13, %v1793_v17 }
 0x44b   : > { %v1813_v39 = vpop.permute.xlu2 %1812  ;;  %v1810_v14 = vpop.permute.xlu0 %1809 }
 0x44c   : > { %v1824_v8 = vperm.slane %v1810_v14, %v3400_v35  ;;  %v1825_v34 = vperm.slane %v1813_v39, %v3400_v35 }
 0x44e   : > { %v1831_v37 = vsel %vm1581_vm9, %v1824_v8, %v1830_v21 }
 0x44f   : > { %v1832_v43 = vsel %vm1583_vm10, %v1825_v34, %v1831_v37 }
 0x453   : > { %v1819_v26 = vpop.permute.xlu2 %1818  ;;  %v1816_v44 = vpop.permute.xlu0 %1815 }
 0x454   : > { %v1826_v46 = vperm.slane %v1816_v44, %v3400_v35  ;;  %v1827_v12 = vperm.slane %v1819_v26, %v3400_v35  ;;  %v1629_v26 = vsel %vm1123_vm13, %v3512_v13, 0.0 }
 0x456   : > { %v1833_v17 = vsel %vm1585_vm11, %v1826_v46, %v1832_v43  ;;  %v1635_v43 = vld [vmem:[#allocation5] sm:$0xff] }
 0x457   : > { %v1834_v19 = vsel %vm1587_vm12, %v1827_v12, %v1833_v17 }
 0x45c   : > { %v1923_v23 = vpop.permute.xlu2 %1922  ;;  %v1920_v4 = vpop.permute.xlu0 %1919 }
 0x45d   : > { %v1943_v33 = vperm.slane %v1923_v23, %v3400_v35  ;;  %v1942_v36 = vperm.slane %v1920_v4, %v3400_v35  ;;  %v1979_v23 = vld [vmem:[#allocation3 + $0x18] sm:$0xff] }
 0x45f   : > { %v1950_v40 = vsel %vm1575_vm1, %v1943_v33, %v1942_v36 }
 0x460   : > { %v1951_v51 = vsel %vm1577_vm7, %v1944_v47, %v1950_v40  ;;  %v1627_v40 = vld [vmem:[#allocation4] sm:$0xff] }
 0x464   : > { %v1929_v54 = vpop.permute.xlu2 %1928  ;;  %v1932_v38 = vpop.permute.xlu0 %1931 }
 0x465   : > { %v1945_v42 = vperm.slane %v1929_v54, %v3400_v35  ;;  %v1946_v52 = vperm.slane %v1932_v38, %v3400_v35  ;;  %v1617_v54 = vmul.f32 1.442695, %v1616_v7 }
 0x467   : > { %v1952_v56 = vsel %vm1579_vm8, %v1945_v42, %v1951_v51  ;;  %2823 = vpow2.f32 %v1617_v54 }
 0x468   : > { %v1953_v63 = vsel %vm1581_vm9, %v1946_v52, %v1952_v56 }
 0x469   : > { %v1954_v15 = vsel %vm1583_vm10, %v1947_v0, %v1953_v63 }
 0x46c   : > { %v1938_v58 = vpop.permute.xlu2 %1937  ;;  %v1941_v41 = vpop.permute.xlu0 %1940 }
 0x46d   : > { %v1948_v31 = vperm.slane %v1938_v58, %v3400_v35  ;;  %v1949_v28 = vperm.slane %v1941_v41, %v3400_v35  ;;  %v2824_v13 = vpop.eup %2823 }
 0x46e   : > { %v1628_v42 = vmul.f32 %v2824_v13, %v1627_v40 }
 0x46f   : > { %v1955_v45 = vsel %vm1585_vm11, %v1948_v31, %v1954_v15 }
 0x470   : > { %v1956_v10 = vsel %vm1587_vm12, %v1949_v28, %v1955_v45 }
 0x4a4   : > { %v3519_v24 = vpop.f32.mrf.mxu3 }
 0x4ac   : > { %v1787_v32 = vpop.f32.mrf.mxu3 }
 0x4b6   : > { %v3531_v49 = vpop.f32.mrf.mxu0 }
 0x4be   : > { %v1664_v27 = vpop.f32.mrf.mxu0 }
 0x4bf   : > { %v1973_v11 = vpop.f32.mrf.mxu3  ;;  %v1752_v27 = vld [vmem:[#allocation4 + $0x8] sm:$0xff] }
 0x4c0   : > { %v1974_v16 = vadd.f32 %v1973_v11, %v1956_v10  ;;  %v1874_v10 = vld [vmem:[#allocation4 + $0x10] sm:$0xff] }
 0x4c2   : > { %v1977_v9 = vadd.f32 %v1974_v16, %v3432_v53 }
 0x4c4   : > { %v1980_v18 = vsel %vm1123_vm13, %v1977_v9, -inf }
 0x4c5   : > { %1981 = vmax.xlane.f32.xlu2 %v1980_v18 }
 0x4c6   : > { %v1851_v20 = vpop.f32.mrf.mxu0 }
 0x4c7   : > { %v1852_v22 = vadd.f32 %v1851_v20, %v1834_v19  ;;  %v1975_v39 = vpop.f32.mrf.mxu3 }
 0x4c8   : > { %v2040_v39 = vld [vmem:[%s3712_s15] sm:$0xf] }
 0x4c9   : > { %v1855_v14 = vadd.f32 %v1852_v22, %v3432_v53  ;;  %v1857_v53 = vld [vmem:[#allocation3 + $0x10] sm:$0xff] }
 0x4cb   : > { %v1858_v44 = vsel %vm1123_vm13, %v1855_v14, -inf }
 0x4cc   : > { %1859 = vmax.xlane.f32.xlu1 %v1858_v44  ;;  %v2087_v44 = vsel %vm1649_vm15, %v2040_v39, 0 }
 0x4cd   : > { %2096 = vmatpush.bf16.msrb.mxu3 %v2087_v44 }
 0x4ce   : > { %v1853_v35 = vpop.f32.mrf.mxu0 }
 0x4d4   : > { %1630 = vadd.xlane.f32.xlu1 %v1629_v26  ;;  %v1760_v26 = vld [vmem:[#allocation5 + $0x8] sm:$0xff] }
 0x538   : > { %v1982_v4 = vpop.xlane.xlu2 %1981 }
 0x539   : > { %v1983_v30 = vmax.f32 %v1979_v23, %v1982_v4  ;;  %v2041_v4 = vld [vmem:[%s3712_s15 + $0x4] sm:$0xf] }
 0x53b   : > { %v1984_v32 = vsub.f32 %v1979_v23, %v1983_v30  ;;  %2035 = vst.msk [vmem:[#allocation3 + $0x18] sm:$0xff] %vm1114_vm14, %v1983_v30 }
 0x53d   : > { %v1985_v28 = vmul.f32 1.442695, %v1984_v32  ;;  %v2068_v32 = vsel %vm1649_vm15, %v2041_v4, 0 }
 0x53f   : > { %v1860_v33 = vpop.xlane.xlu1 %1859 }
 0x540   : > { %v1861_v36 = vmax.f32 %v1857_v53, %v1860_v33 }
 0x542   : > { %v1862_v38 = vsub.f32 %v1857_v53, %v1861_v36  ;;  %1913 = vst.msk [vmem:[#allocation3 + $0x10] sm:$0xff] %vm1114_vm14, %v1861_v36  ;;  %1867 = vperm.xlu0 %2775, %v1861_v36   ;;  %v2042_v36 = vld [vmem:[%s3712_s15 + $0x8] sm:$0xf] }
 0x544   : > { %v1863_v8 = vmul.f32 1.442695, %v1862_v38  ;;  %v2043_v38 = vld [vmem:[%s3712_s15 + $0xc] sm:$0xf] }
 0x545   : > { %v2146_v40 = vsel %vm1649_vm15, %v2043_v38, 0  ;;  %v2692_v38 = vld [vmem:[%s3718_s21 + $0x18] sm:$0xff] }
 0x547   : > { %v1631_v47 = vpop.xlane.xlu1 %1630 }
 0x548   : > { %v1632_v50 = vadd.f32 %v1631_v47, %v1628_v42  ;;  %v2004_v42 = vld [vmem:[#allocation5 + $0x18] sm:$0xff] }
 0x54a   : > { %1634 = vst.msk [vmem:[#allocation4] sm:$0xff] %vm1114_vm14, %v1632_v50  ;;  %1989 = vperm.xlu0 %2775, %v1983_v30  }
 0x551   : > { %v2044_v25 = vld [vmem:[#allocation4] sm:$0xff] }
 0x552   : > { %1890 = vrot.lane.b32.xlu0 %v3300_v48, %s2885_s7  ;;  %s1028_s7 = scalar_lea.vmem %s3725_s28, %s3050_s3 }
 0x55a   : > { %2012 = vrot.lane.b32.xlu0 %v3300_v48, %s2886_s1 }
 0x584   : > { %1755 = vadd.xlane.f32.xlu0 %v1754_v2 }
 0x5b4   : > { %v1868_v5 = vpop.permute.xlu0 %1867 }
 0x5b5   : > { %v1870_v7 = vsub.f32 %v1855_v14, %v1868_v5 }
 0x5b7   : > { %v1871_v51 = vmul.f32 1.442695, %v1870_v7 }
 0x5b9   : > { %2825 = vpow2.f32 %v1871_v51  ;;  %v1882_v51 = vld [vmem:[#allocation5 + $0x10] sm:$0xff] }
 0x5bc   : > { %v1990_v52 = vpop.permute.xlu0 %1989 }
 0x5bd   : > { %v1992_v56 = vsub.f32 %v1977_v9, %v1990_v52  ;;  %v1996_v9 = vld [vmem:[#allocation4 + $0x18] sm:$0xff] }
 0x5bf   : > { %v2826_v58 = vpop.eup %2825  ;;  %v1993_v59 = vmul.f32 1.442695, %v1992_v56 }
 0x5c0   : > { %v1876_v57 = vsel %vm1123_vm13, %v2826_v58, 0.0  ;;  %v1889_v31 = vpack.c.bf16 %v2826_v58, %v2826_v58 }
 0x5c1   : > { %2827 = vpow2.f32 %v1993_v59  ;;  %1877 = vadd.xlane.f32.xlu2 %v1876_v57 }
 0x5c2   : > { %2829 = vpow2.f32 %v1741_v60 }
 0x5c3   : > { %2831 = vpow2.f32 %v1863_v8 }
 0x5c4   : > { %v1891_v61 = vpop.permute.xlu0 %1890  ;;  %2833 = vpow2.f32 %v1985_v28 }
 0x5c5   : > { %v1896_v63 = vsel %vm1649_vm15, %v1891_v61, 0  ;;  %2835 = vrcp.f32 %v2044_v25 }
 0x5c6   : > { %1905 = vmatpush.bf16.msra.mxu1 %v1896_v63 }
 0x5c7   : > { %v2828_v48 = vpop.eup %2827 }
 0x5c8   : > { %v1998_v55 = vsel %vm1123_vm13, %v2828_v48, 0.0  ;;  %v2011_v3 = vpack.c.bf16 %v2828_v48, %v2828_v48  ;;  %v2830_v15 = vpop.eup %2829 }
 0x5c9   : > { %1999 = vadd.xlane.f32.xlu1 %v1998_v55  ;;  %2622 = vmatmul.msk.bf16.vlgmr.msra.gmra.mxu1 %vm1123_vm13, %v1889_v31  ;;  %v2832_v45 = vpop.eup %2831  ;;  %v1753_v37 = vmul.f32 %v2830_v15, %v1752_v27 }
 0x5ca   : > { %v2834_v34 = vpop.eup %2833  ;;  %v1875_v11 = vmul.f32 %v2832_v45, %v1874_v10  ;;  %2077 = vmatpush.bf16.msrb.mxu1 %v2068_v32 }
 0x5cb   : > { %v2836_v21 = vpop.eup %2835  ;;  %v1997_v17 = vmul.f32 %v2834_v34, %v1996_v9 }
 0x5cc   : > { %v2013_v41 = vpop.permute.xlu0 %2012 }
 0x5cd   : > { %v2018_v0 = vsel %vm1649_vm15, %v2013_v41, 0 }
 0x5ce   : > { %2027 = vmatpush.bf16.msrb.mxu0 %v2018_v0 }
 0x5d1   : > { %2624 = vmatmul.msk.bf16.vlgmr.msrb.gmra.mxu0 %vm1123_vm13, %v2011_v3 }
 0x5d2   : > { %2155 = vmatpush.bf16.msra.mxu0 %v2146_v40 }
 0x5d9   : > { %1638 = vperm.xlu2 %2776, %v2824_v13   ;;  %v2116_v13 = vsel %vm1649_vm15, %v2042_v36, 0 }
 0x5da   : > { %2125 = vmatpush.bf16.msrb.mxu2 %v2116_v13 }
 0x5e1   : > { %1763 = vperm.xlu2 %2776, %v2830_v15  }
 0x5e2   : > { %1885 = vperm.xlu1 %2777, %v2832_v45  }
 0x5e9   : > { %2007 = vperm.xlu2 %2776, %v2834_v34  }
 0x5ea   : > { %2049 = vperm.xlu1 %2777, %v2836_v21  }
 0x5f7   : > { %v1756_v1 = vpop.xlane.xlu0 %1755 }
 0x5f8   : > { %v1757_v6 = vadd.f32 %v1756_v1, %v1753_v37 }
 0x5fa   : > { %1758 = vst.msk [vmem:[#allocation4 + $0x8] sm:$0xff] %vm1114_vm14, %v1757_v6 }
 0x601   : > { %v2054_v62 = vld [vmem:[#allocation4 + $0x8] sm:$0xff] }
 0x602   : > { %2837 = vrcp.f32 %v2054_v62 }
 0x608   : > { %v2838_v46 = vpop.eup %2837 }
 0x609   : > { %2059 = vperm.xlu2 %2776, %v2838_v46  }
 0x634   : > { %v1878_v16 = vpop.xlane.xlu2 %1877 }
 0x635   : > { %v1879_v12 = vadd.f32 %v1878_v16, %v1875_v11  ;;  %v2787_v16 = vld [vmem:[%s3713_s16] ss:$0 sm:$0xff] }
 0x637   : > { %1880 = vst.msk [vmem:[#allocation4 + $0x10] sm:$0xff] %vm1114_vm14, %v1879_v12  ;;  %v2847_v12 = vld [vmem:[%s3056_s29] sm:$0xff] }
 0x63c   : > { %v2000_v18 = vpop.xlane.xlu1 %1999  ;;  %v1639_v19 = vpop.permute.xlu2 %1638 }
 0x63d   : > { %v2001_v20 = vadd.f32 %v2000_v18, %v1997_v17  ;;  %v1641_v22 = vmul.f32 %v1639_v19, %v1635_v43 }
 0x63e   : > { %v2102_v14 = vld [vmem:[#allocation4 + $0x10] sm:$0xff] }
 0x63f   : > { %2002 = vst.msk [vmem:[#allocation4 + $0x18] sm:$0xff] %vm1114_vm14, %v2001_v20  ;;  %v1666_v35 = vadd.f32 %v3531_v49, %v1641_v22  ;;  %2839 = vrcp.f32 %v2102_v14 }
 0x641   : > { %1667 = vst.msk [vmem:[#allocation5] sm:$0xff] %vm1123_vm13, %v1666_v35  ;;  %v2688_v35 = vld [vmem:[%s3716_s19 + $0x8] sm:$0xff] }
 0x642   : > { %2230 = vmatpush.bf16.msra.mxu1 %v2688_v35 }
 0x644   : > { %v1764_v23 = vpop.permute.xlu2 %1763 }
 0x645   : > { %v2840_v54 = vpop.eup %2839  ;;  %v1766_v30 = vmul.f32 %v1764_v23, %v1760_v26  ;;  %v2687_v26 = vld [vmem:[%s3716_s19] sm:$0xff]  ;;  %v2696_v23 = vld [vmem:[%s3718_s21 + $0x38] sm:$0xff] }
 0x646   : > { %2107 = vperm.xlu0 %2775, %v2840_v54   ;;  %v1907_v53 = vpop.f32.mrf.mxu1  ;;  %v2132_v33 = vld [vmem:[#allocation4 + $0x18] sm:$0xff]  ;;  %2231 = vmatpush.bf16.msra.mxu1 %v2687_v26 }
 0x647   : > { %v1789_v49 = vadd.f32 %v3519_v24, %v1766_v30  ;;  %2841 = vrcp.f32 %v2132_v33  ;;  %2303 = vmatpush.bf16.msra.mxu3 %v2696_v23  ;;  %v2695_v30 = vld [vmem:[%s3718_s21 + $0x30] sm:$0xff]  ;;  %v2693_v33 = vld [vmem:[%s3718_s21 + $0x20] sm:$0xff] }
 0x648   : > { %v2046_v57 = vld [vmem:[#allocation5] sm:$0xff] }
 0x649   : > { %1790 = vst.msk [vmem:[#allocation5 + $0x8] sm:$0xff] %vm1123_vm13, %v1789_v49 }
 0x64b   : > { %2304 = vmatpush.bf16.msra.mxu3 %v2695_v30 }
 0x64c   : > { %v2008_v47 = vpop.permute.xlu2 %2007 }
 0x64d   : > { %v2842_v24 = vpop.eup %2841  ;;  %v2010_v50 = vmul.f32 %v2008_v47, %v2004_v42  ;;  %v2691_v42 = vld [vmem:[%s3718_s21 + $0x10] sm:$0xff] }
 0x64e   : > { %v1909_v2 = vpop.f32.mrf.mxu1  ;;  %v2029_v5 = vpop.f32.mrf.mxu0  ;;  %2137 = vperm.xlu1 %2777, %v2842_v24  }
 0x64f   : > { %v2033_v7 = vadd.f32 %v2029_v5, %v2010_v50  ;;  %v2788_v50 = vld [vmem:[%s3714_s17] ss:$0 sm:$0xff] }
 0x650   : > { %v2056_v31 = vld [vmem:[#allocation5 + $0x8] sm:$0xff] }
 0x651   : > { %2034 = vst.msk [vmem:[#allocation5 + $0x18] sm:$0xff] %vm1123_vm13, %v2033_v7  ;;  %v2789_v7 = vld [vmem:[%s3715_s18] ss:$0 sm:$0xff] }
 0x654   : > { %v1886_v52 = vpop.permute.xlu1 %1885 }
 0x655   : > { %v1888_v56 = vmul.f32 %v1886_v52, %v1882_v51 }
 0x656   : > { %v2031_v58 = vpop.f32.mrf.mxu0 }
 0x657   : > { %v1911_v59 = vadd.f32 %v1907_v53, %v1888_v56  ;;  %v2694_v53 = vld [vmem:[%s3718_s21 + $0x28] sm:$0xff] }
 0x658   : > { %v2134_v15 = vld [vmem:[#allocation5 + $0x18] sm:$0xff]  ;;  %2305 = vmatpush.bf16.msra.mxu3 %v2694_v53  ;;  %v2690_v58 = vld [vmem:[%s3718_s21 + $0x8] sm:$0xff] }
 0x659   : > { %1912 = vst.msk [vmem:[#allocation5 + $0x10] sm:$0xff] %vm1123_vm13, %v1911_v59  ;;  %v2689_v59 = vld [vmem:[%s3718_s21] sm:$0xff] }
 0x65c   : > { %v2050_v61 = vpop.permute.xlu1 %2049  ;;  %2306 = vmatpush.bf16.msra.mxu3 %v2693_v33 }
 0x65d   : > { %v2052_v63 = vmul.f32 %v2050_v61, %v2046_v57  ;;  %v2790_v57 = vld [vmem:[%s3717_s20] ss:$0 sm:$0xff] }
 0x65f   : > { %v2053_v48 = vpack.c.bf16 %v2052_v63, %v2052_v63 }
 0x660   : > { %v2104_v3 = vld [vmem:[#allocation5 + $0x10] sm:$0xff]  ;;  %2307 = vmatpush.bf16.msra.mxu3 %v2692_v38 }
 0x661   : > { %2626 = vmatmul.msk.bf16.vlgmr.msrb.gmra.mxu3 %vm1123_vm13, %v2053_v48 }
 0x663   : > { %v2060_v55 = vpop.permute.xlu2 %2059 }
 0x664   : > { %v2062_v41 = vmul.f32 %v2060_v55, %v2056_v31  ;;  %2308 = vmatpush.bf16.msra.mxu3 %v2691_v42 }
 0x666   : > { %v2063_v0 = vpack.c.bf16 %v2062_v41, %v2062_v41  ;;  %v2791_v41 = vld [vmem:[%s3719_s22] ss:$0 sm:$0xff] }
 0x668   : > { %2625 = vmatmul.msk.bf16.vlgmr.msrb.gmra.mxu1 %vm1123_vm13, %v2063_v0  ;;  %2309 = vmatpush.bf16.msra.mxu3 %v2690_v58 }
 0x66c   : > { %2310 = vmatpush.bf16.msra.mxu3 %v2689_v59 }
 0x6b8   : > { %v2108_v60 = vpop.permute.xlu0 %2107 }
 0x6b9   : > { %v2110_v8 = vmul.f32 %v2108_v60, %v2104_v3 }
 0x6bb   : > { %v2111_v28 = vpack.c.bf16 %v2110_v8, %v2110_v8 }
 0x6bd   : > { %2627 = vmatmul.msk.bf16.vlgmr.msrb.gmra.mxu2 %vm1123_vm13, %v2111_v28 }
 0x6c0   : > { %v2138_v25 = vpop.permute.xlu1 %2137 }
 0x6c1   : > { %v2140_v45 = vmul.f32 %v2138_v25, %v2134_v15 }
 0x6c3   : > { %v2141_v34 = vpack.c.bf16 %v2140_v45, %v2140_v45 }
 0x6c5   : > { %2628 = vmatmul.msk.bf16.vlgmr.msra.gmra.mxu0 %vm1123_vm13, %v2141_v34 }
 0x6e4   : > { %v2098_v21 = vpop.f32.mrf.mxu3 }
 0x6e5   : > { %v2079_v27 = vpop.f32.mrf.mxu1 }
 0x6e6   : > { %v2099_v37 = vadd.f32 %v2098_v21, %v2079_v27  ;;  %v2698_v27 = vld [vmem:[%s3722_s25 + $0x8] sm:$0xff] }
 0x6e7   : > { %2385 = vmatpush.bf16.msra.mxu2 %v2698_v27 }
 0x6ec   : > { %v2100_v1 = vpop.f32.mrf.mxu3 }
 0x6ed   : > { %v2081_v6 = vpop.f32.mrf.mxu1 }
 0x740   : > { %v2127_v62 = vpop.f32.mrf.mxu2 }
 0x741   : > { %v2131_v46 = vadd.f32 %v2127_v62, %v2099_v37  ;;  %v2697_v37 = vld [vmem:[%s3722_s25] sm:$0xff] }
 0x742   : > { %v2157_v10 = vpop.f32.mrf.mxu0  ;;  %2386 = vmatpush.bf16.msra.mxu2 %v2697_v37 }
 0x743   : > { %v2161_v11 = vadd.f32 %v2157_v10, %v2131_v46 }
 0x745   : > { %v2162_v9 = vadd.f32 %v2847_v12, %v2161_v11 }
 0x747   : > { %v2167_v43 = vadd.f32 %v2787_v16, %v2162_v9 }
 0x748   : > { %v2129_v17 = vpop.f32.mrf.mxu2 }
 0x749   : > { %v2170_v18 = vsel %vm1037_vm0, %v2167_v43, 0.0 }
 0x74a   : > { %2171 = vadd.xlane.f32.xlu2 %v2170_v18  ;;  %v2159_v19 = vpop.f32.mrf.mxu0 }
 0x7bd   : > { %v2172_v20 = vpop.xlane.xlu2 %2171 }
 0x7be   : > { %v2173_v22 = vmul.f32 %v2172_v20, %v3097_v29 }
 0x7c0   : > { %v2174_v39 = vsub.f32 %v2167_v43, %v2173_v22 }
 0x7c2   : > { %v2175_v14 = vmul.f32 %v2174_v39, %v2174_v39 }
 0x7c4   : > { %v2176_v44 = vsel %vm1037_vm0, %v2175_v14, 0.0 }
 0x7c5   : > { %2177 = vadd.xlane.f32.xlu1 %v2176_v44 }
 0x838   : > { %v2178_v4 = vpop.xlane.xlu1 %2177 }
 0x839   : > { %v2179_v54 = vmul.f32 %v2178_v4, %v3097_v29 }
 0x83b   : > { %v2180_v32 = vadd.f32 1e-05, %v2179_v54 }
 0x83d   : > { %2843 = vrsqrt.f32 %v2180_v32  ;;  %vm2187_vm3 = vweird.f32 %v2180_v32 }
 0x843   : > { %v2844_v49 = vpop.eup %2843 }
 0x844   : > { %v2182_v36 = vmul.f32 %v2844_v49, %v2180_v32  ;;  %vm2188_vm2 = vweird.f32 %v2844_v49 }
 0x845   : > { %vm2189_vm4 = vmor %vm2187_vm3, %vm2188_vm2 }
 0x846   : > { %v2183_v13 = vmul.f32 %v2844_v49, %v2182_v36 }
 0x848   : > { %v2184_v40 = vmul.f32 0.5, %v2183_v13 }
 0x84a   : > { %v2185_v47 = vsub.f32 1.5, %v2184_v40 }
 0x84c   : > { %v2186_v24 = vmul.f32 %v2844_v49, %v2185_v47 }
 0x84e   : > { %v2190_v2 = vsel %vm2189_vm4, %v2844_v49, %v2186_v24 }
 0x84f   : > { %v2191_v5 = vmul.f32 %v2190_v2, %v2174_v39  ;;  %v2794_v39 = vld [vmem:[%s3723_s26] ss:$0 sm:$0xff] }
 0x851   : > { %v2195_v51 = vmul.f32 %v2788_v50, %v2191_v5 }
 0x853   : > { %v2199_v52 = vadd.f32 %v2789_v7, %v2195_v51 }
 0x855   : > { %v2200_v56 = vpack.c.bf16 %v2199_v52, %v2199_v52 }
 0x857   : > { %2637 = vmatmul.msk.bf16.vlgmr.msra.gmra.mxu1 %vm1037_vm0, %v2200_v56 }
 0x8d4   : > { %v2233_v61 = vpop.f32.mrf.mxu1 }
 0x8d5   : > { %v2234_v63 = vadd.f32 %v2790_v57, %v2233_v61 }
 0x8d7   : > { %v2237_v48 = vmax.f32 %v2234_v63, 0.0 }
 0x8d9   : > { %v2238_v31 = vpack.c.bf16 %v2237_v48, %v2237_v48 }
 0x8db   : > { %2311 = vmatmul.bf16.vlgmr.msra.gmra.mxu3 %v2238_v31 }
 0x8dc   : > { %v2235_v55 = vpop.f32.mrf.mxu1 }
 0x95e   : > { %v2312_v0 = vpop.f32.mrf.mxu3 }
 0x95f   : > { %v2316_v3 = vadd.f32 %v2312_v0, %v2167_v43  ;;  %v2792_v43 = vld [vmem:[%s3720_s23] ss:$0 sm:$0xff] }
 0x961   : > { %v2321_v60 = vadd.f32 %v2791_v41, %v2316_v3 }
 0x963   : > { %2322 = vst.msk [vmem:[%s1021_s8] sm:$0xff] %vm1037_vm0, %v2321_v60  ;;  %v2325_v8 = vsel %vm1037_vm0, %v2321_v60, 0.0 }
 0x964   : > { %2326 = vadd.xlane.f32.xlu0 %v2325_v8 }
 0x966   : > { %v2314_v28 = vpop.f32.mrf.mxu3 }
 0x9d7   : > { %v2327_v15 = vpop.xlane.xlu0 %2326 }
 0x9d8   : > { %v2328_v25 = vmul.f32 %v2327_v15, %v3097_v29 }
 0x9da   : > { %v2329_v45 = vsub.f32 %v2321_v60, %v2328_v25 }
 0x9dc   : > { %v2330_v34 = vmul.f32 %v2329_v45, %v2329_v45 }
 0x9de   : > { %v2331_v21 = vsel %vm1037_vm0, %v2330_v34, 0.0 }
 0x9df   : > { %2332 = vadd.xlane.f32.xlu2 %v2331_v21 }
 0xa52   : > { %v2333_v1 = vpop.xlane.xlu2 %2332 }
 0xa53   : > { %v2334_v6 = vmul.f32 %v2333_v1, %v3097_v29  ;;  %v2793_v29 = vld [vmem:[%s3721_s24] ss:$0 sm:$0xff] }
 0xa55   : > { %v2335_v62 = vadd.f32 1e-05, %v2334_v6 }
 0xa57   : > { %2845 = vrsqrt.f32 %v2335_v62  ;;  %vm2342_vm6 = vweird.f32 %v2335_v62 }
 0xa5d   : > { %v2846_v46 = vpop.eup %2845 }
 0xa5e   : > { %v2337_v10 = vmul.f32 %v2846_v46, %v2335_v62  ;;  %vm2343_vm5 = vweird.f32 %v2846_v46 }
 0xa5f   : > { %vm2344_vm1 = vmor %vm2342_vm6, %vm2343_vm5 }
 0xa60   : > { %v2338_v11 = vmul.f32 %v2846_v46, %v2337_v10 }
 0xa62   : > { %v2339_v16 = vmul.f32 0.5, %v2338_v11 }
 0xa64   : > { %v2340_v12 = vsub.f32 1.5, %v2339_v16 }
 0xa66   : > { %v2341_v9 = vmul.f32 %v2846_v46, %v2340_v12 }
 0xa68   : > { %v2345_v17 = vsel %vm2344_vm1, %v2846_v46, %v2341_v9 }
 0xa69   : > { %v2346_v18 = vmul.f32 %v2345_v17, %v2329_v45 }
 0xa6b   : > { %v2350_v19 = vmul.f32 %v2792_v43, %v2346_v18 }
 0xa6d   : > { %v2354_v20 = vadd.f32 %v2793_v29, %v2350_v19 }
 0xa6f   : > { %v2355_v22 = vpack.c.bf16 %v2354_v20, %v2354_v20 }
 0xa71   : > { %2678 = vmatmul.msk.bf16.vlgmr.msra.gmra.mxu2 %vm1037_vm0, %v2355_v22 }
 0xaf4   : > { %v2388_v14 = vpop.f32.mrf.mxu2 }
 0xaf5   : > { %v2389_v44 = vadd.f32 %v2794_v39, %v2388_v14 }
 0xaf7   : > { %2392 = vst.msk [vmem:[%s1028_s7] sm:$0xff] %vm1123_vm13, %v2389_v44 }
 0xafc   : > { %v2390_v35 = vpop.f32.mrf.mxu2 }
 0xafd PF: > { %s39_s9 = sadd.s32 1, %s2870_s9   ;;  %s3765_s1 = sld [smem:[#allocation6_spill]] }
 0xafe   : > { %p36_p5 = scmp.ge.s32.totalorder %s39_s9, 4   ;;  %s3766_s8 = smov %s2866_s5 }
 0xb00   :  { %38 = sbr.rel (!%p36_p5) target bundleno = 14 (0xe), region = 199 }
 0xb03   : > { %s3767_s5 = smov %s3765_s1 }

// kernel: folding_trunk_forward.26
= control target key start
LH: loop header
LB: loop body
LE: loop exit
PB: predicated region body
PF: predicated region fallthrough
CT: control target
= control target key end

     0   :  { %s466_s9 = smov 0   ;;  %s468_s10 = smov 0   ;;  %s512_s0 = inlined_call_operand.vmem [shape: f32[2,8,8], index: 0, kind: input, shape index: {}, may-alias: {0,1}]   ;;  %s513_s1 = inlined_call_operand.vmem [shape: f32[2,8,8], index: 1, kind: input, shape index: {}, may-alias: {0,1}]   ;;  %s514_s2 = inlined_call_operand.vmem [shape: s32[2,8,8], index: 2, kind: output, shape index: {}]  }
   0x1   :  { %s470_s11 = smov 0  }
   0x2 LB: > { %s24_s12 = sadd.s32 1, %s444_s10  ;;  %p392_p0 = scmp.ge.s32.totalorder %s448_s11, 1  ;;  %s448_s11 = sphi %s470_s11, %s12_s11   ;;  %s444_s10 = sphi %s468_s10, %s516_s10   ;;  %s440_s9 = sphi %s466_s9, %s515_s9  }
   0x3   : > { %p26_p1 = scmp.ge.s32.totalorder %s24_s12, 2  ;;  %p139_p2 = scmp.lt.s32.totalorder %s448_s11, 3 }
   0x5   : > { %s518_s12 = smov (%p26_p1, %s24_s12), 0  ;;  %p140_p3 = pnand %p392_p0, %p139_p2 }
   0x6   : > { %p169_p4 = scmp.lt.s32.totalorder (!%p140_p3), %s440_s9, 1 }
   0x7   : > { %143 = sbr.rel (%p140_p3) target bundleno = 335 (0x14f), region = 28 }
   0xc   : > { %s520_s9 = smov (!%p169_p4, %s440_s9), 1  ;;  %vm190_vm0 = vcmask 64512   ;;  %v450_v14 = vmov 0  }
   0xd   : > { %s484_s13 = sshll.u32 %s520_s9, 3 }
   0xe   : > { %s179_s16 = scalar_lea.vmem %s513_s1, %s484_s13  ;;  %s175_s19 = scalar_lea.vmem %s512_s0, %s484_s13 }
   0xf   : > { %v188_v0 = vld [vmem:[%s179_s16] sm:$0xff]  ;;  %s186_s22 = scalar_lea.vmem %s514_s2, %s484_s13 }
  0x10   : > { %v194_v1 = vmul.f32 %v188_v0, %v188_v0  ;;  %396 = vmatpush.xpose.msk.msra.mxu0 %vm190_vm0, %v188_v0  ;;  %v187_v3 = vld [vmem:[%s175_s19] sm:$0xff] }
  0x11   : > { %v189_v4 = vmul.f32 %v187_v3, %v187_v3 }
  0x12   : > { %v195_v2 = vsel %vm190_vm0, %v194_v1, 0.0 }
  0x13   : > { %196 = vadd.xlane.f32.xlu0 %v195_v2  ;;  %397 = vmatmul.msk.f32.vlgmr.msra.gmra.mxu0 %vm190_vm0, %v187_v3  ;;  %v191_v5 = vsel %vm190_vm0, %v189_v4, 0.0 }
  0x1b   : > { %192 = vadd.xlane.f32.xlu0 %v191_v5 }
  0x86   : > { %v197_v6 = vpop.xlane.xlu0 %196 }
  0x87   : > { %198 = vxpose.xlu1.b32.start.end [1/1] (short) (narrow) %v197_v6, 8 }
  0x8e   : > { %v193_v9 = vpop.xlane.xlu0 %192 }
  0x90   : > { %v255_v7 = vpop.f32.mrf.mxu0 }
  0x91   : > { %v258_v11 = vmul.f32 2.0, %v255_v7 }
 0x12b   : > { %v214_v8 = vpop.trf.xlu1 }
 0x12c   : > { %v230_v10 = vperm.slane %v214_v8, 0 }
 0x12e   : > { %v231_v12 = vadd.f32 %v230_v10, %v193_v9 }
 0x130   : > { %v259_v13 = vsub.f32 %v231_v12, %v258_v11 }
 0x132   : > { %vm260_vm1 = vcmp.gt.f32.partialorder %v259_v13, 11.390625  ;;  %vm262_vm2 = vcmp.gt.f32.partialorder %v259_v13, 22.653938  ;;  %vm265_vm3 = vcmp.gt.f32.partialorder %v259_v13, 37.75157 }
 0x133   : > { %v261_v15 = vsel %vm260_vm1, 1, %v450_v14  ;;  %v263_v16 = vsel %vm262_vm2, 1, %v450_v14  ;;  %vm268_vm4 = vcmp.gt.f32.partialorder %v259_v13, 56.683525  ;;  %v266_v18 = vsel %vm265_vm3, 1, %v450_v14 }
 0x134   : > { %v264_v17 = vadd.s32 %v263_v16, %v261_v15  ;;  %vm271_vm5 = vcmp.gt.f32.partialorder %v259_v13, 79.4498  ;;  %v269_v20 = vsel %vm268_vm4, 1, %v450_v14  ;;  %vm274_vm6 = vcmp.gt.f32.partialorder %v259_v13, 106.050385 }
 0x135   : > { %v272_v22 = vsel %vm271_vm5, 1, %v450_v14  ;;  %vm277_vm7 = vcmp.gt.f32.partialorder %v259_v13, 136.4853  ;;  %v275_v24 = vsel %vm274_vm6, 1, %v450_v14  ;;  %vm280_vm8 = vcmp.gt.f32.partialorder %v259_v13, 170.75453 }
 0x136   : > { %v267_v19 = vadd.s32 %v266_v18, %v264_v17  ;;  %v278_v26 = vsel %vm277_vm7, 1, %v450_v14  ;;  %vm283_vm9 = vcmp.gt.f32.partialorder %v259_v13, 208.85808  ;;  %v281_v28 = vsel %vm280_vm8, 1, %v450_v14 }
 0x137   : > { %vm286_vm10 = vcmp.gt.f32.partialorder %v259_v13, 250.79594  ;;  %v284_v30 = vsel %vm283_vm9, 1, %v450_v14  ;;  %vm289_vm11 = vcmp.gt.f32.partialorder %v259_v13, 296.56815 }
 0x138   : > { %v270_v21 = vadd.s32 %v269_v20, %v267_v19  ;;  %v287_v32 = vsel %vm286_vm10, 1, %v450_v14  ;;  %vm292_vm12 = vcmp.gt.f32.partialorder %v259_v13, 346.17465  ;;  %v290_v34 = vsel %vm289_vm11, 1, %v450_v14 }
 0x139   : > { %vm295_vm13 = vcmp.gt.f32.partialorder %v259_v13, 399.61548  ;;  %v293_v36 = vsel %vm292_vm12, 1, %v450_v14  ;;  %vm298_vm14 = vcmp.gt.f32.partialorder %v259_v13, 456.89063 }
 0x13a   : > { %v273_v23 = vadd.s32 %v272_v22, %v270_v21  ;;  %v296_v38 = vsel %vm295_vm13, 1, %v450_v14  ;;  %v299_v40 = vsel %vm298_vm14, 1, %v450_v14 }
 0x13c   : > { %v276_v25 = vadd.s32 %v275_v24, %v273_v23 }
 0x13e   : > { %v279_v27 = vadd.s32 %v278_v26, %v276_v25 }
 0x140   : > { %v282_v29 = vadd.s32 %v281_v28, %v279_v27 }
 0x142   : > { %v285_v31 = vadd.s32 %v284_v30, %v282_v29 }
 0x144   : > { %v288_v33 = vadd.s32 %v287_v32, %v285_v31 }
 0x146   : > { %v291_v35 = vadd.s32 %v290_v34, %v288_v33 }
 0x148   : > { %v294_v37 = vadd.s32 %v293_v36, %v291_v35 }
 0x14a   : > { %v297_v39 = vadd.s32 %v296_v38, %v294_v37 }
 0x14c   : > { %v300_v41 = vadd.s32 %v299_v40, %v297_v39 }
 0x14e   : > { %301 = vst.msk [vmem:[%s186_s22] sm:$0xff] %vm190_vm0, %v300_v41 }
 0x14f PF: > { %s12_s11 = sadd.s32 1, %s448_s11   ;;  %s515_s9 = smov %s444_s10 }
 0x150   : > { %p9_p5 = scmp.ge.s32.totalorder %s12_s11, 4   ;;  %s516_s10 = smov %s518_s12 }
 0x152   :  { %11 = sbr.rel (!%p9_p5) target bundleno = 2 (0x2), region = 61 }

// kernel: folding_trunk_forward.34
= control target key start
LH: loop header
LB: loop body
LE: loop exit
PB: predicated region body
PF: predicated region fallthrough
CT: control target
= control target key end

     0   :  { %vm84_vm0 = vcmask 130048   ;;  %s359_s0 = inlined_call_operand.vmem [shape: bf16[128,16], index: 0, kind: input, shape index: {}]   ;;  %s360_s1 = inlined_call_operand.vmem [shape: bf16[16,8], index: 1, kind: input, shape index: {}]   ;;  %s361_s2 = inlined_call_operand.vmem [shape: f32[1,8], index: 2, kind: input, shape index: {}]   ;;  %s362_s3 = inlined_call_operand.hbm [shape: f32[128,8], index: 3, kind: output, shape index: {}]  }
   0x1   :  { %v245_v0 = vld [vmem:[%s360_s1] sm:$0xff]  ;;  %v239_v2 = vld [vmem:[%s359_s0 + $0x10] sm:$0xff] }
   0x2   :  { %v237_v1 = vld [vmem:[%s359_s0] sm:$0xff]  ;;  %116 = vmatpush.bf16.msra.mxu0 %v245_v0  ;;  %246 = vmatpush.bf16.msra.mxu1 %v245_v0  ;;  %v243_v4 = vld [vmem:[%s359_s0 + $0x30] sm:$0xff] }
   0x3   :  { %v241_v3 = vld [vmem:[%s359_s0 + $0x20] sm:$0xff]  ;;  %247 = vmatpush.bf16.msra.mxu2 %v245_v0  ;;  %248 = vmatpush.bf16.msra.mxu3 %v245_v0 }
   0x4   :  { %8 = vsyncpa [#allocation3], 0  ;;  %v238_v5 = vld [vmem:[%s359_s0 + $0x8] sm:$0xff]  ;;  %v240_v6 = vld [vmem:[%s359_s0 + $0x18] sm:$0xff]  ;;  %vm158_vm1 = vcmask 64512   ;;  %s181_s6 = sshll.u32 %s362_s3, 4  ;;  %s182_s6 = int_to_ptr.hbm [resolvable:$true] %s181_s6 }
   0x5   :  { %229 = vmatmul.msk.bf16.vlgmr.msra.gmra.mxu0 %vm84_vm0, %v237_v1  ;;  %231 = vmatmul.msk.bf16.vlgmr.msra.gmra.mxu1 %vm84_vm0, %v239_v2  ;;  %v242_v7 = vld [vmem:[%s359_s0 + $0x28] sm:$0xff]  ;;  %v244_v8 = vld [vmem:[%s359_s0 + $0x38] sm:$0xff]  ;;  %v252_v9 = vld [vmem:[%s361_s2] ss:$0 sm:$0xff]  ;;  %s279_s0 = smov [#allocation2]   ;;  %s280_s7 = smov 128  }
   0x6   :  { %233 = vmatmul.msk.bf16.vlgmr.msra.gmra.mxu2 %vm84_vm0, %v241_v3  ;;  %235 = vmatmul.msk.bf16.vlgmr.msra.gmra.mxu3 %vm84_vm0, %v243_v4  ;;  %s179_s2 = sshll.u32 %s279_s0, 4  ;;  %s281_s8 = smov 8   ;;  %s180_s2 = int_to_ptr.vmem [resolvable:$true] %s179_s2 }
  0x15   :  { %230 = vmatmul.msk.bf16.gmra.mxu0 %vm84_vm0, %v238_v5  ;;  %232 = vmatmul.msk.bf16.gmra.mxu1 %vm84_vm0, %v240_v6 }
  0x16   :  { %234 = vmatmul.msk.bf16.gmra.mxu2 %vm84_vm0, %v242_v7  ;;  %236 = vmatmul.msk.bf16.gmra.mxu3 %vm84_vm0, %v244_v8 }
  0x82   :  { %v118_v10 = vpop.f32.mrf.mxu0  ;;  %v128_v11 = vpop.f32.mrf.mxu1 }
  0x83   :  { %v119_v12 = vadd.f32 %v252_v9, %v118_v10  ;;  %v129_v13 = vadd.f32 %v252_v9, %v128_v11 }
  0x85   :  { %159 = vst.msk [vmem:[#allocation2] sm:$0xff] %vm158_vm1, %v119_v12 }
  0x86   :  { %163 = vst.msk [vmem:[#allocation2 + $0x20] sm:$0xff] %vm158_vm1, %v129_v13 }
  0x89   :  { %v138_v14 = vpop.f32.mrf.mxu2  ;;  %v148_v15 = vpop.f32.mrf.mxu3 }
  0x8a   :  { %v139_v16 = vadd.f32 %v252_v9, %v138_v14  ;;  %v149_v17 = vadd.f32 %v252_v9, %v148_v15  ;;  %v120_v18 = vpop.f32.mrf.mxu0  ;;  %v130_v19 = vpop.f32.mrf.mxu1 }
  0x8b   :  { %v121_v20 = vadd.f32 %v252_v9, %v120_v18  ;;  %v131_v21 = vadd.f32 %v252_v9, %v130_v19 }
  0x8c   :  { %167 = vst.msk [vmem:[#allocation2 + $0x40] sm:$0xff] %vm158_vm1, %v139_v16 }
  0x8d   :  { %171 = vst.msk [vmem:[#allocation2 + $0x60] sm:$0xff] %vm158_vm1, %v149_v17 }
  0x8e   :  { %160 = vst.msk [vmem:[#allocation2 + $0x8] sm:$0xff] %vm158_vm1, %v121_v20 }
  0x8f   :  { %164 = vst.msk [vmem:[#allocation2 + $0x28] sm:$0xff] %vm158_vm1, %v131_v21 }
  0x91   :  { %v140_v22 = vpop.f32.mrf.mxu2  ;;  %v150_v23 = vpop.f32.mrf.mxu3 }
  0x92   :  { %v141_v24 = vadd.f32 %v252_v9, %v140_v22  ;;  %v151_v25 = vadd.f32 %v252_v9, %v150_v23  ;;  %v123_v26 = vpop.f32.mrf.mxu0  ;;  %v133_v27 = vpop.f32.mrf.mxu1 }
  0x93   :  { %v124_v28 = vadd.f32 %v252_v9, %v123_v26  ;;  %v134_v29 = vadd.f32 %v252_v9, %v133_v27 }
  0x94   :  { %168 = vst.msk [vmem:[#allocation2 + $0x48] sm:$0xff] %vm158_vm1, %v141_v24 }
  0x95   :  { %172 = vst.msk [vmem:[#allocation2 + $0x68] sm:$0xff] %vm158_vm1, %v151_v25 }
  0x96   :  { %161 = vst.msk [vmem:[#allocation2 + $0x10] sm:$0xff] %vm158_vm1, %v124_v28 }
  0x97   :  { %165 = vst.msk [vmem:[#allocation2 + $0x30] sm:$0xff] %vm158_vm1, %v134_v29 }
  0x99   :  { %v143_v30 = vpop.f32.mrf.mxu2  ;;  %v153_v31 = vpop.f32.mrf.mxu3 }
  0x9a   :  { %v144_v32 = vadd.f32 %v252_v9, %v143_v30  ;;  %v154_v33 = vadd.f32 %v252_v9, %v153_v31  ;;  %v125_v34 = vpop.f32.mrf.mxu0  ;;  %v135_v35 = vpop.f32.mrf.mxu1 }
  0x9b   :  { %v126_v36 = vadd.f32 %v252_v9, %v125_v34  ;;  %v136_v37 = vadd.f32 %v252_v9, %v135_v35 }
  0x9c   :  { %169 = vst.msk [vmem:[#allocation2 + $0x50] sm:$0xff] %vm158_vm1, %v144_v32 }
  0x9d   :  { %173 = vst.msk [vmem:[#allocation2 + $0x70] sm:$0xff] %vm158_vm1, %v154_v33 }
  0x9e   :  { %162 = vst.msk [vmem:[#allocation2 + $0x18] sm:$0xff] %vm158_vm1, %v126_v36 }
  0x9f   :  { %166 = vst.msk [vmem:[#allocation2 + $0x38] sm:$0xff] %vm158_vm1, %v136_v37 }
  0xa1   :  { %v145_v38 = vpop.f32.mrf.mxu2  ;;  %v155_v39 = vpop.f32.mrf.mxu3 }
  0xa2   :  { %v146_v40 = vadd.f32 %v252_v9, %v145_v38  ;;  %v156_v41 = vadd.f32 %v252_v9, %v155_v39 }
  0xa4   :  { %170 = vst.msk [vmem:[#allocation2 + $0x58] sm:$0xff] %vm158_vm1, %v146_v40 }
  0xa5   :  { %174 = vst.msk [vmem:[#allocation2 + $0x78] sm:$0xff] %vm158_vm1, %v156_v41 }
  0xa6   :  { %187 = dma.vmem_to_hbm [thread:$0]  %s180_s2, 2048, %s182_s6, [#allocation3], %s280_s7, %s280_s7, %s281_s8  }
  0xa7   :  { %277 = dma.done.wait [#allocation3], 2048  }
  0xa8   :  { %278 = vsyncadd [#allocation3], 4294965248 }
  0xa9   :  { %192 = vsyncpa [#allocation3], 1 }

</bundles_post_ra>
